<compile_context>
chip_gen: v7x
topology: tpu7x:2x2x1
jax: 0.10.0
libtpu: 0.0.40
codegen_flags: <defaults>
</compile_context>

<pallas_src>
import functools

import jax
import jax.numpy as jnp
from jax import lax
from jax.experimental import pallas as pl
from jax.experimental.pallas import tpu as pltpu


_EPS = 1e-5                     # torch LayerNorm default
_WDT = jnp.bfloat16             # storage dtype for matmul weights / MXU inputs
_PAR1 = pltpu.CompilerParams(dimension_semantics=("parallel",))


# --------------------------- in-kernel helpers (traced) ----------------------------

def _ln(x, gb_ref):
    """LayerNorm in f32.  gb_ref rows: [gamma, beta] (+ optional extra packed rows)."""
    mu = jnp.mean(x, axis=-1, keepdims=True)
    var = jnp.mean(jnp.square(x - mu), axis=-1, keepdims=True)
    xn = (x - mu) * lax.rsqrt(var + _EPS)
    return xn * gb_ref[0:1, :] + gb_ref[1:2, :]


def _erf(x):
    # Abramowitz-Stegun 7.1.26 (|err| < 1.5e-7): matches torch's exact-erf GELU to f32 tolerance
    # while only using exp / mul / where (guaranteed Mosaic lowering).
    a1, a2, a3, a4, a5 = 0.254829592, -0.284496736, 1.421413741, -1.453152027, 1.061405429
    p = 0.3275911
    ax = jnp.abs(x)
    t = 1.0 / (1.0 + p * ax)
    poly = ((((a5 * t + a4) * t + a3) * t + a2) * t + a1) * t
    y = 1.0 - poly * jnp.exp(-ax * ax)
    return jnp.where(x >= 0.0, y, -y)


def _gelu_exact(x):
    return 0.5 * x * (1.0 + _erf(x * 0.7071067811865476))


def _attend(q, k, v, wo_ref, heads, head_dim, scale):
    """Multi-head attention + output projection (no bias).  q:(Nq,H*Dh) k,v:(Nk,H*Dh) f32."""
    acc = None
    for h in range(heads):                              # static unroll, H <= 4
        sl = slice(h * head_dim, (h + 1) * head_dim)
        qh, kh, vh = q[:, sl], k[:, sl], v[:, sl]
        # contract last dims directly -> no transposed copy of k
        s = lax.dot_general(qh.astype(_WDT), kh.astype(_WDT),
                            (((1,), (1,)), ((), ())),
                            preferred_element_type=jnp.float32) * scale
        m = jnp.max(s, axis=-1, keepdims=True)
        p = jnp.exp(s - m)
        attn = p / jnp.sum(p, axis=-1, keepdims=True)   # exact softmax (no approx reciprocal)
        oh = jnp.dot(attn.astype(_WDT), vh.astype(_WDT), preferred_element_type=jnp.float32)
        # concat(o_h) @ Wo == sum_h o_h @ Wo[h-block]  (sublane-aligned row slice of Wo)
        term = jnp.dot(oh.astype(_WDT), wo_ref[sl, :], preferred_element_type=jnp.float32)
        acc = term if acc is None else acc + term
    return acc


def _geglu_ff(x, nb2_ref, w1_ref, b1_ref, w2_ref, hidden):
    """PreNorm GEGLU feed-forward (no residual).  nb2_ref rows: [gamma, beta, out_bias]."""
    xn = _ln(x, nb2_ref).astype(_WDT)
    h12 = jnp.dot(xn, w1_ref[...], preferred_element_type=jnp.float32) + b1_ref[...]
    val, gate = h12[:, :hidden], h12[:, hidden:]        # split at lane-aligned `hidden`
    h = val * _gelu_exact(gate)
    return jnp.dot(h.astype(_WDT), w2_ref[...], preferred_element_type=jnp.float32) + nb2_ref[2:3, :]


# ------------------------------- fused encoder kernel --------------------------------

def encoder_forward(cfg, params, inputs):
    """One pallas_call: input projections + concat + cross-attn + cross-FF + L x (SA + FF)."""
    mods = cfg["modalities"]                         # tuple of (name, max_len, dim)
    n_mod = len(mods)
    B = inputs[mods[0][0]].shape[0]
    N, D = cfg["num_latent_tokens"], cfg["latent_dim"]
    Hc, Dhc = cfg["cross_heads"], cfg["cross_head_dim"]
    Hl, Dhl = cfg["latent_heads"], cfg["latent_head_dim"]
    num_layers = cfg["num_layers"]
    ffh = D * cfg["ff_mult"]
    inner_c, inner_l = Hc * Dhc, Hl * Dhl

    operands, specs = [], []

    def add(a, spec):
        operands.append(a)
        specs.append(spec)

    def c2(a):                                       # grid-invariant 2-D operand (fetched once)
        add(a, pl.BlockSpec(a.shape, lambda b: (0, 0)))

    for name, max_len, dim in mods:
        x = inputs[name]
        add(x, pl.BlockSpec((None, max_len, dim), lambda b: (b, 0, 0)))
        w_x, pe_bias = params["input_proj"][name]
        c2(w_x)
        c2(pe_bias)

    c2(params["latents"])

    ca = params["cross_attn"]
    c2(ca["nqb"]); c2(ca["nc"]); c2(ca["wq"]); c2(ca["wkv"]); c2(ca["wo"])
    cf = params["cross_ff"]
    c2(cf["nb2"]); c2(cf["w1"]); c2(cf["b1"]); c2(cf["w2"])
    for layer in params["layers"]:
        la, lf = layer["attn"], layer["ff"]
        c2(la["nqb"]); c2(la["wqkv"]); c2(la["wo"])
        c2(lf["nb2"]); c2(lf["w1"]); c2(lf["b1"]); c2(lf["w2"])

    def kernel(*refs):
        it = iter(refs[:-1])
        out_ref = refs[-1]
        nxt = lambda: next(it)

        # 1) per-modality projection + seq concat; fourier-PE term is a precomputed additive
        #    bias (cat([x,pe]) @ W + b == x @ W[:d] + (pe @ W[d:] + b)), context never leaves VMEM
        parts = []
        for _ in range(n_mod):
            x_ref, w_ref, pb_ref = nxt(), nxt(), nxt()
            parts.append(jnp.dot(x_ref[...].astype(_WDT), w_ref[...],
                                 preferred_element_type=jnp.float32) + pb_ref[...])
        ctx = jnp.concatenate(parts, axis=0) if n_mod > 1 else parts[0]     # (S, D) f32

        lat = nxt()[...].astype(jnp.float32)                                 # (N, D)

        # 2) cross-attention (+ residual); nqb rows = [gamma, beta, out_bias]
        nqb, nc, wq, wkv, wo = nxt(), nxt(), nxt(), nxt(), nxt()
        xn = _ln(lat, nqb).astype(_WDT)
        cn = _ln(ctx, nc).astype(_WDT)
        q = jnp.dot(xn, wq[...], preferred_element_type=jnp.float32)
        kv = jnp.dot(cn, wkv[...], preferred_element_type=jnp.float32)       # fused k|v
        lat = lat + _attend(q, kv[:, :inner_c], kv[:, inner_c:], wo,
                            Hc, Dhc, Dhc ** -0.5) + nqb[2:3, :]

        # 3) cross feed-forward (+ residual)
        nb2, w1, b1, w2 = nxt(), nxt(), nxt(), nxt()
        lat = lat + _geglu_ff(lat, nb2, w1, b1, w2, ffh)

        # 4) latent transformer
        for _ in range(num_layers):
            nqb, wqkv, wo = nxt(), nxt(), nxt()
            xn = _ln(lat, nqb).astype(_WDT)
            qkv = jnp.dot(xn, wqkv[...], preferred_element_type=jnp.float32)  # fused q|k|v
            lat = lat + _attend(qkv[:, :inner_l], qkv[:, inner_l:2 * inner_l],
                                qkv[:, 2 * inner_l:], wo, Hl, Dhl, Dhl ** -0.5) + nqb[2:3, :]
            nb2, w1, b1, w2 = nxt(), nxt(), nxt(), nxt()
            lat = lat + _geglu_ff(lat, nb2, w1, b1, w2, ffh)

        out_ref[...] = lat.astype(out_ref.dtype)

    return pl.pallas_call(
        kernel,
        out_shape=jax.ShapeDtypeStruct((B, N, D), jnp.float32),
        grid=(B,),
        in_specs=specs,
        out_specs=pl.BlockSpec((None, N, D), lambda b: (b, 0, 0)),
        compiler_params=_PAR1,
    )(*operands)


# ------------------------------- fused decoder kernel --------------------------------

def decoder_forward(cfg, params, lat, queries):
    """One pallas_call: decoder cross-attn (no residual) + FF residual + to_logits (padded)."""
    B, N, D = lat.shape
    Dq = cfg["queries_dim"]
    Hc, Dhc = cfg["cross_heads"], cfg["cross_head_dim"]
    inner_c = Hc * Dhc
    ffh = Dq * cfg["ff_mult"]
    Lp, L = cfg["logits_pad"], cfg["logits_dim"]

    q3 = queries[None] if queries.ndim == 2 else queries
    qb, Nq = q3.shape[0], q3.shape[1]

    da, df = params["dec_attn"], params["dec_ff"]
    wl_pad, bl_pad = params["to_logits"]

    operands = [q3, lat, da["nqb"], da["nc"], da["wq"], da["wkv"], da["wo"],
                df["nb2"], df["w1"], df["b1"], df["w2"], wl_pad, bl_pad]
    q_map = (lambda b: (0, 0, 0)) if qb == 1 else (lambda b: (b, 0, 0))
    specs = ([pl.BlockSpec((None, Nq, Dq), q_map),
              pl.BlockSpec((None, N, D), lambda b: (b, 0, 0))] +
             [pl.BlockSpec(a.shape, lambda b: (0, 0)) for a in operands[2:]])

    def kernel(q_ref, lat_ref, nqb, nc, wq, wkv, wo, nb2, w1, b1, w2, wl, bl, out_ref):
        qin = q_ref[...].astype(jnp.float32)
        ctx = lat_ref[...].astype(jnp.float32)
        xn = _ln(qin, nqb).astype(_WDT)
        cn = _ln(ctx, nc).astype(_WDT)
        qp = jnp.dot(xn, wq[...], preferred_element_type=jnp.float32)
        kv = jnp.dot(cn, wkv[...], preferred_element_type=jnp.float32)
        dec = _attend(qp, kv[:, :inner_c], kv[:, inner_c:], wo,
                      Hc, Dhc, Dhc ** -0.5) + nqb[2:3, :]          # no residual (as in torch)
        dec = dec + _geglu_ff(dec, nb2, w1, b1, w2, ffh)
        logits = jnp.dot(dec.astype(_WDT), wl[...], preferred_element_type=jnp.float32) + bl[...]
        out_ref[...] = logits.astype(out_ref.dtype)                # lane-dense (Nq, 128) store

    out = pl.pallas_call(
        kernel,
        out_shape=jax.ShapeDtypeStruct((B, Nq, Lp), jnp.float32),
        grid=(B,),
        in_specs=specs,
        out_specs=pl.BlockSpec((None, Nq, Lp), lambda b: (b, 0, 0)),
        compiler_params=_PAR1,
    )(*operands)
    return out[:, :, :L]


# ------------------------------------ forward -----------------------------------------

def perceiver_forward(cfg, params, inputs, queries=None):
    # TODO(synk): attention_mask and training-time sequence dropout are not implemented
    # (both are None / inactive in this eval-mode forward).
    lat = encoder_forward(cfg, params, inputs)
    if queries is None:
        return lat
    return decoder_forward(cfg, params, lat, queries)


# ----------------------------- positional encoding ------------------------------------

def fourier_pos_encoding(max_len, num_bands, max_freq):
    """DeepMind Perceiver fourier features, concat_pos=True, sine_only=False."""
    pos = jnp.linspace(-1.0, 1.0, max_len, dtype=jnp.float32)
    bands = jnp.linspace(1.0, max_freq / 2.0, num_bands, dtype=jnp.float32)
    f = pos[:, None] * bands[None, :]
    return jnp.concatenate(
        [pos[:, None], jnp.sin(jnp.pi * f), jnp.cos(jnp.pi * f)], axis=-1)    # (L, 1+2B)


# --------------------------- parameter creation ----------------------------------------

def _randn(key, shape, scale=0.02, dtype=jnp.float32):
    return (jax.random.normal(key, shape, jnp.float32) * scale).astype(dtype)


def _ln_pack(dim, extra_rows=1):
    # rows: [gamma=1, beta=0, (packed bias rows = 0)]
    return jnp.concatenate([jnp.ones((1, dim), jnp.float32),
                            jnp.zeros((1 + extra_rows, dim), jnp.float32)], axis=0)


def init_self_attention(key, dim, heads, head_dim):
    inner = heads * head_dim
    k1, k2 = jax.random.split(key)
    return {"nqb": _ln_pack(dim),                              # [gamma, beta, out_bias]
            "wqkv": _randn(k1, (dim, 3 * inner), dtype=_WDT),  # fused q|k|v (bias-free)
            "wo": _randn(k2, (inner, dim), dtype=_WDT)}


def init_cross_attention(key, query_dim, context_dim, heads, head_dim):
    inner = heads * head_dim
    k1, k2, k3 = jax.random.split(key, 3)
    return {"nqb": _ln_pack(query_dim),
            "nc": _ln_pack(context_dim, extra_rows=0),         # [gamma, beta] for context norm
            "wq": _randn(k1, (query_dim, inner), dtype=_WDT),
            "wkv": _randn(k2, (context_dim, 2 * inner), dtype=_WDT),   # fused k|v
            "wo": _randn(k3, (inner, query_dim), dtype=_WDT)}


def init_ff(key, dim, mult=4):
    hidden = dim * mult
    k1, k2 = jax.random.split(key)
    return {"nb2": _ln_pack(dim),                               # [gamma, beta, out_bias]
            "w1": _randn(k1, (dim, 2 * hidden), dtype=_WDT),    # fused GEGLU value|gate
            "b1": jnp.zeros((1, 2 * hidden), jnp.float32),
            "w2": _randn(k2, (hidden, dim), dtype=_WDT)}


def init_params(cfg, key):
    D, Dq = cfg["latent_dim"], cfg["queries_dim"]
    pos_dim = 1 + 2 * cfg["num_fourier_bands"]
    keys = iter(jax.random.split(key, 64))

    params = {"input_proj": {}}
    for name, max_len, dim in cfg["modalities"]:
        pe = fourier_pos_encoding(max_len, cfg["num_fourier_bands"], cfg["max_freq"])  # (L, P)
        W = jax.random.normal(next(keys), (dim + pos_dim, D), jnp.float32) * 0.02
        b = jnp.zeros((D,), jnp.float32)
        # cat([x, pe]) @ W + b == x @ W[:dim] + (pe @ W[dim:] + b); PE term is batch-free.
        params["input_proj"][name] = (W[:dim, :].astype(_WDT), pe @ W[dim:, :] + b)

    params["latents"] = jax.random.normal(next(keys), (cfg["num_latent_tokens"], D), jnp.float32)
    params["cross_attn"] = init_cross_attention(next(keys), D, D,
                                                cfg["cross_heads"], cfg["cross_head_dim"])
    params["cross_ff"] = init_ff(next(keys), D, cfg["ff_mult"])
    params["layers"] = [
        {"attn": init_self_attention(next(keys), D, cfg["latent_heads"], cfg["latent_head_dim"]),
         "ff": init_ff(next(keys), D, cfg["ff_mult"])}
        for _ in range(cfg["num_layers"])]
    params["dec_attn"] = init_cross_attention(next(keys), Dq, D,
                                              cfg["cross_heads"], cfg["cross_head_dim"])
    params["dec_ff"] = init_ff(next(keys), Dq, cfg["ff_mult"])

    L, Lp = cfg["logits_dim"], cfg["logits_pad"]
    wl = jax.random.normal(next(keys), (Dq, L), jnp.float32) * 0.02
    wl_pad = jnp.zeros((Dq, Lp), jnp.float32).at[:, :L].set(wl).astype(_WDT)
    bl_pad = jnp.zeros((1, Lp), jnp.float32)
    params["to_logits"] = (wl_pad, bl_pad)
    return params


# ---------------------------------- main ------------------------------------------------

if __name__ == "__main__":
    key = jax.random.PRNGKey(0)

    # Static configuration (closed over, never traced through jit).
    cfg = dict(
        modalities=(("mod_a", 8, 16), ("mod_b", 8, 8)),   # (name, max_len, dim)
        num_layers=2,
        num_latent_tokens=16,
        latent_dim=64,
        cross_heads=1, cross_head_dim=32,
        latent_heads=4, latent_head_dim=16,
        queries_dim=32,
        logits_dim=10,
        logits_pad=128,           # lane-dense logits store, sliced back to logits_dim outside
        ff_mult=4,
        num_fourier_bands=8,
        max_freq=10.0,
    )
    B = 2
    num_queries = 8

    kp, kin_a, kin_b, kq = jax.random.split(key, 4)
    params = init_params(cfg, kp)

    inputs = {
        "mod_a": jax.random.normal(kin_a, (B, 8, 16), jnp.float32),
        "mod_b": jax.random.normal(kin_b, (B, 8, 8), jnp.float32),
    }
    queries = jax.random.normal(kq, (num_queries, cfg["queries_dim"]), jnp.float32)

    fwd = jax.jit(functools.partial(perceiver_forward, cfg))

    out = jax.block_until_ready(fwd(params, inputs, queries))
    assert out.shape == (B, num_queries, cfg["logits_dim"]), out.shape
    assert bool(jnp.all(jnp.isfinite(out)))

    # queries=None path: returns the latent representation.
    lat = jax.block_until_ready(fwd(params, inputs))
    assert lat.shape == (B, cfg["num_latent_tokens"], cfg["latent_dim"]), lat.shape
    assert bool(jnp.all(jnp.isfinite(lat)))

    print("KERNEL_OK")
</pallas_src>

<mosaic_0001>
module attributes {stable_mosaic.version = 11 : i64} {
  func.func @kernel(%arg0: i32, %arg1: memref<1x8x16xf32, #tpu.memory_space<vmem>>, %arg2: memref<16x64xbf16, #tpu.memory_space<vmem>>, %arg3: memref<8x64xf32, #tpu.memory_space<vmem>>, %arg4: memref<1x8x8xf32, #tpu.memory_space<vmem>>, %arg5: memref<8x64xbf16, #tpu.memory_space<vmem>>, %arg6: memref<8x64xf32, #tpu.memory_space<vmem>>, %arg7: memref<16x64xf32, #tpu.memory_space<vmem>>, %arg8: memref<3x64xf32, #tpu.memory_space<vmem>>, %arg9: memref<2x64xf32, #tpu.memory_space<vmem>>, %arg10: memref<64x32xbf16, #tpu.memory_space<vmem>>, %arg11: memref<64x64xbf16, #tpu.memory_space<vmem>>, %arg12: memref<32x64xbf16, #tpu.memory_space<vmem>>, %arg13: memref<3x64xf32, #tpu.memory_space<vmem>>, %arg14: memref<64x512xbf16, #tpu.memory_space<vmem>>, %arg15: memref<1x512xf32, #tpu.memory_space<vmem>>, %arg16: memref<256x64xbf16, #tpu.memory_space<vmem>>, %arg17: memref<3x64xf32, #tpu.memory_space<vmem>>, %arg18: memref<64x192xbf16, #tpu.memory_space<vmem>>, %arg19: memref<64x64xbf16, #tpu.memory_space<vmem>>, %arg20: memref<3x64xf32, #tpu.memory_space<vmem>>, %arg21: memref<64x512xbf16, #tpu.memory_space<vmem>>, %arg22: memref<1x512xf32, #tpu.memory_space<vmem>>, %arg23: memref<256x64xbf16, #tpu.memory_space<vmem>>, %arg24: memref<3x64xf32, #tpu.memory_space<vmem>>, %arg25: memref<64x192xbf16, #tpu.memory_space<vmem>>, %arg26: memref<64x64xbf16, #tpu.memory_space<vmem>>, %arg27: memref<3x64xf32, #tpu.memory_space<vmem>>, %arg28: memref<64x512xbf16, #tpu.memory_space<vmem>>, %arg29: memref<1x512xf32, #tpu.memory_space<vmem>>, %arg30: memref<256x64xbf16, #tpu.memory_space<vmem>>, %arg31: memref<1x16x64xf32, #tpu.memory_space<vmem>>) attributes {dimension_semantics = [#tpu.dimension_semantics<parallel>], iteration_bounds = array<i64: 2>, scalar_prefetch = 0 : i64, scratch_operands = 0 : i64, tpu.core_type = #tpu.core_type<tc>, window_params = [{transform_indices = @transform_0, window_bounds = array<i64: 1, 8, 16>}, {pipeline_mode = #tpu.pipeline_mode<synchronous>, transform_indices = @transform_1, window_bounds = array<i64: 16, 64>}, {pipeline_mode = #tpu.pipeline_mode<synchronous>, transform_indices = @transform_2, window_bounds = array<i64: 8, 64>}, {transform_indices = @transform_3, window_bounds = array<i64: 1, 8, 8>}, {pipeline_mode = #tpu.pipeline_mode<synchronous>, transform_indices = @transform_4, window_bounds = array<i64: 8, 64>}, {pipeline_mode = #tpu.pipeline_mode<synchronous>, transform_indices = @transform_5, window_bounds = array<i64: 8, 64>}, {pipeline_mode = #tpu.pipeline_mode<synchronous>, transform_indices = @transform_6, window_bounds = array<i64: 16, 64>}, {pipeline_mode = #tpu.pipeline_mode<synchronous>, transform_indices = @transform_7, window_bounds = array<i64: 3, 64>}, {pipeline_mode = #tpu.pipeline_mode<synchronous>, transform_indices = @transform_8, window_bounds = array<i64: 2, 64>}, {pipeline_mode = #tpu.pipeline_mode<synchronous>, transform_indices = @transform_9, window_bounds = array<i64: 64, 32>}, {pipeline_mode = #tpu.pipeline_mode<synchronous>, transform_indices = @transform_10, window_bounds = array<i64: 64, 64>}, {pipeline_mode = #tpu.pipeline_mode<synchronous>, transform_indices = @transform_11, window_bounds = array<i64: 32, 64>}, {pipeline_mode = #tpu.pipeline_mode<synchronous>, transform_indices = @transform_12, window_bounds = array<i64: 3, 64>}, {pipeline_mode = #tpu.pipeline_mode<synchronous>, transform_indices = @transform_13, window_bounds = array<i64: 64, 512>}, {pipeline_mode = #tpu.pipeline_mode<synchronous>, transform_indices = @transform_14, window_bounds = array<i64: 1, 512>}, {pipeline_mode = #tpu.pipeline_mode<synchronous>, transform_indices = @transform_15, window_bounds = array<i64: 256, 64>}, {pipeline_mode = #tpu.pipeline_mode<synchronous>, transform_indices = @transform_16, window_bounds = array<i64: 3, 64>}, {pipeline_mode = #tpu.pipeline_mode<synchronous>, transform_indices = @transform_17, window_bounds = array<i64: 64, 192>}, {pipeline_mode = #tpu.pipeline_mode<synchronous>, transform_indices = @transform_18, window_bounds = array<i64: 64, 64>}, {pipeline_mode = #tpu.pipeline_mode<synchronous>, transform_indices = @transform_19, window_bounds = array<i64: 3, 64>}, {pipeline_mode = #tpu.pipeline_mode<synchronous>, transform_indices = @transform_20, window_bounds = array<i64: 64, 512>}, {pipeline_mode = #tpu.pipeline_mode<synchronous>, transform_indices = @transform_21, window_bounds = array<i64: 1, 512>}, {pipeline_mode = #tpu.pipeline_mode<synchronous>, transform_indices = @transform_22, window_bounds = array<i64: 256, 64>}, {pipeline_mode = #tpu.pipeline_mode<synchronous>, transform_indices = @transform_23, window_bounds = array<i64: 3, 64>}, {pipeline_mode = #tpu.pipeline_mode<synchronous>, transform_indices = @transform_24, window_bounds = array<i64: 64, 192>}, {pipeline_mode = #tpu.pipeline_mode<synchronous>, transform_indices = @transform_25, window_bounds = array<i64: 64, 64>}, {pipeline_mode = #tpu.pipeline_mode<synchronous>, transform_indices = @transform_26, window_bounds = array<i64: 3, 64>}, {pipeline_mode = #tpu.pipeline_mode<synchronous>, transform_indices = @transform_27, window_bounds = array<i64: 64, 512>}, {pipeline_mode = #tpu.pipeline_mode<synchronous>, transform_indices = @transform_28, window_bounds = array<i64: 1, 512>}, {pipeline_mode = #tpu.pipeline_mode<synchronous>, transform_indices = @transform_29, window_bounds = array<i64: 256, 64>}, {transform_indices = @transform_30, window_bounds = array<i64: 1, 16, 64>}]} {
    %c0 = arith.constant 0 : index
    %c0_0 = arith.constant 0 : index
    %c0_1 = arith.constant 0 : index
    %0 = vector.load %arg1[%c0, %c0_0, %c0_1] : memref<1x8x16xf32, #tpu.memory_space<vmem>>, vector<1x8x16xf32>
    %1 = vector.shape_cast %0 : vector<1x8x16xf32> to vector<8x16xf32>
    %2 = arith.truncf %1 : vector<8x16xf32> to vector<8x16xbf16>
    %c0_2 = arith.constant 0 : index
    %c0_3 = arith.constant 0 : index
    %3 = vector.load %arg2[%c0_2, %c0_3] : memref<16x64xbf16, #tpu.memory_space<vmem>>, vector<16x64xbf16>
    %cst = arith.constant dense<0.000000e+00> : vector<8x64xf32>
    %4 = tpu.matmul %2, %3, %cst {dimension_numbers = #tpu.dot_dimension_numbers<[1], [0], [0], [1], [0, 0, 1, 1], [], []>} : vector<8x16xbf16>, vector<16x64xbf16>, vector<8x64xf32> -> vector<8x64xf32>
    %c0_4 = arith.constant 0 : index
    %c0_5 = arith.constant 0 : index
    %5 = vector.load %arg3[%c0_4, %c0_5] : memref<8x64xf32, #tpu.memory_space<vmem>>, vector<8x64xf32>
    %6 = arith.addf %4, %5 : vector<8x64xf32>
    %c0_6 = arith.constant 0 : index
    %c0_7 = arith.constant 0 : index
    %c0_8 = arith.constant 0 : index
    %7 = vector.load %arg4[%c0_6, %c0_7, %c0_8] : memref<1x8x8xf32, #tpu.memory_space<vmem>>, vector<1x8x8xf32>
    %8 = vector.shape_cast %7 : vector<1x8x8xf32> to vector<8x8xf32>
    %9 = arith.truncf %8 : vector<8x8xf32> to vector<8x8xbf16>
    %c0_9 = arith.constant 0 : index
    %c0_10 = arith.constant 0 : index
    %10 = vector.load %arg5[%c0_9, %c0_10] : memref<8x64xbf16, #tpu.memory_space<vmem>>, vector<8x64xbf16>
    %cst_11 = arith.constant dense<0.000000e+00> : vector<8x64xf32>
    %11 = tpu.matmul %9, %10, %cst_11 {dimension_numbers = #tpu.dot_dimension_numbers<[1], [0], [0], [1], [0, 0, 1, 1], [], []>} : vector<8x8xbf16>, vector<8x64xbf16>, vector<8x64xf32> -> vector<8x64xf32>
    %c0_12 = arith.constant 0 : index
    %c0_13 = arith.constant 0 : index
    %12 = vector.load %arg6[%c0_12, %c0_13] : memref<8x64xf32, #tpu.memory_space<vmem>>, vector<8x64xf32>
    %13 = arith.addf %11, %12 : vector<8x64xf32>
    %14 = tpu.concatenate %6, %13 in 0 : vector<8x64xf32>, vector<8x64xf32> -> vector<16x64xf32>
    %c0_14 = arith.constant 0 : index
    %c0_15 = arith.constant 0 : index
    %15 = vector.load %arg7[%c0_14, %c0_15] : memref<16x64xf32, #tpu.memory_space<vmem>>, vector<16x64xf32>
    %cst_16 = arith.constant dense<0.000000e+00> : vector<16xf32>
    %16 = vector.multi_reduction <add>, %15, %cst_16 [1] : vector<16x64xf32> to vector<16xf32>
    %17 = vector.shape_cast %16 : vector<16xf32> to vector<16x1xf32>
    %cst_17 = arith.constant 6.400000e+01 : f32
    %18 = vector.broadcast %cst_17 : f32 to vector<16x1xf32>
    %19 = arith.divf %17, %18 : vector<16x1xf32>
    %20 = vector.broadcast %19 : vector<16x1xf32> to vector<16x64xf32>
    %21 = arith.subf %15, %20 : vector<16x64xf32>
    %22 = arith.mulf %21, %21 : vector<16x64xf32>
    %cst_18 = arith.constant dense<0.000000e+00> : vector<16xf32>
    %23 = vector.multi_reduction <add>, %22, %cst_18 [1] : vector<16x64xf32> to vector<16xf32>
    %24 = vector.shape_cast %23 : vector<16xf32> to vector<16x1xf32>
    %cst_19 = arith.constant 6.400000e+01 : f32
    %25 = vector.broadcast %cst_19 : f32 to vector<16x1xf32>
    %26 = arith.divf %24, %25 : vector<16x1xf32>
    %27 = vector.broadcast %19 : vector<16x1xf32> to vector<16x64xf32>
    %28 = arith.subf %15, %27 : vector<16x64xf32>
    %cst_20 = arith.constant 9.99999974E-6 : f32
    %29 = vector.broadcast %cst_20 : f32 to vector<16x1xf32>
    %30 = arith.addf %26, %29 : vector<16x1xf32>
    %31 = math.rsqrt %30 : vector<16x1xf32>
    %32 = vector.broadcast %31 : vector<16x1xf32> to vector<16x64xf32>
    %33 = arith.mulf %28, %32 : vector<16x64xf32>
    %c0_21 = arith.constant 0 : index
    %c0_22 = arith.constant 0 : index
    %34 = vector.load %arg8[%c0_21, %c0_22] : memref<3x64xf32, #tpu.memory_space<vmem>>, vector<1x64xf32>
    %35 = vector.broadcast %34 : vector<1x64xf32> to vector<16x64xf32>
    %36 = arith.mulf %33, %35 : vector<16x64xf32>
    %c1 = arith.constant 1 : index
    %c0_23 = arith.constant 0 : index
    %37 = vector.load %arg8[%c1, %c0_23] : memref<3x64xf32, #tpu.memory_space<vmem>>, vector<1x64xf32>
    %38 = vector.broadcast %37 : vector<1x64xf32> to vector<16x64xf32>
    %39 = arith.addf %36, %38 : vector<16x64xf32>
    %40 = arith.truncf %39 : vector<16x64xf32> to vector<16x64xbf16>
    %cst_24 = arith.constant dense<0.000000e+00> : vector<16xf32>
    %41 = vector.multi_reduction <add>, %14, %cst_24 [1] : vector<16x64xf32> to vector<16xf32>
    %42 = vector.shape_cast %41 : vector<16xf32> to vector<16x1xf32>
    %cst_25 = arith.constant 6.400000e+01 : f32
    %43 = vector.broadcast %cst_25 : f32 to vector<16x1xf32>
    %44 = arith.divf %42, %43 : vector<16x1xf32>
    %45 = vector.broadcast %44 : vector<16x1xf32> to vector<16x64xf32>
    %46 = arith.subf %14, %45 : vector<16x64xf32>
    %47 = arith.mulf %46, %46 : vector<16x64xf32>
    %cst_26 = arith.constant dense<0.000000e+00> : vector<16xf32>
    %48 = vector.multi_reduction <add>, %47, %cst_26 [1] : vector<16x64xf32> to vector<16xf32>
    %49 = vector.shape_cast %48 : vector<16xf32> to vector<16x1xf32>
    %cst_27 = arith.constant 6.400000e+01 : f32
    %50 = vector.broadcast %cst_27 : f32 to vector<16x1xf32>
    %51 = arith.divf %49, %50 : vector<16x1xf32>
    %52 = vector.broadcast %44 : vector<16x1xf32> to vector<16x64xf32>
    %53 = arith.subf %14, %52 : vector<16x64xf32>
    %cst_28 = arith.constant 9.99999974E-6 : f32
    %54 = vector.broadcast %cst_28 : f32 to vector<16x1xf32>
    %55 = arith.addf %51, %54 : vector<16x1xf32>
    %56 = math.rsqrt %55 : vector<16x1xf32>
    %57 = vector.broadcast %56 : vector<16x1xf32> to vector<16x64xf32>
    %58 = arith.mulf %53, %57 : vector<16x64xf32>
    %c0_29 = arith.constant 0 : index
    %c0_30 = arith.constant 0 : index
    %59 = vector.load %arg9[%c0_29, %c0_30] : memref<2x64xf32, #tpu.memory_space<vmem>>, vector<1x64xf32>
    %60 = vector.broadcast %59 : vector<1x64xf32> to vector<16x64xf32>
    %61 = arith.mulf %58, %60 : vector<16x64xf32>
    %c1_31 = arith.constant 1 : index
    %c0_32 = arith.constant 0 : index
    %62 = vector.load %arg9[%c1_31, %c0_32] : memref<2x64xf32, #tpu.memory_space<vmem>>, vector<1x64xf32>
    %63 = vector.broadcast %62 : vector<1x64xf32> to vector<16x64xf32>
    %64 = arith.addf %61, %63 : vector<16x64xf32>
    %65 = arith.truncf %64 : vector<16x64xf32> to vector<16x64xbf16>
    %c0_33 = arith.constant 0 : index
    %c0_34 = arith.constant 0 : index
    %66 = vector.load %arg10[%c0_33, %c0_34] : memref<64x32xbf16, #tpu.memory_space<vmem>>, vector<64x32xbf16>
    %cst_35 = arith.constant dense<0.000000e+00> : vector<16x32xf32>
    %67 = tpu.matmul %40, %66, %cst_35 {dimension_numbers = #tpu.dot_dimension_numbers<[1], [0], [0], [1], [0, 0, 1, 1], [], []>} : vector<16x64xbf16>, vector<64x32xbf16>, vector<16x32xf32> -> vector<16x32xf32>
    %c0_36 = arith.constant 0 : index
    %c0_37 = arith.constant 0 : index
    %68 = vector.load %arg11[%c0_36, %c0_37] : memref<64x64xbf16, #tpu.memory_space<vmem>>, vector<64x64xbf16>
    %cst_38 = arith.constant dense<0.000000e+00> : vector<16x64xf32>
    %69 = tpu.matmul %65, %68, %cst_38 {dimension_numbers = #tpu.dot_dimension_numbers<[1], [0], [0], [1], [0, 0, 1, 1], [], []>} : vector<16x64xbf16>, vector<64x64xbf16>, vector<16x64xf32> -> vector<16x64xf32>
    %70 = vector.extract_strided_slice %69 {offsets = [0, 0], sizes = [16, 32], strides = [1, 1]} : vector<16x64xf32> to vector<16x32xf32>
    %71 = vector.extract_strided_slice %69 {offsets = [0, 32], sizes = [16, 32], strides = [1, 1]} : vector<16x64xf32> to vector<16x32xf32>
    %72 = arith.truncf %67 : vector<16x32xf32> to vector<16x32xbf16>
    %73 = arith.truncf %70 : vector<16x32xf32> to vector<16x32xbf16>
    %cst_39 = arith.constant dense<0.000000e+00> : vector<16x16xf32>
    %74 = tpu.matmul %72, %73, %cst_39 {dimension_numbers = #tpu.dot_dimension_numbers<[1], [1], [0], [0], [0, 0, 1, 0], [], []>} : vector<16x32xbf16>, vector<16x32xbf16>, vector<16x16xf32> -> vector<16x16xf32>
    %cst_40 = arith.constant 0.176776692 : f32
    %75 = vector.broadcast %cst_40 : f32 to vector<16x16xf32>
    %76 = arith.mulf %74, %75 : vector<16x16xf32>
    %cst_41 = arith.constant dense<0xFF800000> : vector<16xf32>
    %77 = vector.multi_reduction <maximumf>, %76, %cst_41 [1] : vector<16x16xf32> to vector<16xf32>
    %78 = vector.shape_cast %77 : vector<16xf32> to vector<16x1xf32>
    %79 = vector.broadcast %78 : vector<16x1xf32> to vector<16x16xf32>
    %80 = arith.subf %76, %79 : vector<16x16xf32>
    %81 = math.exp %80 : vector<16x16xf32>
    %cst_42 = arith.constant dense<0.000000e+00> : vector<16xf32>
    %82 = vector.multi_reduction <add>, %81, %cst_42 [1] : vector<16x16xf32> to vector<16xf32>
    %83 = vector.shape_cast %82 : vector<16xf32> to vector<16x1xf32>
    %84 = vector.broadcast %83 : vector<16x1xf32> to vector<16x16xf32>
    %85 = arith.divf %81, %84 : vector<16x16xf32>
    %86 = arith.truncf %85 : vector<16x16xf32> to vector<16x16xbf16>
    %87 = arith.truncf %71 : vector<16x32xf32> to vector<16x32xbf16>
    %cst_43 = arith.constant dense<0.000000e+00> : vector<16x32xf32>
    %88 = tpu.matmul %86, %87, %cst_43 {dimension_numbers = #tpu.dot_dimension_numbers<[1], [0], [0], [1], [0, 0, 1, 1], [], []>} : vector<16x16xbf16>, vector<16x32xbf16>, vector<16x32xf32> -> vector<16x32xf32>
    %89 = arith.truncf %88 : vector<16x32xf32> to vector<16x32xbf16>
    %c0_44 = arith.constant 0 : index
    %c0_45 = arith.constant 0 : index
    %90 = vector.load %arg12[%c0_44, %c0_45] : memref<32x64xbf16, #tpu.memory_space<vmem>>, vector<32x64xbf16>
    %cst_46 = arith.constant dense<0.000000e+00> : vector<16x64xf32>
    %91 = tpu.matmul %89, %90, %cst_46 {dimension_numbers = #tpu.dot_dimension_numbers<[1], [0], [0], [1], [0, 0, 1, 1], [], []>} : vector<16x32xbf16>, vector<32x64xbf16>, vector<16x64xf32> -> vector<16x64xf32>
    %92 = arith.addf %15, %91 : vector<16x64xf32>
    %c2 = arith.constant 2 : index
    %c0_47 = arith.constant 0 : index
    %93 = vector.load %arg8[%c2, %c0_47] : memref<3x64xf32, #tpu.memory_space<vmem>>, vector<1x64xf32>
    %94 = vector.broadcast %93 : vector<1x64xf32> to vector<16x64xf32>
    %95 = arith.addf %92, %94 : vector<16x64xf32>
    %cst_48 = arith.constant dense<0.000000e+00> : vector<16xf32>
    %96 = vector.multi_reduction <add>, %95, %cst_48 [1] : vector<16x64xf32> to vector<16xf32>
    %97 = vector.shape_cast %96 : vector<16xf32> to vector<16x1xf32>
    %cst_49 = arith.constant 6.400000e+01 : f32
    %98 = vector.broadcast %cst_49 : f32 to vector<16x1xf32>
    %99 = arith.divf %97, %98 : vector<16x1xf32>
    %100 = vector.broadcast %99 : vector<16x1xf32> to vector<16x64xf32>
    %101 = arith.subf %95, %100 : vector<16x64xf32>
    %102 = arith.mulf %101, %101 : vector<16x64xf32>
    %cst_50 = arith.constant dense<0.000000e+00> : vector<16xf32>
    %103 = vector.multi_reduction <add>, %102, %cst_50 [1] : vector<16x64xf32> to vector<16xf32>
    %104 = vector.shape_cast %103 : vector<16xf32> to vector<16x1xf32>
    %cst_51 = arith.constant 6.400000e+01 : f32
    %105 = vector.broadcast %cst_51 : f32 to vector<16x1xf32>
    %106 = arith.divf %104, %105 : vector<16x1xf32>
    %107 = vector.broadcast %99 : vector<16x1xf32> to vector<16x64xf32>
    %108 = arith.subf %95, %107 : vector<16x64xf32>
    %cst_52 = arith.constant 9.99999974E-6 : f32
    %109 = vector.broadcast %cst_52 : f32 to vector<16x1xf32>
    %110 = arith.addf %106, %109 : vector<16x1xf32>
    %111 = math.rsqrt %110 : vector<16x1xf32>
    %112 = vector.broadcast %111 : vector<16x1xf32> to vector<16x64xf32>
    %113 = arith.mulf %108, %112 : vector<16x64xf32>
    %c0_53 = arith.constant 0 : index
    %c0_54 = arith.constant 0 : index
    %114 = vector.load %arg13[%c0_53, %c0_54] : memref<3x64xf32, #tpu.memory_space<vmem>>, vector<1x64xf32>
    %115 = vector.broadcast %114 : vector<1x64xf32> to vector<16x64xf32>
    %116 = arith.mulf %113, %115 : vector<16x64xf32>
    %c1_55 = arith.constant 1 : index
    %c0_56 = arith.constant 0 : index
    %117 = vector.load %arg13[%c1_55, %c0_56] : memref<3x64xf32, #tpu.memory_space<vmem>>, vector<1x64xf32>
    %118 = vector.broadcast %117 : vector<1x64xf32> to vector<16x64xf32>
    %119 = arith.addf %116, %118 : vector<16x64xf32>
    %120 = arith.truncf %119 : vector<16x64xf32> to vector<16x64xbf16>
    %c0_57 = arith.constant 0 : index
    %c0_58 = arith.constant 0 : index
    %121 = vector.load %arg14[%c0_57, %c0_58] : memref<64x512xbf16, #tpu.memory_space<vmem>>, vector<64x512xbf16>
    %cst_59 = arith.constant dense<0.000000e+00> : vector<16x512xf32>
    %122 = tpu.matmul %120, %121, %cst_59 {dimension_numbers = #tpu.dot_dimension_numbers<[1], [0], [0], [1], [0, 0, 1, 1], [], []>} : vector<16x64xbf16>, vector<64x512xbf16>, vector<16x512xf32> -> vector<16x512xf32>
    %c0_60 = arith.constant 0 : index
    %c0_61 = arith.constant 0 : index
    %123 = vector.load %arg15[%c0_60, %c0_61] : memref<1x512xf32, #tpu.memory_space<vmem>>, vector<1x512xf32>
    %124 = vector.broadcast %123 : vector<1x512xf32> to vector<16x512xf32>
    %125 = arith.addf %122, %124 : vector<16x512xf32>
    %126 = vector.extract_strided_slice %125 {offsets = [0, 0], sizes = [16, 256], strides = [1, 1]} : vector<16x512xf32> to vector<16x256xf32>
    %127 = vector.extract_strided_slice %125 {offsets = [0, 256], sizes = [16, 256], strides = [1, 1]} : vector<16x512xf32> to vector<16x256xf32>
    %cst_62 = arith.constant 5.000000e-01 : f32
    %128 = vector.broadcast %cst_62 : f32 to vector<16x256xf32>
    %129 = arith.mulf %128, %127 : vector<16x256xf32>
    %cst_63 = arith.constant 0.707106769 : f32
    %130 = vector.broadcast %cst_63 : f32 to vector<16x256xf32>
    %131 = arith.mulf %127, %130 : vector<16x256xf32>
    %132 = math.absf %131 : vector<16x256xf32>
    %cst_64 = arith.constant 0.327591091 : f32
    %133 = vector.broadcast %cst_64 : f32 to vector<16x256xf32>
    %134 = arith.mulf %133, %132 : vector<16x256xf32>
    %cst_65 = arith.constant 1.000000e+00 : f32
    %135 = vector.broadcast %cst_65 : f32 to vector<16x256xf32>
    %136 = arith.addf %135, %134 : vector<16x256xf32>
    %cst_66 = arith.constant 1.000000e+00 : f32
    %137 = vector.broadcast %cst_66 : f32 to vector<16x256xf32>
    %138 = arith.divf %137, %136 : vector<16x256xf32>
    %cst_67 = arith.constant 1.06140542 : f32
    %139 = vector.broadcast %cst_67 : f32 to vector<16x256xf32>
    %140 = arith.mulf %139, %138 : vector<16x256xf32>
    %cst_68 = arith.constant -1.45315206 : f32
    %141 = vector.broadcast %cst_68 : f32 to vector<16x256xf32>
    %142 = arith.addf %140, %141 : vector<16x256xf32>
    %143 = arith.mulf %142, %138 : vector<16x256xf32>
    %cst_69 = arith.constant 1.42141378 : f32
    %144 = vector.broadcast %cst_69 : f32 to vector<16x256xf32>
    %145 = arith.addf %143, %144 : vector<16x256xf32>
    %146 = arith.mulf %145, %138 : vector<16x256xf32>
    %cst_70 = arith.constant -0.284496725 : f32
    %147 = vector.broadcast %cst_70 : f32 to vector<16x256xf32>
    %148 = arith.addf %146, %147 : vector<16x256xf32>
    %149 = arith.mulf %148, %138 : vector<16x256xf32>
    %cst_71 = arith.constant 0.254829586 : f32
    %150 = vector.broadcast %cst_71 : f32 to vector<16x256xf32>
    %151 = arith.addf %149, %150 : vector<16x256xf32>
    %152 = arith.mulf %151, %138 : vector<16x256xf32>
    %cst_72 = arith.constant 0.000000e+00 : f32
    %153 = vector.broadcast %cst_72 : f32 to vector<16x256xf32>
    %154 = arith.subf %153, %132 : vector<16x256xf32>
    %155 = arith.mulf %154, %132 : vector<16x256xf32>
    %156 = math.exp %155 : vector<16x256xf32>
    %157 = arith.mulf %152, %156 : vector<16x256xf32>
    %cst_73 = arith.constant 1.000000e+00 : f32
    %158 = vector.broadcast %cst_73 : f32 to vector<16x256xf32>
    %159 = arith.subf %158, %157 : vector<16x256xf32>
    %cst_74 = arith.constant 0.000000e+00 : f32
    %160 = vector.broadcast %cst_74 : f32 to vector<16x256xf32>
    %161 = arith.cmpf oge, %131, %160 : vector<16x256xf32>
    %cst_75 = arith.constant 0.000000e+00 : f32
    %162 = vector.broadcast %cst_75 : f32 to vector<16x256xf32>
    %163 = arith.subf %162, %159 : vector<16x256xf32>
    %164 = arith.select %161, %159, %163 : vector<16x256xi1>, vector<16x256xf32>
    %cst_76 = arith.constant 1.000000e+00 : f32
    %165 = vector.broadcast %cst_76 : f32 to vector<16x256xf32>
    %166 = arith.addf %165, %164 : vector<16x256xf32>
    %167 = arith.mulf %129, %166 : vector<16x256xf32>
    %168 = arith.mulf %126, %167 : vector<16x256xf32>
    %169 = arith.truncf %168 : vector<16x256xf32> to vector<16x256xbf16>
    %c0_77 = arith.constant 0 : index
    %c0_78 = arith.constant 0 : index
    %170 = vector.load %arg16[%c0_77, %c0_78] : memref<256x64xbf16, #tpu.memory_space<vmem>>, vector<256x64xbf16>
    %cst_79 = arith.constant dense<0.000000e+00> : vector<16x64xf32>
    %171 = tpu.matmul %169, %170, %cst_79 {dimension_numbers = #tpu.dot_dimension_numbers<[1], [0], [0], [1], [0, 0, 1, 1], [], []>} : vector<16x256xbf16>, vector<256x64xbf16>, vector<16x64xf32> -> vector<16x64xf32>
    %c2_80 = arith.constant 2 : index
    %c0_81 = arith.constant 0 : index
    %172 = vector.load %arg13[%c2_80, %c0_81] : memref<3x64xf32, #tpu.memory_space<vmem>>, vector<1x64xf32>
    %173 = vector.broadcast %172 : vector<1x64xf32> to vector<16x64xf32>
    %174 = arith.addf %171, %173 : vector<16x64xf32>
    %175 = arith.addf %95, %174 : vector<16x64xf32>
    %cst_82 = arith.constant dense<0.000000e+00> : vector<16xf32>
    %176 = vector.multi_reduction <add>, %175, %cst_82 [1] : vector<16x64xf32> to vector<16xf32>
    %177 = vector.shape_cast %176 : vector<16xf32> to vector<16x1xf32>
    %cst_83 = arith.constant 6.400000e+01 : f32
    %178 = vector.broadcast %cst_83 : f32 to vector<16x1xf32>
    %179 = arith.divf %177, %178 : vector<16x1xf32>
    %180 = vector.broadcast %179 : vector<16x1xf32> to vector<16x64xf32>
    %181 = arith.subf %175, %180 : vector<16x64xf32>
    %182 = arith.mulf %181, %181 : vector<16x64xf32>
    %cst_84 = arith.constant dense<0.000000e+00> : vector<16xf32>
    %183 = vector.multi_reduction <add>, %182, %cst_84 [1] : vector<16x64xf32> to vector<16xf32>
    %184 = vector.shape_cast %183 : vector<16xf32> to vector<16x1xf32>
    %cst_85 = arith.constant 6.400000e+01 : f32
    %185 = vector.broadcast %cst_85 : f32 to vector<16x1xf32>
    %186 = arith.divf %184, %185 : vector<16x1xf32>
    %187 = vector.broadcast %179 : vector<16x1xf32> to vector<16x64xf32>
    %188 = arith.subf %175, %187 : vector<16x64xf32>
    %cst_86 = arith.constant 9.99999974E-6 : f32
    %189 = vector.broadcast %cst_86 : f32 to vector<16x1xf32>
    %190 = arith.addf %186, %189 : vector<16x1xf32>
    %191 = math.rsqrt %190 : vector<16x1xf32>
    %192 = vector.broadcast %191 : vector<16x1xf32> to vector<16x64xf32>
    %193 = arith.mulf %188, %192 : vector<16x64xf32>
    %c0_87 = arith.constant 0 : index
    %c0_88 = arith.constant 0 : index
    %194 = vector.load %arg17[%c0_87, %c0_88] : memref<3x64xf32, #tpu.memory_space<vmem>>, vector<1x64xf32>
    %195 = vector.broadcast %194 : vector<1x64xf32> to vector<16x64xf32>
    %196 = arith.mulf %193, %195 : vector<16x64xf32>
    %c1_89 = arith.constant 1 : index
    %c0_90 = arith.constant 0 : index
    %197 = vector.load %arg17[%c1_89, %c0_90] : memref<3x64xf32, #tpu.memory_space<vmem>>, vector<1x64xf32>
    %198 = vector.broadcast %197 : vector<1x64xf32> to vector<16x64xf32>
    %199 = arith.addf %196, %198 : vector<16x64xf32>
    %200 = arith.truncf %199 : vector<16x64xf32> to vector<16x64xbf16>
    %c0_91 = arith.constant 0 : index
    %c0_92 = arith.constant 0 : index
    %201 = vector.load %arg18[%c0_91, %c0_92] : memref<64x192xbf16, #tpu.memory_space<vmem>>, vector<64x192xbf16>
    %cst_93 = arith.constant dense<0.000000e+00> : vector<16x192xf32>
    %202 = tpu.matmul %200, %201, %cst_93 {dimension_numbers = #tpu.dot_dimension_numbers<[1], [0], [0], [1], [0, 0, 1, 1], [], []>} : vector<16x64xbf16>, vector<64x192xbf16>, vector<16x192xf32> -> vector<16x192xf32>
    %203 = vector.extract_strided_slice %202 {offsets = [0, 0], sizes = [16, 64], strides = [1, 1]} : vector<16x192xf32> to vector<16x64xf32>
    %204 = vector.extract_strided_slice %202 {offsets = [0, 64], sizes = [16, 64], strides = [1, 1]} : vector<16x192xf32> to vector<16x64xf32>
    %205 = vector.extract_strided_slice %202 {offsets = [0, 128], sizes = [16, 64], strides = [1, 1]} : vector<16x192xf32> to vector<16x64xf32>
    %206 = vector.extract_strided_slice %203 {offsets = [0, 0], sizes = [16, 16], strides = [1, 1]} : vector<16x64xf32> to vector<16x16xf32>
    %207 = vector.extract_strided_slice %204 {offsets = [0, 0], sizes = [16, 16], strides = [1, 1]} : vector<16x64xf32> to vector<16x16xf32>
    %208 = vector.extract_strided_slice %205 {offsets = [0, 0], sizes = [16, 16], strides = [1, 1]} : vector<16x64xf32> to vector<16x16xf32>
    %209 = arith.truncf %206 : vector<16x16xf32> to vector<16x16xbf16>
    %210 = arith.truncf %207 : vector<16x16xf32> to vector<16x16xbf16>
    %cst_94 = arith.constant dense<0.000000e+00> : vector<16x16xf32>
    %211 = tpu.matmul %209, %210, %cst_94 {dimension_numbers = #tpu.dot_dimension_numbers<[1], [1], [0], [0], [0, 0, 1, 0], [], []>} : vector<16x16xbf16>, vector<16x16xbf16>, vector<16x16xf32> -> vector<16x16xf32>
    %cst_95 = arith.constant 2.500000e-01 : f32
    %212 = vector.broadcast %cst_95 : f32 to vector<16x16xf32>
    %213 = arith.mulf %211, %212 : vector<16x16xf32>
    %cst_96 = arith.constant dense<0xFF800000> : vector<16xf32>
    %214 = vector.multi_reduction <maximumf>, %213, %cst_96 [1] : vector<16x16xf32> to vector<16xf32>
    %215 = vector.shape_cast %214 : vector<16xf32> to vector<16x1xf32>
    %216 = vector.broadcast %215 : vector<16x1xf32> to vector<16x16xf32>
    %217 = arith.subf %213, %216 : vector<16x16xf32>
    %218 = math.exp %217 : vector<16x16xf32>
    %cst_97 = arith.constant dense<0.000000e+00> : vector<16xf32>
    %219 = vector.multi_reduction <add>, %218, %cst_97 [1] : vector<16x16xf32> to vector<16xf32>
    %220 = vector.shape_cast %219 : vector<16xf32> to vector<16x1xf32>
    %221 = vector.broadcast %220 : vector<16x1xf32> to vector<16x16xf32>
    %222 = arith.divf %218, %221 : vector<16x16xf32>
    %223 = arith.truncf %222 : vector<16x16xf32> to vector<16x16xbf16>
    %224 = arith.truncf %208 : vector<16x16xf32> to vector<16x16xbf16>
    %cst_98 = arith.constant dense<0.000000e+00> : vector<16x16xf32>
    %225 = tpu.matmul %223, %224, %cst_98 {dimension_numbers = #tpu.dot_dimension_numbers<[1], [0], [0], [1], [0, 0, 1, 1], [], []>} : vector<16x16xbf16>, vector<16x16xbf16>, vector<16x16xf32> -> vector<16x16xf32>
    %226 = arith.truncf %225 : vector<16x16xf32> to vector<16x16xbf16>
    %c0_99 = arith.constant 0 : index
    %c0_100 = arith.constant 0 : index
    %227 = vector.load %arg19[%c0_99, %c0_100] : memref<64x64xbf16, #tpu.memory_space<vmem>>, vector<16x64xbf16>
    %cst_101 = arith.constant dense<0.000000e+00> : vector<16x64xf32>
    %228 = tpu.matmul %226, %227, %cst_101 {dimension_numbers = #tpu.dot_dimension_numbers<[1], [0], [0], [1], [0, 0, 1, 1], [], []>} : vector<16x16xbf16>, vector<16x64xbf16>, vector<16x64xf32> -> vector<16x64xf32>
    %229 = vector.extract_strided_slice %203 {offsets = [0, 16], sizes = [16, 16], strides = [1, 1]} : vector<16x64xf32> to vector<16x16xf32>
    %230 = vector.extract_strided_slice %204 {offsets = [0, 16], sizes = [16, 16], strides = [1, 1]} : vector<16x64xf32> to vector<16x16xf32>
    %231 = vector.extract_strided_slice %205 {offsets = [0, 16], sizes = [16, 16], strides = [1, 1]} : vector<16x64xf32> to vector<16x16xf32>
    %232 = arith.truncf %229 : vector<16x16xf32> to vector<16x16xbf16>
    %233 = arith.truncf %230 : vector<16x16xf32> to vector<16x16xbf16>
    %cst_102 = arith.constant dense<0.000000e+00> : vector<16x16xf32>
    %234 = tpu.matmul %232, %233, %cst_102 {dimension_numbers = #tpu.dot_dimension_numbers<[1], [1], [0], [0], [0, 0, 1, 0], [], []>} : vector<16x16xbf16>, vector<16x16xbf16>, vector<16x16xf32> -> vector<16x16xf32>
    %cst_103 = arith.constant 2.500000e-01 : f32
    %235 = vector.broadcast %cst_103 : f32 to vector<16x16xf32>
    %236 = arith.mulf %234, %235 : vector<16x16xf32>
    %cst_104 = arith.constant dense<0xFF800000> : vector<16xf32>
    %237 = vector.multi_reduction <maximumf>, %236, %cst_104 [1] : vector<16x16xf32> to vector<16xf32>
    %238 = vector.shape_cast %237 : vector<16xf32> to vector<16x1xf32>
    %239 = vector.broadcast %238 : vector<16x1xf32> to vector<16x16xf32>
    %240 = arith.subf %236, %239 : vector<16x16xf32>
    %241 = math.exp %240 : vector<16x16xf32>
    %cst_105 = arith.constant dense<0.000000e+00> : vector<16xf32>
    %242 = vector.multi_reduction <add>, %241, %cst_105 [1] : vector<16x16xf32> to vector<16xf32>
    %243 = vector.shape_cast %242 : vector<16xf32> to vector<16x1xf32>
    %244 = vector.broadcast %243 : vector<16x1xf32> to vector<16x16xf32>
    %245 = arith.divf %241, %244 : vector<16x16xf32>
    %246 = arith.truncf %245 : vector<16x16xf32> to vector<16x16xbf16>
    %247 = arith.truncf %231 : vector<16x16xf32> to vector<16x16xbf16>
    %cst_106 = arith.constant dense<0.000000e+00> : vector<16x16xf32>
    %248 = tpu.matmul %246, %247, %cst_106 {dimension_numbers = #tpu.dot_dimension_numbers<[1], [0], [0], [1], [0, 0, 1, 1], [], []>} : vector<16x16xbf16>, vector<16x16xbf16>, vector<16x16xf32> -> vector<16x16xf32>
    %249 = arith.truncf %248 : vector<16x16xf32> to vector<16x16xbf16>
    %c16 = arith.constant 16 : index
    %c0_107 = arith.constant 0 : index
    %250 = vector.load %arg19[%c16, %c0_107] : memref<64x64xbf16, #tpu.memory_space<vmem>>, vector<16x64xbf16>
    %cst_108 = arith.constant dense<0.000000e+00> : vector<16x64xf32>
    %251 = tpu.matmul %249, %250, %cst_108 {dimension_numbers = #tpu.dot_dimension_numbers<[1], [0], [0], [1], [0, 0, 1, 1], [], []>} : vector<16x16xbf16>, vector<16x64xbf16>, vector<16x64xf32> -> vector<16x64xf32>
    %252 = arith.addf %228, %251 : vector<16x64xf32>
    %253 = vector.extract_strided_slice %203 {offsets = [0, 32], sizes = [16, 16], strides = [1, 1]} : vector<16x64xf32> to vector<16x16xf32>
    %254 = vector.extract_strided_slice %204 {offsets = [0, 32], sizes = [16, 16], strides = [1, 1]} : vector<16x64xf32> to vector<16x16xf32>
    %255 = vector.extract_strided_slice %205 {offsets = [0, 32], sizes = [16, 16], strides = [1, 1]} : vector<16x64xf32> to vector<16x16xf32>
    %256 = arith.truncf %253 : vector<16x16xf32> to vector<16x16xbf16>
    %257 = arith.truncf %254 : vector<16x16xf32> to vector<16x16xbf16>
    %cst_109 = arith.constant dense<0.000000e+00> : vector<16x16xf32>
    %258 = tpu.matmul %256, %257, %cst_109 {dimension_numbers = #tpu.dot_dimension_numbers<[1], [1], [0], [0], [0, 0, 1, 0], [], []>} : vector<16x16xbf16>, vector<16x16xbf16>, vector<16x16xf32> -> vector<16x16xf32>
    %cst_110 = arith.constant 2.500000e-01 : f32
    %259 = vector.broadcast %cst_110 : f32 to vector<16x16xf32>
    %260 = arith.mulf %258, %259 : vector<16x16xf32>
    %cst_111 = arith.constant dense<0xFF800000> : vector<16xf32>
    %261 = vector.multi_reduction <maximumf>, %260, %cst_111 [1] : vector<16x16xf32> to vector<16xf32>
    %262 = vector.shape_cast %261 : vector<16xf32> to vector<16x1xf32>
    %263 = vector.broadcast %262 : vector<16x1xf32> to vector<16x16xf32>
    %264 = arith.subf %260, %263 : vector<16x16xf32>
    %265 = math.exp %264 : vector<16x16xf32>
    %cst_112 = arith.constant dense<0.000000e+00> : vector<16xf32>
    %266 = vector.multi_reduction <add>, %265, %cst_112 [1] : vector<16x16xf32> to vector<16xf32>
    %267 = vector.shape_cast %266 : vector<16xf32> to vector<16x1xf32>
    %268 = vector.broadcast %267 : vector<16x1xf32> to vector<16x16xf32>
    %269 = arith.divf %265, %268 : vector<16x16xf32>
    %270 = arith.truncf %269 : vector<16x16xf32> to vector<16x16xbf16>
    %271 = arith.truncf %255 : vector<16x16xf32> to vector<16x16xbf16>
    %cst_113 = arith.constant dense<0.000000e+00> : vector<16x16xf32>
    %272 = tpu.matmul %270, %271, %cst_113 {dimension_numbers = #tpu.dot_dimension_numbers<[1], [0], [0], [1], [0, 0, 1, 1], [], []>} : vector<16x16xbf16>, vector<16x16xbf16>, vector<16x16xf32> -> vector<16x16xf32>
    %273 = arith.truncf %272 : vector<16x16xf32> to vector<16x16xbf16>
    %c32 = arith.constant 32 : index
    %c0_114 = arith.constant 0 : index
    %274 = vector.load %arg19[%c32, %c0_114] : memref<64x64xbf16, #tpu.memory_space<vmem>>, vector<16x64xbf16>
    %cst_115 = arith.constant dense<0.000000e+00> : vector<16x64xf32>
    %275 = tpu.matmul %273, %274, %cst_115 {dimension_numbers = #tpu.dot_dimension_numbers<[1], [0], [0], [1], [0, 0, 1, 1], [], []>} : vector<16x16xbf16>, vector<16x64xbf16>, vector<16x64xf32> -> vector<16x64xf32>
    %276 = arith.addf %252, %275 : vector<16x64xf32>
    %277 = vector.extract_strided_slice %203 {offsets = [0, 48], sizes = [16, 16], strides = [1, 1]} : vector<16x64xf32> to vector<16x16xf32>
    %278 = vector.extract_strided_slice %204 {offsets = [0, 48], sizes = [16, 16], strides = [1, 1]} : vector<16x64xf32> to vector<16x16xf32>
    %279 = vector.extract_strided_slice %205 {offsets = [0, 48], sizes = [16, 16], strides = [1, 1]} : vector<16x64xf32> to vector<16x16xf32>
    %280 = arith.truncf %277 : vector<16x16xf32> to vector<16x16xbf16>
    %281 = arith.truncf %278 : vector<16x16xf32> to vector<16x16xbf16>
    %cst_116 = arith.constant dense<0.000000e+00> : vector<16x16xf32>
    %282 = tpu.matmul %280, %281, %cst_116 {dimension_numbers = #tpu.dot_dimension_numbers<[1], [1], [0], [0], [0, 0, 1, 0], [], []>} : vector<16x16xbf16>, vector<16x16xbf16>, vector<16x16xf32> -> vector<16x16xf32>
    %cst_117 = arith.constant 2.500000e-01 : f32
    %283 = vector.broadcast %cst_117 : f32 to vector<16x16xf32>
    %284 = arith.mulf %282, %283 : vector<16x16xf32>
    %cst_118 = arith.constant dense<0xFF800000> : vector<16xf32>
    %285 = vector.multi_reduction <maximumf>, %284, %cst_118 [1] : vector<16x16xf32> to vector<16xf32>
    %286 = vector.shape_cast %285 : vector<16xf32> to vector<16x1xf32>
    %287 = vector.broadcast %286 : vector<16x1xf32> to vector<16x16xf32>
    %288 = arith.subf %284, %287 : vector<16x16xf32>
    %289 = math.exp %288 : vector<16x16xf32>
    %cst_119 = arith.constant dense<0.000000e+00> : vector<16xf32>
    %290 = vector.multi_reduction <add>, %289, %cst_119 [1] : vector<16x16xf32> to vector<16xf32>
    %291 = vector.shape_cast %290 : vector<16xf32> to vector<16x1xf32>
    %292 = vector.broadcast %291 : vector<16x1xf32> to vector<16x16xf32>
    %293 = arith.divf %289, %292 : vector<16x16xf32>
    %294 = arith.truncf %293 : vector<16x16xf32> to vector<16x16xbf16>
    %295 = arith.truncf %279 : vector<16x16xf32> to vector<16x16xbf16>
    %cst_120 = arith.constant dense<0.000000e+00> : vector<16x16xf32>
    %296 = tpu.matmul %294, %295, %cst_120 {dimension_numbers = #tpu.dot_dimension_numbers<[1], [0], [0], [1], [0, 0, 1, 1], [], []>} : vector<16x16xbf16>, vector<16x16xbf16>, vector<16x16xf32> -> vector<16x16xf32>
    %297 = arith.truncf %296 : vector<16x16xf32> to vector<16x16xbf16>
    %c48 = arith.constant 48 : index
    %c0_121 = arith.constant 0 : index
    %298 = vector.load %arg19[%c48, %c0_121] : memref<64x64xbf16, #tpu.memory_space<vmem>>, vector<16x64xbf16>
    %cst_122 = arith.constant dense<0.000000e+00> : vector<16x64xf32>
    %299 = tpu.matmul %297, %298, %cst_122 {dimension_numbers = #tpu.dot_dimension_numbers<[1], [0], [0], [1], [0, 0, 1, 1], [], []>} : vector<16x16xbf16>, vector<16x64xbf16>, vector<16x64xf32> -> vector<16x64xf32>
    %300 = arith.addf %276, %299 : vector<16x64xf32>
    %301 = arith.addf %175, %300 : vector<16x64xf32>
    %c2_123 = arith.constant 2 : index
    %c0_124 = arith.constant 0 : index
    %302 = vector.load %arg17[%c2_123, %c0_124] : memref<3x64xf32, #tpu.memory_space<vmem>>, vector<1x64xf32>
    %303 = vector.broadcast %302 : vector<1x64xf32> to vector<16x64xf32>
    %304 = arith.addf %301, %303 : vector<16x64xf32>
    %cst_125 = arith.constant dense<0.000000e+00> : vector<16xf32>
    %305 = vector.multi_reduction <add>, %304, %cst_125 [1] : vector<16x64xf32> to vector<16xf32>
    %306 = vector.shape_cast %305 : vector<16xf32> to vector<16x1xf32>
    %cst_126 = arith.constant 6.400000e+01 : f32
    %307 = vector.broadcast %cst_126 : f32 to vector<16x1xf32>
    %308 = arith.divf %306, %307 : vector<16x1xf32>
    %309 = vector.broadcast %308 : vector<16x1xf32> to vector<16x64xf32>
    %310 = arith.subf %304, %309 : vector<16x64xf32>
    %311 = arith.mulf %310, %310 : vector<16x64xf32>
    %cst_127 = arith.constant dense<0.000000e+00> : vector<16xf32>
    %312 = vector.multi_reduction <add>, %311, %cst_127 [1] : vector<16x64xf32> to vector<16xf32>
    %313 = vector.shape_cast %312 : vector<16xf32> to vector<16x1xf32>
    %cst_128 = arith.constant 6.400000e+01 : f32
    %314 = vector.broadcast %cst_128 : f32 to vector<16x1xf32>
    %315 = arith.divf %313, %314 : vector<16x1xf32>
    %316 = vector.broadcast %308 : vector<16x1xf32> to vector<16x64xf32>
    %317 = arith.subf %304, %316 : vector<16x64xf32>
    %cst_129 = arith.constant 9.99999974E-6 : f32
    %318 = vector.broadcast %cst_129 : f32 to vector<16x1xf32>
    %319 = arith.addf %315, %318 : vector<16x1xf32>
    %320 = math.rsqrt %319 : vector<16x1xf32>
    %321 = vector.broadcast %320 : vector<16x1xf32> to vector<16x64xf32>
    %322 = arith.mulf %317, %321 : vector<16x64xf32>
    %c0_130 = arith.constant 0 : index
    %c0_131 = arith.constant 0 : index
    %323 = vector.load %arg20[%c0_130, %c0_131] : memref<3x64xf32, #tpu.memory_space<vmem>>, vector<1x64xf32>
    %324 = vector.broadcast %323 : vector<1x64xf32> to vector<16x64xf32>
    %325 = arith.mulf %322, %324 : vector<16x64xf32>
    %c1_132 = arith.constant 1 : index
    %c0_133 = arith.constant 0 : index
    %326 = vector.load %arg20[%c1_132, %c0_133] : memref<3x64xf32, #tpu.memory_space<vmem>>, vector<1x64xf32>
    %327 = vector.broadcast %326 : vector<1x64xf32> to vector<16x64xf32>
    %328 = arith.addf %325, %327 : vector<16x64xf32>
    %329 = arith.truncf %328 : vector<16x64xf32> to vector<16x64xbf16>
    %c0_134 = arith.constant 0 : index
    %c0_135 = arith.constant 0 : index
    %330 = vector.load %arg21[%c0_134, %c0_135] : memref<64x512xbf16, #tpu.memory_space<vmem>>, vector<64x512xbf16>
    %cst_136 = arith.constant dense<0.000000e+00> : vector<16x512xf32>
    %331 = tpu.matmul %329, %330, %cst_136 {dimension_numbers = #tpu.dot_dimension_numbers<[1], [0], [0], [1], [0, 0, 1, 1], [], []>} : vector<16x64xbf16>, vector<64x512xbf16>, vector<16x512xf32> -> vector<16x512xf32>
    %c0_137 = arith.constant 0 : index
    %c0_138 = arith.constant 0 : index
    %332 = vector.load %arg22[%c0_137, %c0_138] : memref<1x512xf32, #tpu.memory_space<vmem>>, vector<1x512xf32>
    %333 = vector.broadcast %332 : vector<1x512xf32> to vector<16x512xf32>
    %334 = arith.addf %331, %333 : vector<16x512xf32>
    %335 = vector.extract_strided_slice %334 {offsets = [0, 0], sizes = [16, 256], strides = [1, 1]} : vector<16x512xf32> to vector<16x256xf32>
    %336 = vector.extract_strided_slice %334 {offsets = [0, 256], sizes = [16, 256], strides = [1, 1]} : vector<16x512xf32> to vector<16x256xf32>
    %cst_139 = arith.constant 5.000000e-01 : f32
    %337 = vector.broadcast %cst_139 : f32 to vector<16x256xf32>
    %338 = arith.mulf %337, %336 : vector<16x256xf32>
    %cst_140 = arith.constant 0.707106769 : f32
    %339 = vector.broadcast %cst_140 : f32 to vector<16x256xf32>
    %340 = arith.mulf %336, %339 : vector<16x256xf32>
    %341 = math.absf %340 : vector<16x256xf32>
    %cst_141 = arith.constant 0.327591091 : f32
    %342 = vector.broadcast %cst_141 : f32 to vector<16x256xf32>
    %343 = arith.mulf %342, %341 : vector<16x256xf32>
    %cst_142 = arith.constant 1.000000e+00 : f32
    %344 = vector.broadcast %cst_142 : f32 to vector<16x256xf32>
    %345 = arith.addf %344, %343 : vector<16x256xf32>
    %cst_143 = arith.constant 1.000000e+00 : f32
    %346 = vector.broadcast %cst_143 : f32 to vector<16x256xf32>
    %347 = arith.divf %346, %345 : vector<16x256xf32>
    %cst_144 = arith.constant 1.06140542 : f32
    %348 = vector.broadcast %cst_144 : f32 to vector<16x256xf32>
    %349 = arith.mulf %348, %347 : vector<16x256xf32>
    %cst_145 = arith.constant -1.45315206 : f32
    %350 = vector.broadcast %cst_145 : f32 to vector<16x256xf32>
    %351 = arith.addf %349, %350 : vector<16x256xf32>
    %352 = arith.mulf %351, %347 : vector<16x256xf32>
    %cst_146 = arith.constant 1.42141378 : f32
    %353 = vector.broadcast %cst_146 : f32 to vector<16x256xf32>
    %354 = arith.addf %352, %353 : vector<16x256xf32>
    %355 = arith.mulf %354, %347 : vector<16x256xf32>
    %cst_147 = arith.constant -0.284496725 : f32
    %356 = vector.broadcast %cst_147 : f32 to vector<16x256xf32>
    %357 = arith.addf %355, %356 : vector<16x256xf32>
    %358 = arith.mulf %357, %347 : vector<16x256xf32>
    %cst_148 = arith.constant 0.254829586 : f32
    %359 = vector.broadcast %cst_148 : f32 to vector<16x256xf32>
    %360 = arith.addf %358, %359 : vector<16x256xf32>
    %361 = arith.mulf %360, %347 : vector<16x256xf32>
    %cst_149 = arith.constant 0.000000e+00 : f32
    %362 = vector.broadcast %cst_149 : f32 to vector<16x256xf32>
    %363 = arith.subf %362, %341 : vector<16x256xf32>
    %364 = arith.mulf %363, %341 : vector<16x256xf32>
    %365 = math.exp %364 : vector<16x256xf32>
    %366 = arith.mulf %361, %365 : vector<16x256xf32>
    %cst_150 = arith.constant 1.000000e+00 : f32
    %367 = vector.broadcast %cst_150 : f32 to vector<16x256xf32>
    %368 = arith.subf %367, %366 : vector<16x256xf32>
    %cst_151 = arith.constant 0.000000e+00 : f32
    %369 = vector.broadcast %cst_151 : f32 to vector<16x256xf32>
    %370 = arith.cmpf oge, %340, %369 : vector<16x256xf32>
    %cst_152 = arith.constant 0.000000e+00 : f32
    %371 = vector.broadcast %cst_152 : f32 to vector<16x256xf32>
    %372 = arith.subf %371, %368 : vector<16x256xf32>
    %373 = arith.select %370, %368, %372 : vector<16x256xi1>, vector<16x256xf32>
    %cst_153 = arith.constant 1.000000e+00 : f32
    %374 = vector.broadcast %cst_153 : f32 to vector<16x256xf32>
    %375 = arith.addf %374, %373 : vector<16x256xf32>
    %376 = arith.mulf %338, %375 : vector<16x256xf32>
    %377 = arith.mulf %335, %376 : vector<16x256xf32>
    %378 = arith.truncf %377 : vector<16x256xf32> to vector<16x256xbf16>
    %c0_154 = arith.constant 0 : index
    %c0_155 = arith.constant 0 : index
    %379 = vector.load %arg23[%c0_154, %c0_155] : memref<256x64xbf16, #tpu.memory_space<vmem>>, vector<256x64xbf16>
    %cst_156 = arith.constant dense<0.000000e+00> : vector<16x64xf32>
    %380 = tpu.matmul %378, %379, %cst_156 {dimension_numbers = #tpu.dot_dimension_numbers<[1], [0], [0], [1], [0, 0, 1, 1], [], []>} : vector<16x256xbf16>, vector<256x64xbf16>, vector<16x64xf32> -> vector<16x64xf32>
    %c2_157 = arith.constant 2 : index
    %c0_158 = arith.constant 0 : index
    %381 = vector.load %arg20[%c2_157, %c0_158] : memref<3x64xf32, #tpu.memory_space<vmem>>, vector<1x64xf32>
    %382 = vector.broadcast %381 : vector<1x64xf32> to vector<16x64xf32>
    %383 = arith.addf %380, %382 : vector<16x64xf32>
    %384 = arith.addf %304, %383 : vector<16x64xf32>
    %cst_159 = arith.constant dense<0.000000e+00> : vector<16xf32>
    %385 = vector.multi_reduction <add>, %384, %cst_159 [1] : vector<16x64xf32> to vector<16xf32>
    %386 = vector.shape_cast %385 : vector<16xf32> to vector<16x1xf32>
    %cst_160 = arith.constant 6.400000e+01 : f32
    %387 = vector.broadcast %cst_160 : f32 to vector<16x1xf32>
    %388 = arith.divf %386, %387 : vector<16x1xf32>
    %389 = vector.broadcast %388 : vector<16x1xf32> to vector<16x64xf32>
    %390 = arith.subf %384, %389 : vector<16x64xf32>
    %391 = arith.mulf %390, %390 : vector<16x64xf32>
    %cst_161 = arith.constant dense<0.000000e+00> : vector<16xf32>
    %392 = vector.multi_reduction <add>, %391, %cst_161 [1] : vector<16x64xf32> to vector<16xf32>
    %393 = vector.shape_cast %392 : vector<16xf32> to vector<16x1xf32>
    %cst_162 = arith.constant 6.400000e+01 : f32
    %394 = vector.broadcast %cst_162 : f32 to vector<16x1xf32>
    %395 = arith.divf %393, %394 : vector<16x1xf32>
    %396 = vector.broadcast %388 : vector<16x1xf32> to vector<16x64xf32>
    %397 = arith.subf %384, %396 : vector<16x64xf32>
    %cst_163 = arith.constant 9.99999974E-6 : f32
    %398 = vector.broadcast %cst_163 : f32 to vector<16x1xf32>
    %399 = arith.addf %395, %398 : vector<16x1xf32>
    %400 = math.rsqrt %399 : vector<16x1xf32>
    %401 = vector.broadcast %400 : vector<16x1xf32> to vector<16x64xf32>
    %402 = arith.mulf %397, %401 : vector<16x64xf32>
    %c0_164 = arith.constant 0 : index
    %c0_165 = arith.constant 0 : index
    %403 = vector.load %arg24[%c0_164, %c0_165] : memref<3x64xf32, #tpu.memory_space<vmem>>, vector<1x64xf32>
    %404 = vector.broadcast %403 : vector<1x64xf32> to vector<16x64xf32>
    %405 = arith.mulf %402, %404 : vector<16x64xf32>
    %c1_166 = arith.constant 1 : index
    %c0_167 = arith.constant 0 : index
    %406 = vector.load %arg24[%c1_166, %c0_167] : memref<3x64xf32, #tpu.memory_space<vmem>>, vector<1x64xf32>
    %407 = vector.broadcast %406 : vector<1x64xf32> to vector<16x64xf32>
    %408 = arith.addf %405, %407 : vector<16x64xf32>
    %409 = arith.truncf %408 : vector<16x64xf32> to vector<16x64xbf16>
    %c0_168 = arith.constant 0 : index
    %c0_169 = arith.constant 0 : index
    %410 = vector.load %arg25[%c0_168, %c0_169] : memref<64x192xbf16, #tpu.memory_space<vmem>>, vector<64x192xbf16>
    %cst_170 = arith.constant dense<0.000000e+00> : vector<16x192xf32>
    %411 = tpu.matmul %409, %410, %cst_170 {dimension_numbers = #tpu.dot_dimension_numbers<[1], [0], [0], [1], [0, 0, 1, 1], [], []>} : vector<16x64xbf16>, vector<64x192xbf16>, vector<16x192xf32> -> vector<16x192xf32>
    %412 = vector.extract_strided_slice %411 {offsets = [0, 0], sizes = [16, 64], strides = [1, 1]} : vector<16x192xf32> to vector<16x64xf32>
    %413 = vector.extract_strided_slice %411 {offsets = [0, 64], sizes = [16, 64], strides = [1, 1]} : vector<16x192xf32> to vector<16x64xf32>
    %414 = vector.extract_strided_slice %411 {offsets = [0, 128], sizes = [16, 64], strides = [1, 1]} : vector<16x192xf32> to vector<16x64xf32>
    %415 = vector.extract_strided_slice %412 {offsets = [0, 0], sizes = [16, 16], strides = [1, 1]} : vector<16x64xf32> to vector<16x16xf32>
    %416 = vector.extract_strided_slice %413 {offsets = [0, 0], sizes = [16, 16], strides = [1, 1]} : vector<16x64xf32> to vector<16x16xf32>
    %417 = vector.extract_strided_slice %414 {offsets = [0, 0], sizes = [16, 16], strides = [1, 1]} : vector<16x64xf32> to vector<16x16xf32>
    %418 = arith.truncf %415 : vector<16x16xf32> to vector<16x16xbf16>
    %419 = arith.truncf %416 : vector<16x16xf32> to vector<16x16xbf16>
    %cst_171 = arith.constant dense<0.000000e+00> : vector<16x16xf32>
    %420 = tpu.matmul %418, %419, %cst_171 {dimension_numbers = #tpu.dot_dimension_numbers<[1], [1], [0], [0], [0, 0, 1, 0], [], []>} : vector<16x16xbf16>, vector<16x16xbf16>, vector<16x16xf32> -> vector<16x16xf32>
    %cst_172 = arith.constant 2.500000e-01 : f32
    %421 = vector.broadcast %cst_172 : f32 to vector<16x16xf32>
    %422 = arith.mulf %420, %421 : vector<16x16xf32>
    %cst_173 = arith.constant dense<0xFF800000> : vector<16xf32>
    %423 = vector.multi_reduction <maximumf>, %422, %cst_173 [1] : vector<16x16xf32> to vector<16xf32>
    %424 = vector.shape_cast %423 : vector<16xf32> to vector<16x1xf32>
    %425 = vector.broadcast %424 : vector<16x1xf32> to vector<16x16xf32>
    %426 = arith.subf %422, %425 : vector<16x16xf32>
    %427 = math.exp %426 : vector<16x16xf32>
    %cst_174 = arith.constant dense<0.000000e+00> : vector<16xf32>
    %428 = vector.multi_reduction <add>, %427, %cst_174 [1] : vector<16x16xf32> to vector<16xf32>
    %429 = vector.shape_cast %428 : vector<16xf32> to vector<16x1xf32>
    %430 = vector.broadcast %429 : vector<16x1xf32> to vector<16x16xf32>
    %431 = arith.divf %427, %430 : vector<16x16xf32>
    %432 = arith.truncf %431 : vector<16x16xf32> to vector<16x16xbf16>
    %433 = arith.truncf %417 : vector<16x16xf32> to vector<16x16xbf16>
    %cst_175 = arith.constant dense<0.000000e+00> : vector<16x16xf32>
    %434 = tpu.matmul %432, %433, %cst_175 {dimension_numbers = #tpu.dot_dimension_numbers<[1], [0], [0], [1], [0, 0, 1, 1], [], []>} : vector<16x16xbf16>, vector<16x16xbf16>, vector<16x16xf32> -> vector<16x16xf32>
    %435 = arith.truncf %434 : vector<16x16xf32> to vector<16x16xbf16>
    %c0_176 = arith.constant 0 : index
    %c0_177 = arith.constant 0 : index
    %436 = vector.load %arg26[%c0_176, %c0_177] : memref<64x64xbf16, #tpu.memory_space<vmem>>, vector<16x64xbf16>
    %cst_178 = arith.constant dense<0.000000e+00> : vector<16x64xf32>
    %437 = tpu.matmul %435, %436, %cst_178 {dimension_numbers = #tpu.dot_dimension_numbers<[1], [0], [0], [1], [0, 0, 1, 1], [], []>} : vector<16x16xbf16>, vector<16x64xbf16>, vector<16x64xf32> -> vector<16x64xf32>
    %438 = vector.extract_strided_slice %412 {offsets = [0, 16], sizes = [16, 16], strides = [1, 1]} : vector<16x64xf32> to vector<16x16xf32>
    %439 = vector.extract_strided_slice %413 {offsets = [0, 16], sizes = [16, 16], strides = [1, 1]} : vector<16x64xf32> to vector<16x16xf32>
    %440 = vector.extract_strided_slice %414 {offsets = [0, 16], sizes = [16, 16], strides = [1, 1]} : vector<16x64xf32> to vector<16x16xf32>
    %441 = arith.truncf %438 : vector<16x16xf32> to vector<16x16xbf16>
    %442 = arith.truncf %439 : vector<16x16xf32> to vector<16x16xbf16>
    %cst_179 = arith.constant dense<0.000000e+00> : vector<16x16xf32>
    %443 = tpu.matmul %441, %442, %cst_179 {dimension_numbers = #tpu.dot_dimension_numbers<[1], [1], [0], [0], [0, 0, 1, 0], [], []>} : vector<16x16xbf16>, vector<16x16xbf16>, vector<16x16xf32> -> vector<16x16xf32>
    %cst_180 = arith.constant 2.500000e-01 : f32
    %444 = vector.broadcast %cst_180 : f32 to vector<16x16xf32>
    %445 = arith.mulf %443, %444 : vector<16x16xf32>
    %cst_181 = arith.constant dense<0xFF800000> : vector<16xf32>
    %446 = vector.multi_reduction <maximumf>, %445, %cst_181 [1] : vector<16x16xf32> to vector<16xf32>
    %447 = vector.shape_cast %446 : vector<16xf32> to vector<16x1xf32>
    %448 = vector.broadcast %447 : vector<16x1xf32> to vector<16x16xf32>
    %449 = arith.subf %445, %448 : vector<16x16xf32>
    %450 = math.exp %449 : vector<16x16xf32>
    %cst_182 = arith.constant dense<0.000000e+00> : vector<16xf32>
    %451 = vector.multi_reduction <add>, %450, %cst_182 [1] : vector<16x16xf32> to vector<16xf32>
    %452 = vector.shape_cast %451 : vector<16xf32> to vector<16x1xf32>
    %453 = vector.broadcast %452 : vector<16x1xf32> to vector<16x16xf32>
    %454 = arith.divf %450, %453 : vector<16x16xf32>
    %455 = arith.truncf %454 : vector<16x16xf32> to vector<16x16xbf16>
    %456 = arith.truncf %440 : vector<16x16xf32> to vector<16x16xbf16>
    %cst_183 = arith.constant dense<0.000000e+00> : vector<16x16xf32>
    %457 = tpu.matmul %455, %456, %cst_183 {dimension_numbers = #tpu.dot_dimension_numbers<[1], [0], [0], [1], [0, 0, 1, 1], [], []>} : vector<16x16xbf16>, vector<16x16xbf16>, vector<16x16xf32> -> vector<16x16xf32>
    %458 = arith.truncf %457 : vector<16x16xf32> to vector<16x16xbf16>
    %c16_184 = arith.constant 16 : index
    %c0_185 = arith.constant 0 : index
    %459 = vector.load %arg26[%c16_184, %c0_185] : memref<64x64xbf16, #tpu.memory_space<vmem>>, vector<16x64xbf16>
    %cst_186 = arith.constant dense<0.000000e+00> : vector<16x64xf32>
    %460 = tpu.matmul %458, %459, %cst_186 {dimension_numbers = #tpu.dot_dimension_numbers<[1], [0], [0], [1], [0, 0, 1, 1], [], []>} : vector<16x16xbf16>, vector<16x64xbf16>, vector<16x64xf32> -> vector<16x64xf32>
    %461 = arith.addf %437, %460 : vector<16x64xf32>
    %462 = vector.extract_strided_slice %412 {offsets = [0, 32], sizes = [16, 16], strides = [1, 1]} : vector<16x64xf32> to vector<16x16xf32>
    %463 = vector.extract_strided_slice %413 {offsets = [0, 32], sizes = [16, 16], strides = [1, 1]} : vector<16x64xf32> to vector<16x16xf32>
    %464 = vector.extract_strided_slice %414 {offsets = [0, 32], sizes = [16, 16], strides = [1, 1]} : vector<16x64xf32> to vector<16x16xf32>
    %465 = arith.truncf %462 : vector<16x16xf32> to vector<16x16xbf16>
    %466 = arith.truncf %463 : vector<16x16xf32> to vector<16x16xbf16>
    %cst_187 = arith.constant dense<0.000000e+00> : vector<16x16xf32>
    %467 = tpu.matmul %465, %466, %cst_187 {dimension_numbers = #tpu.dot_dimension_numbers<[1], [1], [0], [0], [0, 0, 1, 0], [], []>} : vector<16x16xbf16>, vector<16x16xbf16>, vector<16x16xf32> -> vector<16x16xf32>
    %cst_188 = arith.constant 2.500000e-01 : f32
    %468 = vector.broadcast %cst_188 : f32 to vector<16x16xf32>
    %469 = arith.mulf %467, %468 : vector<16x16xf32>
    %cst_189 = arith.constant dense<0xFF800000> : vector<16xf32>
    %470 = vector.multi_reduction <maximumf>, %469, %cst_189 [1] : vector<16x16xf32> to vector<16xf32>
    %471 = vector.shape_cast %470 : vector<16xf32> to vector<16x1xf32>
    %472 = vector.broadcast %471 : vector<16x1xf32> to vector<16x16xf32>
    %473 = arith.subf %469, %472 : vector<16x16xf32>
    %474 = math.exp %473 : vector<16x16xf32>
    %cst_190 = arith.constant dense<0.000000e+00> : vector<16xf32>
    %475 = vector.multi_reduction <add>, %474, %cst_190 [1] : vector<16x16xf32> to vector<16xf32>
    %476 = vector.shape_cast %475 : vector<16xf32> to vector<16x1xf32>
    %477 = vector.broadcast %476 : vector<16x1xf32> to vector<16x16xf32>
    %478 = arith.divf %474, %477 : vector<16x16xf32>
    %479 = arith.truncf %478 : vector<16x16xf32> to vector<16x16xbf16>
    %480 = arith.truncf %464 : vector<16x16xf32> to vector<16x16xbf16>
    %cst_191 = arith.constant dense<0.000000e+00> : vector<16x16xf32>
    %481 = tpu.matmul %479, %480, %cst_191 {dimension_numbers = #tpu.dot_dimension_numbers<[1], [0], [0], [1], [0, 0, 1, 1], [], []>} : vector<16x16xbf16>, vector<16x16xbf16>, vector<16x16xf32> -> vector<16x16xf32>
    %482 = arith.truncf %481 : vector<16x16xf32> to vector<16x16xbf16>
    %c32_192 = arith.constant 32 : index
    %c0_193 = arith.constant 0 : index
    %483 = vector.load %arg26[%c32_192, %c0_193] : memref<64x64xbf16, #tpu.memory_space<vmem>>, vector<16x64xbf16>
    %cst_194 = arith.constant dense<0.000000e+00> : vector<16x64xf32>
    %484 = tpu.matmul %482, %483, %cst_194 {dimension_numbers = #tpu.dot_dimension_numbers<[1], [0], [0], [1], [0, 0, 1, 1], [], []>} : vector<16x16xbf16>, vector<16x64xbf16>, vector<16x64xf32> -> vector<16x64xf32>
    %485 = arith.addf %461, %484 : vector<16x64xf32>
    %486 = vector.extract_strided_slice %412 {offsets = [0, 48], sizes = [16, 16], strides = [1, 1]} : vector<16x64xf32> to vector<16x16xf32>
    %487 = vector.extract_strided_slice %413 {offsets = [0, 48], sizes = [16, 16], strides = [1, 1]} : vector<16x64xf32> to vector<16x16xf32>
    %488 = vector.extract_strided_slice %414 {offsets = [0, 48], sizes = [16, 16], strides = [1, 1]} : vector<16x64xf32> to vector<16x16xf32>
    %489 = arith.truncf %486 : vector<16x16xf32> to vector<16x16xbf16>
    %490 = arith.truncf %487 : vector<16x16xf32> to vector<16x16xbf16>
    %cst_195 = arith.constant dense<0.000000e+00> : vector<16x16xf32>
    %491 = tpu.matmul %489, %490, %cst_195 {dimension_numbers = #tpu.dot_dimension_numbers<[1], [1], [0], [0], [0, 0, 1, 0], [], []>} : vector<16x16xbf16>, vector<16x16xbf16>, vector<16x16xf32> -> vector<16x16xf32>
    %cst_196 = arith.constant 2.500000e-01 : f32
    %492 = vector.broadcast %cst_196 : f32 to vector<16x16xf32>
    %493 = arith.mulf %491, %492 : vector<16x16xf32>
    %cst_197 = arith.constant dense<0xFF800000> : vector<16xf32>
    %494 = vector.multi_reduction <maximumf>, %493, %cst_197 [1] : vector<16x16xf32> to vector<16xf32>
    %495 = vector.shape_cast %494 : vector<16xf32> to vector<16x1xf32>
    %496 = vector.broadcast %495 : vector<16x1xf32> to vector<16x16xf32>
    %497 = arith.subf %493, %496 : vector<16x16xf32>
    %498 = math.exp %497 : vector<16x16xf32>
    %cst_198 = arith.constant dense<0.000000e+00> : vector<16xf32>
    %499 = vector.multi_reduction <add>, %498, %cst_198 [1] : vector<16x16xf32> to vector<16xf32>
    %500 = vector.shape_cast %499 : vector<16xf32> to vector<16x1xf32>
    %501 = vector.broadcast %500 : vector<16x1xf32> to vector<16x16xf32>
    %502 = arith.divf %498, %501 : vector<16x16xf32>
    %503 = arith.truncf %502 : vector<16x16xf32> to vector<16x16xbf16>
    %504 = arith.truncf %488 : vector<16x16xf32> to vector<16x16xbf16>
    %cst_199 = arith.constant dense<0.000000e+00> : vector<16x16xf32>
    %505 = tpu.matmul %503, %504, %cst_199 {dimension_numbers = #tpu.dot_dimension_numbers<[1], [0], [0], [1], [0, 0, 1, 1], [], []>} : vector<16x16xbf16>, vector<16x16xbf16>, vector<16x16xf32> -> vector<16x16xf32>
    %506 = arith.truncf %505 : vector<16x16xf32> to vector<16x16xbf16>
    %c48_200 = arith.constant 48 : index
    %c0_201 = arith.constant 0 : index
    %507 = vector.load %arg26[%c48_200, %c0_201] : memref<64x64xbf16, #tpu.memory_space<vmem>>, vector<16x64xbf16>
    %cst_202 = arith.constant dense<0.000000e+00> : vector<16x64xf32>
    %508 = tpu.matmul %506, %507, %cst_202 {dimension_numbers = #tpu.dot_dimension_numbers<[1], [0], [0], [1], [0, 0, 1, 1], [], []>} : vector<16x16xbf16>, vector<16x64xbf16>, vector<16x64xf32> -> vector<16x64xf32>
    %509 = arith.addf %485, %508 : vector<16x64xf32>
    %510 = arith.addf %384, %509 : vector<16x64xf32>
    %c2_203 = arith.constant 2 : index
    %c0_204 = arith.constant 0 : index
    %511 = vector.load %arg24[%c2_203, %c0_204] : memref<3x64xf32, #tpu.memory_space<vmem>>, vector<1x64xf32>
    %512 = vector.broadcast %511 : vector<1x64xf32> to vector<16x64xf32>
    %513 = arith.addf %510, %512 : vector<16x64xf32>
    %cst_205 = arith.constant dense<0.000000e+00> : vector<16xf32>
    %514 = vector.multi_reduction <add>, %513, %cst_205 [1] : vector<16x64xf32> to vector<16xf32>
    %515 = vector.shape_cast %514 : vector<16xf32> to vector<16x1xf32>
    %cst_206 = arith.constant 6.400000e+01 : f32
    %516 = vector.broadcast %cst_206 : f32 to vector<16x1xf32>
    %517 = arith.divf %515, %516 : vector<16x1xf32>
    %518 = vector.broadcast %517 : vector<16x1xf32> to vector<16x64xf32>
    %519 = arith.subf %513, %518 : vector<16x64xf32>
    %520 = arith.mulf %519, %519 : vector<16x64xf32>
    %cst_207 = arith.constant dense<0.000000e+00> : vector<16xf32>
    %521 = vector.multi_reduction <add>, %520, %cst_207 [1] : vector<16x64xf32> to vector<16xf32>
    %522 = vector.shape_cast %521 : vector<16xf32> to vector<16x1xf32>
    %cst_208 = arith.constant 6.400000e+01 : f32
    %523 = vector.broadcast %cst_208 : f32 to vector<16x1xf32>
    %524 = arith.divf %522, %523 : vector<16x1xf32>
    %525 = vector.broadcast %517 : vector<16x1xf32> to vector<16x64xf32>
    %526 = arith.subf %513, %525 : vector<16x64xf32>
    %cst_209 = arith.constant 9.99999974E-6 : f32
    %527 = vector.broadcast %cst_209 : f32 to vector<16x1xf32>
    %528 = arith.addf %524, %527 : vector<16x1xf32>
    %529 = math.rsqrt %528 : vector<16x1xf32>
    %530 = vector.broadcast %529 : vector<16x1xf32> to vector<16x64xf32>
    %531 = arith.mulf %526, %530 : vector<16x64xf32>
    %c0_210 = arith.constant 0 : index
    %c0_211 = arith.constant 0 : index
    %532 = vector.load %arg27[%c0_210, %c0_211] : memref<3x64xf32, #tpu.memory_space<vmem>>, vector<1x64xf32>
    %533 = vector.broadcast %532 : vector<1x64xf32> to vector<16x64xf32>
    %534 = arith.mulf %531, %533 : vector<16x64xf32>
    %c1_212 = arith.constant 1 : index
    %c0_213 = arith.constant 0 : index
    %535 = vector.load %arg27[%c1_212, %c0_213] : memref<3x64xf32, #tpu.memory_space<vmem>>, vector<1x64xf32>
    %536 = vector.broadcast %535 : vector<1x64xf32> to vector<16x64xf32>
    %537 = arith.addf %534, %536 : vector<16x64xf32>
    %538 = arith.truncf %537 : vector<16x64xf32> to vector<16x64xbf16>
    %c0_214 = arith.constant 0 : index
    %c0_215 = arith.constant 0 : index
    %539 = vector.load %arg28[%c0_214, %c0_215] : memref<64x512xbf16, #tpu.memory_space<vmem>>, vector<64x512xbf16>
    %cst_216 = arith.constant dense<0.000000e+00> : vector<16x512xf32>
    %540 = tpu.matmul %538, %539, %cst_216 {dimension_numbers = #tpu.dot_dimension_numbers<[1], [0], [0], [1], [0, 0, 1, 1], [], []>} : vector<16x64xbf16>, vector<64x512xbf16>, vector<16x512xf32> -> vector<16x512xf32>
    %c0_217 = arith.constant 0 : index
    %c0_218 = arith.constant 0 : index
    %541 = vector.load %arg29[%c0_217, %c0_218] : memref<1x512xf32, #tpu.memory_space<vmem>>, vector<1x512xf32>
    %542 = vector.broadcast %541 : vector<1x512xf32> to vector<16x512xf32>
    %543 = arith.addf %540, %542 : vector<16x512xf32>
    %544 = vector.extract_strided_slice %543 {offsets = [0, 0], sizes = [16, 256], strides = [1, 1]} : vector<16x512xf32> to vector<16x256xf32>
    %545 = vector.extract_strided_slice %543 {offsets = [0, 256], sizes = [16, 256], strides = [1, 1]} : vector<16x512xf32> to vector<16x256xf32>
    %cst_219 = arith.constant 5.000000e-01 : f32
    %546 = vector.broadcast %cst_219 : f32 to vector<16x256xf32>
    %547 = arith.mulf %546, %545 : vector<16x256xf32>
    %cst_220 = arith.constant 0.707106769 : f32
    %548 = vector.broadcast %cst_220 : f32 to vector<16x256xf32>
    %549 = arith.mulf %545, %548 : vector<16x256xf32>
    %550 = math.absf %549 : vector<16x256xf32>
    %cst_221 = arith.constant 0.327591091 : f32
    %551 = vector.broadcast %cst_221 : f32 to vector<16x256xf32>
    %552 = arith.mulf %551, %550 : vector<16x256xf32>
    %cst_222 = arith.constant 1.000000e+00 : f32
    %553 = vector.broadcast %cst_222 : f32 to vector<16x256xf32>
    %554 = arith.addf %553, %552 : vector<16x256xf32>
    %cst_223 = arith.constant 1.000000e+00 : f32
    %555 = vector.broadcast %cst_223 : f32 to vector<16x256xf32>
    %556 = arith.divf %555, %554 : vector<16x256xf32>
    %cst_224 = arith.constant 1.06140542 : f32
    %557 = vector.broadcast %cst_224 : f32 to vector<16x256xf32>
    %558 = arith.mulf %557, %556 : vector<16x256xf32>
    %cst_225 = arith.constant -1.45315206 : f32
    %559 = vector.broadcast %cst_225 : f32 to vector<16x256xf32>
    %560 = arith.addf %558, %559 : vector<16x256xf32>
    %561 = arith.mulf %560, %556 : vector<16x256xf32>
    %cst_226 = arith.constant 1.42141378 : f32
    %562 = vector.broadcast %cst_226 : f32 to vector<16x256xf32>
    %563 = arith.addf %561, %562 : vector<16x256xf32>
    %564 = arith.mulf %563, %556 : vector<16x256xf32>
    %cst_227 = arith.constant -0.284496725 : f32
    %565 = vector.broadcast %cst_227 : f32 to vector<16x256xf32>
    %566 = arith.addf %564, %565 : vector<16x256xf32>
    %567 = arith.mulf %566, %556 : vector<16x256xf32>
    %cst_228 = arith.constant 0.254829586 : f32
    %568 = vector.broadcast %cst_228 : f32 to vector<16x256xf32>
    %569 = arith.addf %567, %568 : vector<16x256xf32>
    %570 = arith.mulf %569, %556 : vector<16x256xf32>
    %cst_229 = arith.constant 0.000000e+00 : f32
    %571 = vector.broadcast %cst_229 : f32 to vector<16x256xf32>
    %572 = arith.subf %571, %550 : vector<16x256xf32>
    %573 = arith.mulf %572, %550 : vector<16x256xf32>
    %574 = math.exp %573 : vector<16x256xf32>
    %575 = arith.mulf %570, %574 : vector<16x256xf32>
    %cst_230 = arith.constant 1.000000e+00 : f32
    %576 = vector.broadcast %cst_230 : f32 to vector<16x256xf32>
    %577 = arith.subf %576, %575 : vector<16x256xf32>
    %cst_231 = arith.constant 0.000000e+00 : f32
    %578 = vector.broadcast %cst_231 : f32 to vector<16x256xf32>
    %579 = arith.cmpf oge, %549, %578 : vector<16x256xf32>
    %cst_232 = arith.constant 0.000000e+00 : f32
    %580 = vector.broadcast %cst_232 : f32 to vector<16x256xf32>
    %581 = arith.subf %580, %577 : vector<16x256xf32>
    %582 = arith.select %579, %577, %581 : vector<16x256xi1>, vector<16x256xf32>
    %cst_233 = arith.constant 1.000000e+00 : f32
    %583 = vector.broadcast %cst_233 : f32 to vector<16x256xf32>
    %584 = arith.addf %583, %582 : vector<16x256xf32>
    %585 = arith.mulf %547, %584 : vector<16x256xf32>
    %586 = arith.mulf %544, %585 : vector<16x256xf32>
    %587 = arith.truncf %586 : vector<16x256xf32> to vector<16x256xbf16>
    %c0_234 = arith.constant 0 : index
    %c0_235 = arith.constant 0 : index
    %588 = vector.load %arg30[%c0_234, %c0_235] : memref<256x64xbf16, #tpu.memory_space<vmem>>, vector<256x64xbf16>
    %cst_236 = arith.constant dense<0.000000e+00> : vector<16x64xf32>
    %589 = tpu.matmul %587, %588, %cst_236 {dimension_numbers = #tpu.dot_dimension_numbers<[1], [0], [0], [1], [0, 0, 1, 1], [], []>} : vector<16x256xbf16>, vector<256x64xbf16>, vector<16x64xf32> -> vector<16x64xf32>
    %c2_237 = arith.constant 2 : index
    %c0_238 = arith.constant 0 : index
    %590 = vector.load %arg27[%c2_237, %c0_238] : memref<3x64xf32, #tpu.memory_space<vmem>>, vector<1x64xf32>
    %591 = vector.broadcast %590 : vector<1x64xf32> to vector<16x64xf32>
    %592 = arith.addf %589, %591 : vector<16x64xf32>
    %593 = arith.addf %513, %592 : vector<16x64xf32>
    %c0_239 = arith.constant 0 : index
    %c0_240 = arith.constant 0 : index
    %c0_241 = arith.constant 0 : index
    %594 = vector.load %arg31[%c0_239, %c0_240, %c0_241] : memref<1x16x64xf32, #tpu.memory_space<vmem>>, vector<1x16x64xf32>
    %595 = vector.shape_cast %594 : vector<1x16x64xf32> to vector<16x64xf32>
    %596 = vector.shape_cast %593 : vector<16x64xf32> to vector<1x16x64xf32>
    tpu.vector_store %arg31[%c0_239, %c0_240, %c0_241], %596 {strides = array<i32>} : memref<1x16x64xf32, #tpu.memory_space<vmem>>, vector<1x16x64xf32>,
    return
  }
  func.func @transform_0(%arg0: i32) -> (i32, i32, i32) {
    %c0_i32 = arith.constant 0 : i32
    %c0_i32_0 = arith.constant 0 : i32
    %c0_i32_1 = arith.constant 0 : i32
    return %arg0, %c0_i32, %c0_i32_0 : i32, i32, i32
  }
  func.func @transform_1(%arg0: i32) -> (i32, i32) {
    %c0_i32 = arith.constant 0 : i32
    %c0_i32_0 = arith.constant 0 : i32
    %c0_i32_1 = arith.constant 0 : i32
    return %c0_i32, %c0_i32_0 : i32, i32
  }
  func.func @transform_2(%arg0: i32) -> (i32, i32) {
    %c0_i32 = arith.constant 0 : i32
    %c0_i32_0 = arith.constant 0 : i32
    %c0_i32_1 = arith.constant 0 : i32
    return %c0_i32, %c0_i32_0 : i32, i32
  }
  func.func @transform_3(%arg0: i32) -> (i32, i32, i32) {
    %c0_i32 = arith.constant 0 : i32
    %c0_i32_0 = arith.constant 0 : i32
    %c0_i32_1 = arith.constant 0 : i32
    return %arg0, %c0_i32, %c0_i32_0 : i32, i32, i32
  }
  func.func @transform_4(%arg0: i32) -> (i32, i32) {
    %c0_i32 = arith.constant 0 : i32
    %c0_i32_0 = arith.constant 0 : i32
    %c0_i32_1 = arith.constant 0 : i32
    return %c0_i32, %c0_i32_0 : i32, i32
  }
  func.func @transform_5(%arg0: i32) -> (i32, i32) {
    %c0_i32 = arith.constant 0 : i32
    %c0_i32_0 = arith.constant 0 : i32
    %c0_i32_1 = arith.constant 0 : i32
    return %c0_i32, %c0_i32_0 : i32, i32
  }
  func.func @transform_6(%arg0: i32) -> (i32, i32) {
    %c0_i32 = arith.constant 0 : i32
    %c0_i32_0 = arith.constant 0 : i32
    %c0_i32_1 = arith.constant 0 : i32
    return %c0_i32, %c0_i32_0 : i32, i32
  }
  func.func @transform_7(%arg0: i32) -> (i32, i32) {
    %c0_i32 = arith.constant 0 : i32
    %c0_i32_0 = arith.constant 0 : i32
    %c0_i32_1 = arith.constant 0 : i32
    return %c0_i32, %c0_i32_0 : i32, i32
  }
  func.func @transform_8(%arg0: i32) -> (i32, i32) {
    %c0_i32 = arith.constant 0 : i32
    %c0_i32_0 = arith.constant 0 : i32
    %c0_i32_1 = arith.constant 0 : i32
    return %c0_i32, %c0_i32_0 : i32, i32
  }
  func.func @transform_9(%arg0: i32) -> (i32, i32) {
    %c0_i32 = arith.constant 0 : i32
    %c0_i32_0 = arith.constant 0 : i32
    %c0_i32_1 = arith.constant 0 : i32
    return %c0_i32, %c0_i32_0 : i32, i32
  }
  func.func @transform_10(%arg0: i32) -> (i32, i32) {
    %c0_i32 = arith.constant 0 : i32
    %c0_i32_0 = arith.constant 0 : i32
    %c0_i32_1 = arith.constant 0 : i32
    return %c0_i32, %c0_i32_0 : i32, i32
  }
  func.func @transform_11(%arg0: i32) -> (i32, i32) {
    %c0_i32 = arith.constant 0 : i32
    %c0_i32_0 = arith.constant 0 : i32
    %c0_i32_1 = arith.constant 0 : i32
    return %c0_i32, %c0_i32_0 : i32, i32
  }
  func.func @transform_12(%arg0: i32) -> (i32, i32) {
    %c0_i32 = arith.constant 0 : i32
    %c0_i32_0 = arith.constant 0 : i32
    %c0_i32_1 = arith.constant 0 : i32
    return %c0_i32, %c0_i32_0 : i32, i32
  }
  func.func @transform_13(%arg0: i32) -> (i32, i32) {
    %c0_i32 = arith.constant 0 : i32
    %c0_i32_0 = arith.constant 0 : i32
    %c0_i32_1 = arith.constant 0 : i32
    return %c0_i32, %c0_i32_0 : i32, i32
  }
  func.func @transform_14(%arg0: i32) -> (i32, i32) {
    %c0_i32 = arith.constant 0 : i32
    %c0_i32_0 = arith.constant 0 : i32
    %c0_i32_1 = arith.constant 0 : i32
    return %c0_i32, %c0_i32_0 : i32, i32
  }
  func.func @transform_15(%arg0: i32) -> (i32, i32) {
    %c0_i32 = arith.constant 0 : i32
    %c0_i32_0 = arith.constant 0 : i32
    %c0_i32_1 = arith.constant 0 : i32
    return %c0_i32, %c0_i32_0 : i32, i32
  }
  func.func @transform_16(%arg0: i32) -> (i32, i32) {
    %c0_i32 = arith.constant 0 : i32
    %c0_i32_0 = arith.constant 0 : i32
    %c0_i32_1 = arith.constant 0 : i32
    return %c0_i32, %c0_i32_0 : i32, i32
  }
  func.func @transform_17(%arg0: i32) -> (i32, i32) {
    %c0_i32 = arith.constant 0 : i32
    %c0_i32_0 = arith.constant 0 : i32
    %c0_i32_1 = arith.constant 0 : i32
    return %c0_i32, %c0_i32_0 : i32, i32
  }
  func.func @transform_18(%arg0: i32) -> (i32, i32) {
    %c0_i32 = arith.constant 0 : i32
    %c0_i32_0 = arith.constant 0 : i32
    %c0_i32_1 = arith.constant 0 : i32
    return %c0_i32, %c0_i32_0 : i32, i32
  }
  func.func @transform_19(%arg0: i32) -> (i32, i32) {
    %c0_i32 = arith.constant 0 : i32
    %c0_i32_0 = arith.constant 0 : i32
    %c0_i32_1 = arith.constant 0 : i32
    return %c0_i32, %c0_i32_0 : i32, i32
  }
  func.func @transform_20(%arg0: i32) -> (i32, i32) {
    %c0_i32 = arith.constant 0 : i32
    %c0_i32_0 = arith.constant 0 : i32
    %c0_i32_1 = arith.constant 0 : i32
    return %c0_i32, %c0_i32_0 : i32, i32
  }
  func.func @transform_21(%arg0: i32) -> (i32, i32) {
    %c0_i32 = arith.constant 0 : i32
    %c0_i32_0 = arith.constant 0 : i32
    %c0_i32_1 = arith.constant 0 : i32
    return %c0_i32, %c0_i32_0 : i32, i32
  }
  func.func @transform_22(%arg0: i32) -> (i32, i32) {
    %c0_i32 = arith.constant 0 : i32
    %c0_i32_0 = arith.constant 0 : i32
    %c0_i32_1 = arith.constant 0 : i32
    return %c0_i32, %c0_i32_0 : i32, i32
  }
  func.func @transform_23(%arg0: i32) -> (i32, i32) {
    %c0_i32 = arith.constant 0 : i32
    %c0_i32_0 = arith.constant 0 : i32
    %c0_i32_1 = arith.constant 0 : i32
    return %c0_i32, %c0_i32_0 : i32, i32
  }
  func.func @transform_24(%arg0: i32) -> (i32, i32) {
    %c0_i32 = arith.constant 0 : i32
    %c0_i32_0 = arith.constant 0 : i32
    %c0_i32_1 = arith.constant 0 : i32
    return %c0_i32, %c0_i32_0 : i32, i32
  }
  func.func @transform_25(%arg0: i32) -> (i32, i32) {
    %c0_i32 = arith.constant 0 : i32
    %c0_i32_0 = arith.constant 0 : i32
    %c0_i32_1 = arith.constant 0 : i32
    return %c0_i32, %c0_i32_0 : i32, i32
  }
  func.func @transform_26(%arg0: i32) -> (i32, i32) {
    %c0_i32 = arith.constant 0 : i32
    %c0_i32_0 = arith.constant 0 : i32
    %c0_i32_1 = arith.constant 0 : i32
    return %c0_i32, %c0_i32_0 : i32, i32
  }
  func.func @transform_27(%arg0: i32) -> (i32, i32) {
    %c0_i32 = arith.constant 0 : i32
    %c0_i32_0 = arith.constant 0 : i32
    %c0_i32_1 = arith.constant 0 : i32
    return %c0_i32, %c0_i32_0 : i32, i32
  }
  func.func @transform_28(%arg0: i32) -> (i32, i32) {
    %c0_i32 = arith.constant 0 : i32
    %c0_i32_0 = arith.constant 0 : i32
    %c0_i32_1 = arith.constant 0 : i32
    return %c0_i32, %c0_i32_0 : i32, i32
  }
  func.func @transform_29(%arg0: i32) -> (i32, i32) {
    %c0_i32 = arith.constant 0 : i32
    %c0_i32_0 = arith.constant 0 : i32
    %c0_i32_1 = arith.constant 0 : i32
    return %c0_i32, %c0_i32_0 : i32, i32
  }
  func.func @transform_30(%arg0: i32) -> (i32, i32, i32) {
    %c0_i32 = arith.constant 0 : i32
    %c0_i32_0 = arith.constant 0 : i32
    %c0_i32_1 = arith.constant 0 : i32
    return %arg0, %c0_i32, %c0_i32_0 : i32, i32, i32
  }
}

module attributes {stable_mosaic.version = 11 : i64} {
  func.func @kernel(%arg0: i32, %arg1: memref<1x8x32xf32, #tpu.memory_space<vmem>>, %arg2: memref<1x16x64xf32, #tpu.memory_space<vmem>>, %arg3: memref<3x32xf32, #tpu.memory_space<vmem>>, %arg4: memref<2x64xf32, #tpu.memory_space<vmem>>, %arg5: memref<32x32xbf16, #tpu.memory_space<vmem>>, %arg6: memref<64x64xbf16, #tpu.memory_space<vmem>>, %arg7: memref<32x32xbf16, #tpu.memory_space<vmem>>, %arg8: memref<3x32xf32, #tpu.memory_space<vmem>>, %arg9: memref<32x256xbf16, #tpu.memory_space<vmem>>, %arg10: memref<1x256xf32, #tpu.memory_space<vmem>>, %arg11: memref<128x32xbf16, #tpu.memory_space<vmem>>, %arg12: memref<32x128xbf16, #tpu.memory_space<vmem>>, %arg13: memref<1x128xf32, #tpu.memory_space<vmem>>, %arg14: memref<1x8x128xf32, #tpu.memory_space<vmem>>) attributes {dimension_semantics = [#tpu.dimension_semantics<parallel>], iteration_bounds = array<i64: 2>, scalar_prefetch = 0 : i64, scratch_operands = 0 : i64, tpu.core_type = #tpu.core_type<tc>, window_params = [{pipeline_mode = #tpu.pipeline_mode<synchronous>, transform_indices = @transform_0, window_bounds = array<i64: 1, 8, 32>}, {transform_indices = @transform_1, window_bounds = array<i64: 1, 16, 64>}, {pipeline_mode = #tpu.pipeline_mode<synchronous>, transform_indices = @transform_2, window_bounds = array<i64: 3, 32>}, {pipeline_mode = #tpu.pipeline_mode<synchronous>, transform_indices = @transform_3, window_bounds = array<i64: 2, 64>}, {pipeline_mode = #tpu.pipeline_mode<synchronous>, transform_indices = @transform_4, window_bounds = array<i64: 32, 32>}, {pipeline_mode = #tpu.pipeline_mode<synchronous>, transform_indices = @transform_5, window_bounds = array<i64: 64, 64>}, {pipeline_mode = #tpu.pipeline_mode<synchronous>, transform_indices = @transform_6, window_bounds = array<i64: 32, 32>}, {pipeline_mode = #tpu.pipeline_mode<synchronous>, transform_indices = @transform_7, window_bounds = array<i64: 3, 32>}, {pipeline_mode = #tpu.pipeline_mode<synchronous>, transform_indices = @transform_8, window_bounds = array<i64: 32, 256>}, {pipeline_mode = #tpu.pipeline_mode<synchronous>, transform_indices = @transform_9, window_bounds = array<i64: 1, 256>}, {pipeline_mode = #tpu.pipeline_mode<synchronous>, transform_indices = @transform_10, window_bounds = array<i64: 128, 32>}, {pipeline_mode = #tpu.pipeline_mode<synchronous>, transform_indices = @transform_11, window_bounds = array<i64: 32, 128>}, {pipeline_mode = #tpu.pipeline_mode<synchronous>, transform_indices = @transform_12, window_bounds = array<i64: 1, 128>}, {transform_indices = @transform_13, window_bounds = array<i64: 1, 8, 128>}]} {
    %c0 = arith.constant 0 : index
    %c0_0 = arith.constant 0 : index
    %c0_1 = arith.constant 0 : index
    %0 = vector.load %arg1[%c0, %c0_0, %c0_1] : memref<1x8x32xf32, #tpu.memory_space<vmem>>, vector<1x8x32xf32>
    %1 = vector.shape_cast %0 : vector<1x8x32xf32> to vector<8x32xf32>
    %c0_2 = arith.constant 0 : index
    %c0_3 = arith.constant 0 : index
    %c0_4 = arith.constant 0 : index
    %2 = vector.load %arg2[%c0_2, %c0_3, %c0_4] : memref<1x16x64xf32, #tpu.memory_space<vmem>>, vector<1x16x64xf32>
    %3 = vector.shape_cast %2 : vector<1x16x64xf32> to vector<16x64xf32>
    %cst = arith.constant dense<0.000000e+00> : vector<8xf32>
    %4 = vector.multi_reduction <add>, %1, %cst [1] : vector<8x32xf32> to vector<8xf32>
    %5 = vector.shape_cast %4 : vector<8xf32> to vector<8x1xf32>
    %cst_5 = arith.constant 3.200000e+01 : f32
    %6 = vector.broadcast %cst_5 : f32 to vector<8x1xf32>
    %7 = arith.divf %5, %6 : vector<8x1xf32>
    %8 = vector.broadcast %7 : vector<8x1xf32> to vector<8x32xf32>
    %9 = arith.subf %1, %8 : vector<8x32xf32>
    %10 = arith.mulf %9, %9 : vector<8x32xf32>
    %cst_6 = arith.constant dense<0.000000e+00> : vector<8xf32>
    %11 = vector.multi_reduction <add>, %10, %cst_6 [1] : vector<8x32xf32> to vector<8xf32>
    %12 = vector.shape_cast %11 : vector<8xf32> to vector<8x1xf32>
    %cst_7 = arith.constant 3.200000e+01 : f32
    %13 = vector.broadcast %cst_7 : f32 to vector<8x1xf32>
    %14 = arith.divf %12, %13 : vector<8x1xf32>
    %15 = vector.broadcast %7 : vector<8x1xf32> to vector<8x32xf32>
    %16 = arith.subf %1, %15 : vector<8x32xf32>
    %cst_8 = arith.constant 9.99999974E-6 : f32
    %17 = vector.broadcast %cst_8 : f32 to vector<8x1xf32>
    %18 = arith.addf %14, %17 : vector<8x1xf32>
    %19 = math.rsqrt %18 : vector<8x1xf32>
    %20 = vector.broadcast %19 : vector<8x1xf32> to vector<8x32xf32>
    %21 = arith.mulf %16, %20 : vector<8x32xf32>
    %c0_9 = arith.constant 0 : index
    %c0_10 = arith.constant 0 : index
    %22 = vector.load %arg3[%c0_9, %c0_10] : memref<3x32xf32, #tpu.memory_space<vmem>>, vector<1x32xf32>
    %23 = vector.broadcast %22 : vector<1x32xf32> to vector<8x32xf32>
    %24 = arith.mulf %21, %23 : vector<8x32xf32>
    %c1 = arith.constant 1 : index
    %c0_11 = arith.constant 0 : index
    %25 = vector.load %arg3[%c1, %c0_11] : memref<3x32xf32, #tpu.memory_space<vmem>>, vector<1x32xf32>
    %26 = vector.broadcast %25 : vector<1x32xf32> to vector<8x32xf32>
    %27 = arith.addf %24, %26 : vector<8x32xf32>
    %28 = arith.truncf %27 : vector<8x32xf32> to vector<8x32xbf16>
    %cst_12 = arith.constant dense<0.000000e+00> : vector<16xf32>
    %29 = vector.multi_reduction <add>, %3, %cst_12 [1] : vector<16x64xf32> to vector<16xf32>
    %30 = vector.shape_cast %29 : vector<16xf32> to vector<16x1xf32>
    %cst_13 = arith.constant 6.400000e+01 : f32
    %31 = vector.broadcast %cst_13 : f32 to vector<16x1xf32>
    %32 = arith.divf %30, %31 : vector<16x1xf32>
    %33 = vector.broadcast %32 : vector<16x1xf32> to vector<16x64xf32>
    %34 = arith.subf %3, %33 : vector<16x64xf32>
    %35 = arith.mulf %34, %34 : vector<16x64xf32>
    %cst_14 = arith.constant dense<0.000000e+00> : vector<16xf32>
    %36 = vector.multi_reduction <add>, %35, %cst_14 [1] : vector<16x64xf32> to vector<16xf32>
    %37 = vector.shape_cast %36 : vector<16xf32> to vector<16x1xf32>
    %cst_15 = arith.constant 6.400000e+01 : f32
    %38 = vector.broadcast %cst_15 : f32 to vector<16x1xf32>
    %39 = arith.divf %37, %38 : vector<16x1xf32>
    %40 = vector.broadcast %32 : vector<16x1xf32> to vector<16x64xf32>
    %41 = arith.subf %3, %40 : vector<16x64xf32>
    %cst_16 = arith.constant 9.99999974E-6 : f32
    %42 = vector.broadcast %cst_16 : f32 to vector<16x1xf32>
    %43 = arith.addf %39, %42 : vector<16x1xf32>
    %44 = math.rsqrt %43 : vector<16x1xf32>
    %45 = vector.broadcast %44 : vector<16x1xf32> to vector<16x64xf32>
    %46 = arith.mulf %41, %45 : vector<16x64xf32>
    %c0_17 = arith.constant 0 : index
    %c0_18 = arith.constant 0 : index
    %47 = vector.load %arg4[%c0_17, %c0_18] : memref<2x64xf32, #tpu.memory_space<vmem>>, vector<1x64xf32>
    %48 = vector.broadcast %47 : vector<1x64xf32> to vector<16x64xf32>
    %49 = arith.mulf %46, %48 : vector<16x64xf32>
    %c1_19 = arith.constant 1 : index
    %c0_20 = arith.constant 0 : index
    %50 = vector.load %arg4[%c1_19, %c0_20] : memref<2x64xf32, #tpu.memory_space<vmem>>, vector<1x64xf32>
    %51 = vector.broadcast %50 : vector<1x64xf32> to vector<16x64xf32>
    %52 = arith.addf %49, %51 : vector<16x64xf32>
    %53 = arith.truncf %52 : vector<16x64xf32> to vector<16x64xbf16>
    %c0_21 = arith.constant 0 : index
    %c0_22 = arith.constant 0 : index
    %54 = vector.load %arg5[%c0_21, %c0_22] : memref<32x32xbf16, #tpu.memory_space<vmem>>, vector<32x32xbf16>
    %cst_23 = arith.constant dense<0.000000e+00> : vector<8x32xf32>
    %55 = tpu.matmul %28, %54, %cst_23 {dimension_numbers = #tpu.dot_dimension_numbers<[1], [0], [0], [1], [0, 0, 1, 1], [], []>} : vector<8x32xbf16>, vector<32x32xbf16>, vector<8x32xf32> -> vector<8x32xf32>
    %c0_24 = arith.constant 0 : index
    %c0_25 = arith.constant 0 : index
    %56 = vector.load %arg6[%c0_24, %c0_25] : memref<64x64xbf16, #tpu.memory_space<vmem>>, vector<64x64xbf16>
    %cst_26 = arith.constant dense<0.000000e+00> : vector<16x64xf32>
    %57 = tpu.matmul %53, %56, %cst_26 {dimension_numbers = #tpu.dot_dimension_numbers<[1], [0], [0], [1], [0, 0, 1, 1], [], []>} : vector<16x64xbf16>, vector<64x64xbf16>, vector<16x64xf32> -> vector<16x64xf32>
    %58 = vector.extract_strided_slice %57 {offsets = [0, 0], sizes = [16, 32], strides = [1, 1]} : vector<16x64xf32> to vector<16x32xf32>
    %59 = vector.extract_strided_slice %57 {offsets = [0, 32], sizes = [16, 32], strides = [1, 1]} : vector<16x64xf32> to vector<16x32xf32>
    %60 = arith.truncf %55 : vector<8x32xf32> to vector<8x32xbf16>
    %61 = arith.truncf %58 : vector<16x32xf32> to vector<16x32xbf16>
    %cst_27 = arith.constant dense<0.000000e+00> : vector<8x16xf32>
    %62 = tpu.matmul %60, %61, %cst_27 {dimension_numbers = #tpu.dot_dimension_numbers<[1], [1], [0], [0], [0, 0, 1, 0], [], []>} : vector<8x32xbf16>, vector<16x32xbf16>, vector<8x16xf32> -> vector<8x16xf32>
    %cst_28 = arith.constant 0.176776692 : f32
    %63 = vector.broadcast %cst_28 : f32 to vector<8x16xf32>
    %64 = arith.mulf %62, %63 : vector<8x16xf32>
    %cst_29 = arith.constant dense<0xFF800000> : vector<8xf32>
    %65 = vector.multi_reduction <maximumf>, %64, %cst_29 [1] : vector<8x16xf32> to vector<8xf32>
    %66 = vector.shape_cast %65 : vector<8xf32> to vector<8x1xf32>
    %67 = vector.broadcast %66 : vector<8x1xf32> to vector<8x16xf32>
    %68 = arith.subf %64, %67 : vector<8x16xf32>
    %69 = math.exp %68 : vector<8x16xf32>
    %cst_30 = arith.constant dense<0.000000e+00> : vector<8xf32>
    %70 = vector.multi_reduction <add>, %69, %cst_30 [1] : vector<8x16xf32> to vector<8xf32>
    %71 = vector.shape_cast %70 : vector<8xf32> to vector<8x1xf32>
    %72 = vector.broadcast %71 : vector<8x1xf32> to vector<8x16xf32>
    %73 = arith.divf %69, %72 : vector<8x16xf32>
    %74 = arith.truncf %73 : vector<8x16xf32> to vector<8x16xbf16>
    %75 = arith.truncf %59 : vector<16x32xf32> to vector<16x32xbf16>
    %cst_31 = arith.constant dense<0.000000e+00> : vector<8x32xf32>
    %76 = tpu.matmul %74, %75, %cst_31 {dimension_numbers = #tpu.dot_dimension_numbers<[1], [0], [0], [1], [0, 0, 1, 1], [], []>} : vector<8x16xbf16>, vector<16x32xbf16>, vector<8x32xf32> -> vector<8x32xf32>
    %77 = arith.truncf %76 : vector<8x32xf32> to vector<8x32xbf16>
    %c0_32 = arith.constant 0 : index
    %c0_33 = arith.constant 0 : index
    %78 = vector.load %arg7[%c0_32, %c0_33] : memref<32x32xbf16, #tpu.memory_space<vmem>>, vector<32x32xbf16>
    %cst_34 = arith.constant dense<0.000000e+00> : vector<8x32xf32>
    %79 = tpu.matmul %77, %78, %cst_34 {dimension_numbers = #tpu.dot_dimension_numbers<[1], [0], [0], [1], [0, 0, 1, 1], [], []>} : vector<8x32xbf16>, vector<32x32xbf16>, vector<8x32xf32> -> vector<8x32xf32>
    %c2 = arith.constant 2 : index
    %c0_35 = arith.constant 0 : index
    %80 = vector.load %arg3[%c2, %c0_35] : memref<3x32xf32, #tpu.memory_space<vmem>>, vector<1x32xf32>
    %81 = vector.broadcast %80 : vector<1x32xf32> to vector<8x32xf32>
    %82 = arith.addf %79, %81 : vector<8x32xf32>
    %cst_36 = arith.constant dense<0.000000e+00> : vector<8xf32>
    %83 = vector.multi_reduction <add>, %82, %cst_36 [1] : vector<8x32xf32> to vector<8xf32>
    %84 = vector.shape_cast %83 : vector<8xf32> to vector<8x1xf32>
    %cst_37 = arith.constant 3.200000e+01 : f32
    %85 = vector.broadcast %cst_37 : f32 to vector<8x1xf32>
    %86 = arith.divf %84, %85 : vector<8x1xf32>
    %87 = vector.broadcast %86 : vector<8x1xf32> to vector<8x32xf32>
    %88 = arith.subf %82, %87 : vector<8x32xf32>
    %89 = arith.mulf %88, %88 : vector<8x32xf32>
    %cst_38 = arith.constant dense<0.000000e+00> : vector<8xf32>
    %90 = vector.multi_reduction <add>, %89, %cst_38 [1] : vector<8x32xf32> to vector<8xf32>
    %91 = vector.shape_cast %90 : vector<8xf32> to vector<8x1xf32>
    %cst_39 = arith.constant 3.200000e+01 : f32
    %92 = vector.broadcast %cst_39 : f32 to vector<8x1xf32>
    %93 = arith.divf %91, %92 : vector<8x1xf32>
    %94 = vector.broadcast %86 : vector<8x1xf32> to vector<8x32xf32>
    %95 = arith.subf %82, %94 : vector<8x32xf32>
    %cst_40 = arith.constant 9.99999974E-6 : f32
    %96 = vector.broadcast %cst_40 : f32 to vector<8x1xf32>
    %97 = arith.addf %93, %96 : vector<8x1xf32>
    %98 = math.rsqrt %97 : vector<8x1xf32>
    %99 = vector.broadcast %98 : vector<8x1xf32> to vector<8x32xf32>
    %100 = arith.mulf %95, %99 : vector<8x32xf32>
    %c0_41 = arith.constant 0 : index
    %c0_42 = arith.constant 0 : index
    %101 = vector.load %arg8[%c0_41, %c0_42] : memref<3x32xf32, #tpu.memory_space<vmem>>, vector<1x32xf32>
    %102 = vector.broadcast %101 : vector<1x32xf32> to vector<8x32xf32>
    %103 = arith.mulf %100, %102 : vector<8x32xf32>
    %c1_43 = arith.constant 1 : index
    %c0_44 = arith.constant 0 : index
    %104 = vector.load %arg8[%c1_43, %c0_44] : memref<3x32xf32, #tpu.memory_space<vmem>>, vector<1x32xf32>
    %105 = vector.broadcast %104 : vector<1x32xf32> to vector<8x32xf32>
    %106 = arith.addf %103, %105 : vector<8x32xf32>
    %107 = arith.truncf %106 : vector<8x32xf32> to vector<8x32xbf16>
    %c0_45 = arith.constant 0 : index
    %c0_46 = arith.constant 0 : index
    %108 = vector.load %arg9[%c0_45, %c0_46] : memref<32x256xbf16, #tpu.memory_space<vmem>>, vector<32x256xbf16>
    %cst_47 = arith.constant dense<0.000000e+00> : vector<8x256xf32>
    %109 = tpu.matmul %107, %108, %cst_47 {dimension_numbers = #tpu.dot_dimension_numbers<[1], [0], [0], [1], [0, 0, 1, 1], [], []>} : vector<8x32xbf16>, vector<32x256xbf16>, vector<8x256xf32> -> vector<8x256xf32>
    %c0_48 = arith.constant 0 : index
    %c0_49 = arith.constant 0 : index
    %110 = vector.load %arg10[%c0_48, %c0_49] : memref<1x256xf32, #tpu.memory_space<vmem>>, vector<1x256xf32>
    %111 = vector.broadcast %110 : vector<1x256xf32> to vector<8x256xf32>
    %112 = arith.addf %109, %111 : vector<8x256xf32>
    %113 = vector.extract_strided_slice %112 {offsets = [0, 0], sizes = [8, 128], strides = [1, 1]} : vector<8x256xf32> to vector<8x128xf32>
    %114 = vector.extract_strided_slice %112 {offsets = [0, 128], sizes = [8, 128], strides = [1, 1]} : vector<8x256xf32> to vector<8x128xf32>
    %cst_50 = arith.constant 5.000000e-01 : f32
    %115 = vector.broadcast %cst_50 : f32 to vector<8x128xf32>
    %116 = arith.mulf %115, %114 : vector<8x128xf32>
    %cst_51 = arith.constant 0.707106769 : f32
    %117 = vector.broadcast %cst_51 : f32 to vector<8x128xf32>
    %118 = arith.mulf %114, %117 : vector<8x128xf32>
    %119 = math.absf %118 : vector<8x128xf32>
    %cst_52 = arith.constant 0.327591091 : f32
    %120 = vector.broadcast %cst_52 : f32 to vector<8x128xf32>
    %121 = arith.mulf %120, %119 : vector<8x128xf32>
    %cst_53 = arith.constant 1.000000e+00 : f32
    %122 = vector.broadcast %cst_53 : f32 to vector<8x128xf32>
    %123 = arith.addf %122, %121 : vector<8x128xf32>
    %cst_54 = arith.constant 1.000000e+00 : f32
    %124 = vector.broadcast %cst_54 : f32 to vector<8x128xf32>
    %125 = arith.divf %124, %123 : vector<8x128xf32>
    %cst_55 = arith.constant 1.06140542 : f32
    %126 = vector.broadcast %cst_55 : f32 to vector<8x128xf32>
    %127 = arith.mulf %126, %125 : vector<8x128xf32>
    %cst_56 = arith.constant -1.45315206 : f32
    %128 = vector.broadcast %cst_56 : f32 to vector<8x128xf32>
    %129 = arith.addf %127, %128 : vector<8x128xf32>
    %130 = arith.mulf %129, %125 : vector<8x128xf32>
    %cst_57 = arith.constant 1.42141378 : f32
    %131 = vector.broadcast %cst_57 : f32 to vector<8x128xf32>
    %132 = arith.addf %130, %131 : vector<8x128xf32>
    %133 = arith.mulf %132, %125 : vector<8x128xf32>
    %cst_58 = arith.constant -0.284496725 : f32
    %134 = vector.broadcast %cst_58 : f32 to vector<8x128xf32>
    %135 = arith.addf %133, %134 : vector<8x128xf32>
    %136 = arith.mulf %135, %125 : vector<8x128xf32>
    %cst_59 = arith.constant 0.254829586 : f32
    %137 = vector.broadcast %cst_59 : f32 to vector<8x128xf32>
    %138 = arith.addf %136, %137 : vector<8x128xf32>
    %139 = arith.mulf %138, %125 : vector<8x128xf32>
    %cst_60 = arith.constant 0.000000e+00 : f32
    %140 = vector.broadcast %cst_60 : f32 to vector<8x128xf32>
    %141 = arith.subf %140, %119 : vector<8x128xf32>
    %142 = arith.mulf %141, %119 : vector<8x128xf32>
    %143 = math.exp %142 : vector<8x128xf32>
    %144 = arith.mulf %139, %143 : vector<8x128xf32>
    %cst_61 = arith.constant 1.000000e+00 : f32
    %145 = vector.broadcast %cst_61 : f32 to vector<8x128xf32>
    %146 = arith.subf %145, %144 : vector<8x128xf32>
    %cst_62 = arith.constant 0.000000e+00 : f32
    %147 = vector.broadcast %cst_62 : f32 to vector<8x128xf32>
    %148 = arith.cmpf oge, %118, %147 : vector<8x128xf32>
    %cst_63 = arith.constant 0.000000e+00 : f32
    %149 = vector.broadcast %cst_63 : f32 to vector<8x128xf32>
    %150 = arith.subf %149, %146 : vector<8x128xf32>
    %151 = arith.select %148, %146, %150 : vector<8x128xi1>, vector<8x128xf32>
    %cst_64 = arith.constant 1.000000e+00 : f32
    %152 = vector.broadcast %cst_64 : f32 to vector<8x128xf32>
    %153 = arith.addf %152, %151 : vector<8x128xf32>
    %154 = arith.mulf %116, %153 : vector<8x128xf32>
    %155 = arith.mulf %113, %154 : vector<8x128xf32>
    %156 = arith.truncf %155 : vector<8x128xf32> to vector<8x128xbf16>
    %c0_65 = arith.constant 0 : index
    %c0_66 = arith.constant 0 : index
    %157 = vector.load %arg11[%c0_65, %c0_66] : memref<128x32xbf16, #tpu.memory_space<vmem>>, vector<128x32xbf16>
    %cst_67 = arith.constant dense<0.000000e+00> : vector<8x32xf32>
    %158 = tpu.matmul %156, %157, %cst_67 {dimension_numbers = #tpu.dot_dimension_numbers<[1], [0], [0], [1], [0, 0, 1, 1], [], []>} : vector<8x128xbf16>, vector<128x32xbf16>, vector<8x32xf32> -> vector<8x32xf32>
    %c2_68 = arith.constant 2 : index
    %c0_69 = arith.constant 0 : index
    %159 = vector.load %arg8[%c2_68, %c0_69] : memref<3x32xf32, #tpu.memory_space<vmem>>, vector<1x32xf32>
    %160 = vector.broadcast %159 : vector<1x32xf32> to vector<8x32xf32>
    %161 = arith.addf %158, %160 : vector<8x32xf32>
    %162 = arith.addf %82, %161 : vector<8x32xf32>
    %163 = arith.truncf %162 : vector<8x32xf32> to vector<8x32xbf16>
    %c0_70 = arith.constant 0 : index
    %c0_71 = arith.constant 0 : index
    %164 = vector.load %arg12[%c0_70, %c0_71] : memref<32x128xbf16, #tpu.memory_space<vmem>>, vector<32x128xbf16>
    %cst_72 = arith.constant dense<0.000000e+00> : vector<8x128xf32>
    %165 = tpu.matmul %163, %164, %cst_72 {dimension_numbers = #tpu.dot_dimension_numbers<[1], [0], [0], [1], [0, 0, 1, 1], [], []>} : vector<8x32xbf16>, vector<32x128xbf16>, vector<8x128xf32> -> vector<8x128xf32>
    %c0_73 = arith.constant 0 : index
    %c0_74 = arith.constant 0 : index
    %166 = vector.load %arg13[%c0_73, %c0_74] : memref<1x128xf32, #tpu.memory_space<vmem>>, vector<1x128xf32>
    %167 = vector.broadcast %166 : vector<1x128xf32> to vector<8x128xf32>
    %168 = arith.addf %165, %167 : vector<8x128xf32>
    %c0_75 = arith.constant 0 : index
    %c0_76 = arith.constant 0 : index
    %c0_77 = arith.constant 0 : index
    %169 = vector.load %arg14[%c0_75, %c0_76, %c0_77] : memref<1x8x128xf32, #tpu.memory_space<vmem>>, vector<1x8x128xf32>
    %170 = vector.shape_cast %169 : vector<1x8x128xf32> to vector<8x128xf32>
    %171 = vector.shape_cast %168 : vector<8x128xf32> to vector<1x8x128xf32>
    tpu.vector_store %arg14[%c0_75, %c0_76, %c0_77], %171 {strides = array<i32>} : memref<1x8x128xf32, #tpu.memory_space<vmem>>, vector<1x8x128xf32>,
    return
  }
  func.func @transform_0(%arg0: i32) -> (i32, i32, i32) {
    %c0_i32 = arith.constant 0 : i32
    %c0_i32_0 = arith.constant 0 : i32
    %c0_i32_1 = arith.constant 0 : i32
    %c0_i32_2 = arith.constant 0 : i32
    return %c0_i32, %c0_i32_0, %c0_i32_1 : i32, i32, i32
  }
  func.func @transform_1(%arg0: i32) -> (i32, i32, i32) {
    %c0_i32 = arith.constant 0 : i32
    %c0_i32_0 = arith.constant 0 : i32
    %c0_i32_1 = arith.constant 0 : i32
    return %arg0, %c0_i32, %c0_i32_0 : i32, i32, i32
  }
  func.func @transform_2(%arg0: i32) -> (i32, i32) {
    %c0_i32 = arith.constant 0 : i32
    %c0_i32_0 = arith.constant 0 : i32
    %c0_i32_1 = arith.constant 0 : i32
    return %c0_i32, %c0_i32_0 : i32, i32
  }
  func.func @transform_3(%arg0: i32) -> (i32, i32) {
    %c0_i32 = arith.constant 0 : i32
    %c0_i32_0 = arith.constant 0 : i32
    %c0_i32_1 = arith.constant 0 : i32
    return %c0_i32, %c0_i32_0 : i32, i32
  }
  func.func @transform_4(%arg0: i32) -> (i32, i32) {
    %c0_i32 = arith.constant 0 : i32
    %c0_i32_0 = arith.constant 0 : i32
    %c0_i32_1 = arith.constant 0 : i32
    return %c0_i32, %c0_i32_0 : i32, i32
  }
  func.func @transform_5(%arg0: i32) -> (i32, i32) {
    %c0_i32 = arith.constant 0 : i32
    %c0_i32_0 = arith.constant 0 : i32
    %c0_i32_1 = arith.constant 0 : i32
    return %c0_i32, %c0_i32_0 : i32, i32
  }
  func.func @transform_6(%arg0: i32) -> (i32, i32) {
    %c0_i32 = arith.constant 0 : i32
    %c0_i32_0 = arith.constant 0 : i32
    %c0_i32_1 = arith.constant 0 : i32
    return %c0_i32, %c0_i32_0 : i32, i32
  }
  func.func @transform_7(%arg0: i32) -> (i32, i32) {
    %c0_i32 = arith.constant 0 : i32
    %c0_i32_0 = arith.constant 0 : i32
    %c0_i32_1 = arith.constant 0 : i32
    return %c0_i32, %c0_i32_0 : i32, i32
  }
  func.func @transform_8(%arg0: i32) -> (i32, i32) {
    %c0_i32 = arith.constant 0 : i32
    %c0_i32_0 = arith.constant 0 : i32
    %c0_i32_1 = arith.constant 0 : i32
    return %c0_i32, %c0_i32_0 : i32, i32
  }
  func.func @transform_9(%arg0: i32) -> (i32, i32) {
    %c0_i32 = arith.constant 0 : i32
    %c0_i32_0 = arith.constant 0 : i32
    %c0_i32_1 = arith.constant 0 : i32
    return %c0_i32, %c0_i32_0 : i32, i32
  }
  func.func @transform_10(%arg0: i32) -> (i32, i32) {
    %c0_i32 = arith.constant 0 : i32
    %c0_i32_0 = arith.constant 0 : i32
    %c0_i32_1 = arith.constant 0 : i32
    return %c0_i32, %c0_i32_0 : i32, i32
  }
  func.func @transform_11(%arg0: i32) -> (i32, i32) {
    %c0_i32 = arith.constant 0 : i32
    %c0_i32_0 = arith.constant 0 : i32
    %c0_i32_1 = arith.constant 0 : i32
    return %c0_i32, %c0_i32_0 : i32, i32
  }
  func.func @transform_12(%arg0: i32) -> (i32, i32) {
    %c0_i32 = arith.constant 0 : i32
    %c0_i32_0 = arith.constant 0 : i32
    %c0_i32_1 = arith.constant 0 : i32
    return %c0_i32, %c0_i32_0 : i32, i32
  }
  func.func @transform_13(%arg0: i32) -> (i32, i32, i32) {
    %c0_i32 = arith.constant 0 : i32
    %c0_i32_0 = arith.constant 0 : i32
    %c0_i32_1 = arith.constant 0 : i32
    return %arg0, %c0_i32, %c0_i32_0 : i32, i32, i32
  }
}

</mosaic_0001>

<bundles_post_ra>
// kernel: perceiver_forward.3
= control target key start
LH: loop header
LB: loop body
LE: loop exit
PB: predicated region body
PF: predicated region fallthrough
CT: control target
= control target key end

     0   :  { %s1832_s0 = inlined_call_operand.vmem [shape: f32[1,8,32], index: 0, kind: input, shape index: {}]   ;;  %s1833_s1 = inlined_call_operand.vmem [shape: f32[2,16,64], index: 1, kind: input, shape index: {}]   ;;  %s1834_s2 = inlined_call_operand.vmem [shape: f32[3,32], index: 2, kind: input, shape index: {}]   ;;  %s1835_s3 = inlined_call_operand.vmem [shape: f32[2,64], index: 3, kind: input, shape index: {}]   ;;  %s1836_s4 = inlined_call_operand.vmem [shape: bf16[32,32], index: 4, kind: input, shape index: {}]   ;;  %s1837_s5 = inlined_call_operand.vmem [shape: bf16[64,64], index: 5, kind: input, shape index: {}]   ;;  %s1838_s6 = inlined_call_operand.vmem [shape: bf16[32,32], index: 6, kind: input, shape index: {}]   ;;  %s1839_s7 = inlined_call_operand.vmem [shape: f32[3,32], index: 7, kind: input, shape index: {}]   ;;  %s1840_s8 = inlined_call_operand.vmem [shape: bf16[32,256], index: 8, kind: input, shape index: {}]   ;;  %s1841_s9 = inlined_call_operand.vmem [shape: f32[1,256], index: 9, kind: input, shape index: {}]   ;;  %s1842_s10 = inlined_call_operand.vmem [shape: bf16[128,32], index: 10, kind: input, shape index: {}]   ;;  %s1843_s11 = inlined_call_operand.vmem [shape: bf16[32,128], index: 11, kind: input, shape index: {}]   ;;  %s1844_s12 = inlined_call_operand.vmem [shape: f32[1,128], index: 12, kind: input, shape index: {}]   ;;  %s1845_s13 = inlined_call_operand.hbm [shape: f32[2,8,128], index: 13, kind: output, shape index: {}]  }
   0x1   :  { %1846 = sst [smem:[#allocation5_spill]] %s1832_s0 }
   0x2   :  { %1847 = sst [smem:[#allocation6_spill]] %s1833_s1 }
   0x3   :  { %18 = vsyncpa [#allocation3], 0 }
   0x4   :  { %20 = vsyncpa [#allocation3 + $0x1], 0  ;;  %s1576_s25 = smov 0   ;;  %s1578_s26 = smov 0  }
   0x5   :  { %s1580_s27 = smov 0   ;;  %s1582_s28 = smov 0  }
   0x6 LB: > { %s1597_s29 = sadd.s32 4294967295, %s1499_s28   ;;  %s1209_s30 = sadd.s32 4294967294, %s1499_s28   ;;  %s1499_s28 = sphi %s1582_s28, %s1855_s28   ;;  %s1495_s27 = sphi %s1580_s27, %s1854_s27   ;;  %s1491_s26 = sphi %s1578_s26, %s1853_s26   ;;  %s1487_s25 = sphi %s1576_s25, %s1852_s25  }
   0x7   : > { %s1601_s14 = sadd.s32 1, %s1499_s28   ;;  %s311_s15 = sadd.s32 1, %s1495_s27 }
   0x8   : > { %s308_s16 = ssub.s32 %s1499_s28, %s1601_s14  ;;  %p321_p0 = scmp.ne.s32.totalorder %s1495_s27, %s1491_s26 }
   0x9   : > { %p309_p1 = scmp.eq.s32.totalorder %s308_s16, 0  ;;  %p322_p2 = scmp.eq.s32.totalorder %s1597_s29, 1 }
   0xa   : > { %p327_p3 = scmp.ne.s32.totalorder %s1491_s26, %s1487_s25  ;;  %p328_p4 = scmp.eq.s32.totalorder %s1209_s30, 1 }
   0xb   : > { %s1612_s17 = scalar_select %p309_p1, %s1495_s27, %s311_s15  }
   0xc   : > { %p1614_p5 = por %p322_p2, %p321_p0  ;;  %p1618_p6 = por %p328_p4, %p327_p3 }
   0xd   : > { %p1212_p7 = scmp.ge.s32.totalorder %s1499_s28, 1  ;;  %p390_p8 = scmp.lt.s32.totalorder %s1499_s28, 3 }
   0xf   : > { %p391_p9 = pnand %p1212_p7, %p390_p8 }
  0x10   : > { %p434_p10 = scmp.lt.s32.totalorder (!%p391_p9), %s1597_s29, 1  ;;  %vm471_vm0 = vcmask (!%p391_p9), 523264   ;;  %s1850_s0 = sld [smem:[#allocation5_spill]] (!%p391_p9)  ;;  %vm443_vm1 = vcmask (!%p391_p9), 261120   ;;  %v1397_v21 = vld [vmem:[%s1837_s5] sm:$0xff] (!%p391_p9)   ;;  %v1501_v22 = vmov (!%p391_p9), 0.0  }
  0x11   : > { %394 = sbr.rel (%p391_p9) target bundleno = 2559 (0x9ff), region = 72  ;;  %s1851_s1 = sld [smem:[#allocation6_spill]] (!%p391_p9)  ;;  %1294 = vmatprep.subr.bf16.mxu1 (!%p391_p9), %v1501_v22  ;;  %1286 = vmatprep.subr.bf16.mxu0 (!%p391_p9), %v1501_v22  ;;  %v1398_v23 = vld [vmem:[%s1837_s5 + $0x8] sm:$0xff] (!%p391_p9)   ;;  %v1399_v24 = vld [vmem:[%s1836_s4] sm:$0xff] (!%p391_p9)   ;;  %v1400_v25 = vld [vmem:[%s1837_s5 + $0x10] sm:$0xff] (!%p391_p9)   ;;  %vm1502_vm2 = vmmov (!%p391_p9), 0  }
  0x12   : > { %1295 = vmatpush3.bf16.msra.mxu1 (!%p391_p9), %v1397_v21  ;;  %1287 = vmatpush3.bf16.msra.mxu0 (!%p391_p9), %v1399_v24  ;;  %v1401_v26 = vld [vmem:[%s1836_s4 + $0x8] sm:$0xff] (!%p391_p9)   ;;  %v1402_v27 = vld [vmem:[%s1837_s5 + $0x18] sm:$0xff] (!%p391_p9)   ;;  %v1218_v39 = vld [vmem:[%s1835_s3] ss:$0 sm:$0xff] (!%p391_p9)  ;;  %vm698_vm3 = vcmask (!%p391_p9), 130048   ;;  %s1503_s21 = smov (!%p391_p9), 96  }
  0x13   : > { %1296 = vmatprep.subr.bf16.mxu1 (!%p391_p9), %v1501_v22  ;;  %1288 = vmatprep.subr.bf16.mxu0 (!%p391_p9), %v1501_v22  ;;  %v1216_v41 = vld [vmem:[%s1834_s2] ss:$0 sm:$0xff] (!%p391_p9)  ;;  %v1217_v45 = vld [vmem:[%s1834_s2 + $0x1] ss:$0 sm:$0xff] (!%p391_p9)  ;;  %s431_s16 = sand.u32 (!%p391_p9), 1, %s1491_s26  }
  0x14   : > { %1290 = vmatprep.mubr.msk.bf16.mxu0 (!%p391_p9), %vm1502_vm2, %v1501_v22  ;;  %1302 = vmatprep.mubr.msk.bf16.mxu1 (!%p391_p9), %vm1502_vm2, %v1501_v22  ;;  %v1219_v48 = vld [vmem:[%s1835_s3 + $0x1] ss:$0 sm:$0xff] (!%p391_p9)  ;;  %s1213_s20 = sshll.u32 (!%p391_p9), %s431_s16, 3 }
  0x16   : > { %v440_v0 = vld [vmem:[%s1850_s0] sm:$0xff] (!%p391_p9)  ;;  %1297 = vmatpush3.bf16.msra.mxu1 (!%p391_p9), %v1398_v23  ;;  %1289 = vmatpush3.bf16.msra.mxu0 (!%p391_p9), %v1401_v26 }
  0x17   : > { %v444_v1 = vsel (!%p391_p9), %vm443_vm1, %v440_v0, 0.0  ;;  %1298 = vmatprep.subr.bf16.mxu1 (!%p391_p9), %v1501_v22  ;;  %1306 = vmatprep.subr.bf16.mxu0 (!%p391_p9), %v1501_v22  ;;  %v1230_v26 = vld [vmem:[%s1834_s2 + $0x2] ss:$0 sm:$0xff] (!%p391_p9) }
  0x18   : > { %s435_s22 = scalar_select %p434_p10, %s1597_s29, 1  ;;  %445 = vadd.xlane.f32.xlu1 %v444_v1 }
  0x1a   : > { %s1258_s23 = sshll.u32 %s435_s22, 4  ;;  %1299 = vmatpush3.bf16.msra.mxu1 %v1400_v25  ;;  %s1255_s22 = sshll.u32 %s1597_s29, 7 }
  0x1b   : > { %s438_s15 = scalar_lea.vmem %s1851_s1, %s1258_s23  ;;  %1300 = vmatprep.subr.bf16.mxu1 %v1501_v22  ;;  %s433_s23 = scalar_lea.vmem [#allocation2], %s1213_s20 }
  0x1c   : > { %v441_v2 = vld [vmem:[%s438_s15] sm:$0xff]  ;;  %v442_v3 = vld [vmem:[%s438_s15 + $0x8] sm:$0xff]  ;;  %s1150_s24 = sshll.u32 %s433_s23, 4  ;;  %s1790_s1 = scalar_lea.hbm %s1845_s13, %s1255_s22  ;;  %s1792_s24 = int_to_ptr.vmem [resolvable:$true] %s1150_s24 }
  0x1d   : > { %v472_v4 = vsel %vm471_vm0, %v441_v2, 0.0  ;;  %v475_v5 = vsel %vm471_vm0, %v442_v3, 0.0  ;;  %s1437_s29 = scalar_lea.vmem %s1792_s24, 128  ;;  %s1505_s20 = smov [#allocation2]  }
  0x1e   : > { %473 = vadd.xlane.f32.xlu0 %v472_v4  ;;  %1301 = vmatpush3.bf16.msra.mxu1 %v1402_v27  ;;  %p1438_p11 = scmp.ne.s32.totalorder %s1792_s24, %s1437_s29  ;;  %s1441_s0 = sshll.u32 %s1505_s20, 4  ;;  %s1442_s0 = int_to_ptr.vmem [resolvable:$false] %s1441_s0 }
  0x1f   : > { %1326 = vmatprep.subr.bf16.mxu1 %v1501_v22  ;;  %s1443_s30 = scalar_lea.vmem %s1442_s0, 256  ;;  %p1444_p0 = scmp.lt.s32.totalorder %s1792_s24, %s1442_s0 }
  0x20   : > { %p1439_p12 = pnand %p1438_p11, %p1614_p5  ;;  %p1445_p1 = scmp.lt.s32.totalorder %s1443_s30, %s1437_s29 }
  0x22   : > { %476 = vadd.xlane.f32.xlu0 %v475_v5  ;;  %p1440_p13 = pneg %p1439_p12  ;;  %p1446_p2 = por %p1445_p1, %p1444_p0 }
  0x24   : > { %p1447_p3 = pnand %p1446_p2, %p1440_p13 }
  0xa5   : > { %v446_v6 = vpop.xlane.xlu1 %445 }
  0xa6   : > { %v448_v7 = vmul.f32 0.03125, %v446_v6 }
  0xa8   : > { %v449_v10 = vsub.f32 %v440_v0, %v448_v7 }
  0xaa   : > { %v450_v15 = vmul.f32 %v449_v10, %v449_v10 }
  0xab   : > { %v474_v8 = vpop.xlane.xlu0 %473 }
  0xac   : > { %v479_v9 = vmul.f32 0.015625, %v474_v8  ;;  %v451_v18 = vsel %vm443_vm1, %v450_v15, 0.0 }
  0xae   : > { %v481_v11 = vsub.f32 %v441_v2, %v479_v9 }
  0xaf   : > { %v477_v12 = vpop.xlane.xlu0 %476 }
  0xb0   : > { %v480_v13 = vmul.f32 0.015625, %v477_v12  ;;  %v483_v14 = vmul.f32 %v481_v11, %v481_v11 }
  0xb2   : > { %v482_v16 = vsub.f32 %v442_v3, %v480_v13  ;;  %v485_v17 = vsel %vm471_vm0, %v483_v14, 0.0 }
  0xb3   : > { %486 = vadd.xlane.f32.xlu1 %v485_v17  ;;  %v1403_v17 = vld [vmem:[%s1838_s6] sm:$0xff]  }
  0xb4   : > { %v484_v19 = vmul.f32 %v482_v16, %v482_v16 }
  0xb6   : > { %v488_v20 = vsel %vm471_vm0, %v484_v19, 0.0  ;;  %v1404_v19 = vld [vmem:[%s1838_s6 + $0x8] sm:$0xff]  }
  0xb7   : > { %452 = vadd.xlane.f32.xlu1 %v451_v18  ;;  %489 = vadd.xlane.f32.xlu0 %v488_v20 }
 0x140   : > { %v487_v28 = vpop.xlane.xlu1 %486 }
 0x141   : > { %v491_v29 = vmul.f32 0.015625, %v487_v28 }
 0x143   : > { %v493_v30 = vadd.f32 1e-05, %v491_v29 }
 0x144   : > { %v453_v31 = vpop.xlane.xlu1 %452  ;;  %v490_v32 = vpop.xlane.xlu0 %489 }
 0x145   : > { %1421 = vrsqrt.f32 %v493_v30  ;;  %v454_v33 = vmul.f32 0.03125, %v453_v31  ;;  %v492_v34 = vmul.f32 0.015625, %v490_v32 }
 0x147   : > { %v455_v35 = vadd.f32 1e-05, %v454_v33  ;;  %v494_v36 = vadd.f32 1e-05, %v492_v34 }
 0x149   : > { %1423 = vrsqrt.f32 %v455_v35 }
 0x14a   : > { %1425 = vrsqrt.f32 %v494_v36 }
 0x14f   : > { %v1422_v37 = vpop.eup %1421 }
 0x150   : > { %v497_v38 = vmul.f32 %v1422_v37, %v481_v11 }
 0x152   : > { %v504_v46 = vmul.f32 %v1218_v39, %v497_v38  ;;  %v1407_v38 = vld [vmem:[%s1840_s8 + $0x4] ss:$8 sps:$4 sm:$0xff]  }
 0x153   : > { %v1424_v40 = vpop.eup %1423 }
 0x154   : > { %v1426_v42 = vpop.eup %1425  ;;  %v457_v43 = vmul.f32 %v1424_v40, %v449_v10  ;;  %v511_v51 = vadd.f32 %v1219_v48, %v504_v46  ;;  %v1408_v40 = vld [vmem:[%s1840_s8 + $0x10] ss:$8 sps:$4 sm:$0xff]  }
 0x155   : > { %v498_v44 = vmul.f32 %v1426_v42, %v482_v16  ;;  %v1504_v42 = vmov 0  }
 0x156   : > { %v463_v47 = vmul.f32 %v1216_v41, %v457_v43  ;;  %v1410_v41 = vld [vmem:[%s1840_s8 + $0x14] ss:$8 sps:$4 sm:$0xff]  }
 0x157   : > { %v505_v49 = vmul.f32 %v1218_v39, %v498_v44  ;;  %v1405_v39 = vld [vmem:[%s1840_s8] ss:$8 sps:$4 sm:$0xff]  }
 0x158   : > { %v469_v50 = vadd.f32 %v1217_v45, %v463_v47  ;;  %v1234_v47 = vld [vmem:[%s1839_s7] ss:$0 sm:$0xff] }
 0x159   : > { %v512_v52 = vadd.f32 %v1219_v48, %v505_v49  ;;  %v1235_v49 = vld [vmem:[%s1839_s7 + $0x1] ss:$0 sm:$0xff] }
 0x15a   : > { %v470_v53 = vpack.c.bf16 %v469_v50, %v469_v50 }
 0x15b   : > { %v513_v54 = vpack.c.bf16 %v512_v52, %v511_v51 }
 0x15c   : > { %1291 = vmatmul.mubr.msk.bf16.vlgmr.msra.gmra.mrb[0].mxu0 %vm443_vm1, %v470_v53  ;;  %v1411_v53 = vld [vmem:[%s1842_s10] sm:$0xff]  }
 0x15d   : > { %1303 = vmatmul.mubr.msk.bf16.vlgmr.msra.gmra.mrb[0].mxu1 %vm471_vm0, %v513_v54  ;;  %1308 = vmatprep.mubr.msk.bf16.mxu0 %vm1502_vm2, %v1501_v22  ;;  %v1412_v54 = vld [vmem:[%s1842_s10 + $0x8] sm:$0xff]  }
 0x15e   : > { %1342 = vmatprep.mubr.msk.bf16.mxu1 %vm1502_vm2, %v1501_v22  ;;  %1327 = vmatpush3.bf16.msra.mxu1 %v1411_v53 }
 0x15f   : > { %1328 = vmatprep.subr.bf16.mxu1 %v1501_v22 }
 0x162   : > { %1329 = vmatpush3.bf16.msra.mxu1 %v1412_v54 }
 0x163   : > { %1330 = vmatprep.subr.bf16.mxu1 %v1501_v22 }
 0x22f   : > { %v567_v55 = vpop.f32.mrb[0].mxu0 }
 0x230   : > { %v642_v56 = vpop.f32.mrb[0].mxu1  ;;  %v1292_v57 = vpop.f32.mrb[1].mxu0  ;;  %v649_v1 = vpack.c.bf16 %v567_v55, %v567_v55  ;;  %v1413_v55 = vld [vmem:[%s1842_s10 + $0x10] sm:$0xff]  }
 0x231   : > { %v1304_v58 = vpop.f32.mrb[1].mxu1  ;;  %v570_v59 = vpop.f32.mrb[2].mxu0  ;;  %1331 = vmatpush3.bf16.msra.mxu1 %v1413_v55  ;;  %v1415_v57 = vld [vmem:[%s1842_s10 + $0x20] sm:$0xff]  }
 0x232   : > { %v645_v60 = vpop.f32.mrb[2].mxu1  ;;  %v1293_v61 = vpop.f32.mrb[3].mxu0  ;;  %1332 = vmatprep.subr.bf16.mxu1 %v1501_v22  ;;  %v1416_v58 = vld [vmem:[%s1842_s10 + $0x28] sm:$0xff]   ;;  %v1417_v59 = vld [vmem:[%s1842_s10 + $0x30] sm:$0xff]  }
 0x233   : > { %v650_v62 = vpack.c.bf16 %v645_v60, %v642_v56  ;;  %v1305_v63 = vpop.f32.mrb[3].mxu1  ;;  %v1414_v56 = vld [vmem:[%s1842_s10 + $0x18] sm:$0xff]   ;;  %v855_v61 = vlaneseq }
 0x234   : > { %v1418_v60 = vld [vmem:[%s1842_s10 + $0x38] sm:$0xff]  }
 0x235   : > { %v655_v0 = vsel %vm443_vm1, %v650_v62, 0  ;;  %1333 = vmatpush3.bf16.msra.mxu1 %v1414_v56 }
 0x236   : > { %1307 = vmatpush3.bf16.xpose.msra.mxu0 %v655_v0  ;;  %1334 = vmatprep.subr.bf16.mxu1 %v1501_v22  ;;  %v853_v0 = vld [vmem:[%s1841_s9] sm:$0x3] }
 0x237   : > { %1312 = vmatprep.subr.bf16.mxu0 %v1501_v22 }
 0x239   : > { %1335 = vmatpush3.bf16.msra.mxu1 %v1415_v57 }
 0x23a   : > { %1336 = vmatprep.subr.bf16.mxu1 %v1501_v22 }
 0x23d   : > { %1309 = vmatmul.mubr.msk.bf16.vlgmr.msra.gmra.mrb[4].mxu0 %vm443_vm1, %v649_v1  ;;  %1337 = vmatpush3.bf16.msra.mxu1 %v1416_v58 }
 0x23e   : > { %1314 = vmatprep.mubr.msk.bf16.mxu0 %vm1502_vm2, %v1501_v22  ;;  %1338 = vmatprep.subr.bf16.mxu1 %v1501_v22 }
 0x241   : > { %1339 = vmatpush3.bf16.msra.mxu1 %v1417_v59 }
 0x242   : > { %1340 = vmatprep.subr.bf16.mxu1 %v1501_v22 }
 0x245   : > { %1341 = vmatpush3.bf16.msra.mxu1 %v1418_v60 }
 0x310   : > { %v691_v2 = vpop.f32.mrb[4].mxu0 }
 0x311   : > { %v697_v3 = vmul.f32 0.17677669, %v691_v2  ;;  %v1310_v4 = vpop.f32.mrb[5].mxu0 }
 0x312   : > { %v694_v5 = vpop.f32.mrb[6].mxu0 }
 0x313   : > { %v1311_v6 = vpop.f32.mrb[7].mxu0  ;;  %v699_v7 = vsel %vm698_vm3, %v697_v3, -inf }
 0x314   : > { %700 = vmax.xlane.f32.xlu0 %v699_v7 }
 0x32a   : > { %712 = vrot.lane.b32.xlu0 %v650_v62, %s1503_s21  ;;  %v856_v62 = vshrl.u32 %v855_v61, 7  ;;  %s1137_s21 = scalar_lea.sflag [#allocation3], %s431_s16 }
 0x32c   : > { %v861_v63 = vsub.s32 1, %v856_v62 }
 0x32e   : > { %v862_v1 = vrot.slane %v853_v0, %v861_v63 }
 0x3a1   : > { %v701_v8 = vpop.xlane.xlu0 %700 }
 0x3a2   : > { %v702_v9 = vsub.f32 %v697_v3, %v701_v8 }
 0x3a4   : > { %v703_v10 = vmul.f32 1.442695, %v702_v9 }
 0x3a5   : > { %v713_v11 = vpop.permute.xlu0 %712 }
 0x3a6   : > { %1427 = vpow2.f32 %v703_v10  ;;  %1313 = vmatpush3.bf16.msra.mxu0 %v713_v11 }
 0x3a7   : > { %1318 = vmatprep.subr.bf16.mxu0 %v1501_v22 }
 0x3b0   : > { %v1428_v12 = vpop.eup %1427 }
 0x3b1   : > { %v705_v13 = vsel %vm698_vm3, %v1428_v12, 0.0 }
 0x3b2   : > { %706 = vadd.xlane.f32.xlu1 %v705_v13 }
 0x43f   : > { %v707_v14 = vpop.xlane.xlu1 %706 }
 0x440   : > { %1429 = vrcp.f32 %v707_v14 }
 0x44a   : > { %v1430_v15 = vpop.eup %1429 }
 0x44b   : > { %v709_v16 = vmul.f32 %v1430_v15, %v1428_v12 }
 0x44d   : > { %v710_v18 = vpack.c.bf16 %v709_v16, %v709_v16 }
 0x44f   : > { %1315 = vmatmul.mubr.msk.bf16.vlgmr.msra.gmra.mrb[8].mxu0 %vm698_vm3, %v710_v18 }
 0x450   : > { %1319 = vmatpush3.bf16.msra.mxu0 %v1403_v17  ;;  %1322 = vmatprep.mubr.msk.bf16.mxu0 %vm1502_vm2, %v1501_v22 }
 0x451   : > { %1320 = vmatprep.subr.bf16.mxu0 %v1501_v22 }
 0x454   : > { %1321 = vmatpush3.bf16.msra.mxu0 %v1404_v19 }
 0x455   : > { %888 = vmatprep.subr.bf16.mxu0 %v1407_v38 }
 0x522   : > { %v752_v20 = vpop.f32.mrb[8].mxu0 }
 0x523   : > { %v758_v21 = vpack.c.bf16 %v752_v20, %v752_v20  ;;  %v1316_v23 = vpop.f32.mrb[9].mxu0 }
 0x524   : > { %v755_v24 = vpop.f32.mrb[10].mxu0 }
 0x525   : > { %v1317_v25 = vpop.f32.mrb[11].mxu0  ;;  %1323 = vmatmul.mubr.msk.bf16.vlgmr.msra.gmra.mrb[12].mxu0 %vm443_vm1, %v758_v21 }
 0x526   : > { %889 = vmatpush1.bf16.msra.mxu0 %v1405_v39  ;;  %920 = vmatprep.mubr.bf16.mxu0 %v1504_v42  ;;  %v1419_v39 = vld [vmem:[%s1843_s11] sm:$0xff]  }
 0x527   : > { %890 = vmatprep.subr.bf16.mxu0 %v1410_v41  ;;  %v1241_v41 = vld [vmem:[%s1839_s7 + $0x2] ss:$0 sm:$0xff] }
 0x52a   : > { %891 = vmatpush1.bf16.msra.mxu0 %v1408_v40  ;;  %v1420_v40 = vld [vmem:[%s1843_s11 + $0x8] sm:$0xff]  }
 0x52b   : > { %1346 = vmatprep.subr.bf16.mxu0 %v1501_v22 }
 0x5f8   : > { %v817_v27 = vpop.f32.mrb[12].mxu0 }
 0x5f9   : > { %v1708_v28 = vadd.f32 %v1230_v26, %v817_v27  ;;  %v1324_v29 = vpop.f32.mrb[13].mxu0  ;;  %v857_v27 = vsub.s32 0, %v856_v62 }
 0x5fa   : > { %v820_v30 = vpop.f32.mrb[14].mxu0 }
 0x5fb   : > { %v1325_v31 = vpop.f32.mrb[15].mxu0  ;;  %v823_v32 = vsel %vm443_vm1, %v1708_v28, 0.0 }
 0x5fc   : > { %824 = vadd.xlane.f32.xlu1 %v823_v32  ;;  %v858_v31 = vrot.slane %v853_v0, %v857_v27 }
 0x689   : > { %v825_v33 = vpop.xlane.xlu1 %824 }
 0x68a   : > { %v826_v34 = vmul.f32 0.03125, %v825_v33 }
 0x68c   : > { %v827_v35 = vsub.f32 %v1708_v28, %v826_v34 }
 0x68e   : > { %v828_v36 = vmul.f32 %v827_v35, %v827_v35 }
 0x690   : > { %v829_v37 = vsel %vm443_vm1, %v828_v36, 0.0 }
 0x691   : > { %830 = vadd.xlane.f32.xlu1 %v829_v37 }
 0x71e   : > { %v831_v43 = vpop.xlane.xlu1 %830 }
 0x71f   : > { %v832_v44 = vmul.f32 0.03125, %v831_v43 }
 0x721   : > { %v833_v45 = vadd.f32 1e-05, %v832_v44 }
 0x723   : > { %1431 = vrsqrt.f32 %v833_v45 }
 0x72d   : > { %v1432_v46 = vpop.eup %1431 }
 0x72e   : > { %v835_v48 = vmul.f32 %v1432_v46, %v827_v35 }
 0x730   : > { %v841_v50 = vmul.f32 %v1234_v47, %v835_v48 }
 0x732   : > { %v847_v51 = vadd.f32 %v1235_v49, %v841_v50 }
 0x734   : > { %v848_v52 = vpack.c.bf16 %v847_v51, %v847_v51 }
 0x736   : > { %1240 = vmatmul.mubr.msk.bf16.vlgmr.msra.gmra.mrb[16].mxu0 %vm443_vm1, %v848_v52 }
 0x737   : > { %1350 = vmatprep.mubr.msk.bf16.mxu0 %vm1502_vm2, %v1501_v22  ;;  %1347 = vmatpush3.bf16.msra.mxu0 %v1419_v39 }
 0x738   : > { %1348 = vmatprep.subr.bf16.mxu0 %v1501_v22  ;;  %v1250_v22 = vld [vmem:[%s1844_s12] ss:$0 sm:$0xff] }
 0x73b   : > { %1349 = vmatpush3.bf16.msra.mxu0 %v1420_v40 }
 0x809   : > { %v922_v2 = vpop.f32.mrb[16].mxu0 }
 0x80a   : > { %v924_v3 = vpop.f32.mrb[17].mxu0  ;;  %v923_v35 = vadd.f32 %v922_v2, %v858_v31 }
 0x80b   : > { %v925_v4 = vadd.f32 %v924_v3, %v862_v1  ;;  %v926_v5 = vpop.f32.mrb[18].mxu0 }
 0x80c   : > { %v927_v6 = vpop.f32.mrb[19].mxu0 }
 0x80d   : > { %v930_v7 = vmul.f32 0.70710677, %v925_v4  ;;  %v929_v33 = vmul.f32 0.5, %v925_v4 }
 0x80f   : > { %v931_v8 = vand.u32 2147483647, %v930_v7  ;;  %vm951_vm4 = vcmp.ge.f32.partialorder %v930_v7, 0.0 }
 0x811   : > { %v932_v9 = vmul.f32 0.3275911, %v931_v8  ;;  %v945_v11 = vsub.f32 0.0, %v931_v8 }
 0x813   : > { %v933_v10 = vadd.f32 1.0, %v932_v9  ;;  %v946_v13 = vmul.f32 %v945_v11, %v931_v8 }
 0x815   : > { %1433 = vrcp.f32 %v933_v10  ;;  %v947_v16 = vmul.f32 1.442695, %v946_v13 }
 0x817   : > { %1435 = vpow2.f32 %v947_v16 }
 0x81f   : > { %v1434_v12 = vpop.eup %1433 }
 0x820   : > { %v936_v14 = vmul.f32 1.0614054, %v1434_v12 }
 0x821   : > { %v1436_v25 = vpop.eup %1435 }
 0x822   : > { %v937_v15 = vadd.f32 -1.4531521, %v936_v14 }
 0x824   : > { %v938_v17 = vmul.f32 %v1434_v12, %v937_v15 }
 0x826   : > { %v939_v18 = vadd.f32 1.4214138, %v938_v17 }
 0x828   : > { %v940_v19 = vmul.f32 %v1434_v12, %v939_v18 }
 0x82a   : > { %v941_v20 = vadd.f32 -0.28449672, %v940_v19 }
 0x82c   : > { %v942_v21 = vmul.f32 %v1434_v12, %v941_v20 }
 0x82e   : > { %v943_v23 = vadd.f32 0.2548296, %v942_v21 }
 0x830   : > { %v944_v24 = vmul.f32 %v1434_v12, %v943_v23 }
 0x832   : > { %v949_v26 = vmul.f32 %v1436_v25, %v944_v24 }
 0x834   : > { %v950_v29 = vsub.f32 1.0, %v949_v26 }
 0x836   : > { %v952_v30 = vsub.f32 0.0, %v950_v29 }
 0x838   : > { %v953_v32 = vsel %vm951_vm4, %v950_v29, %v952_v30 }
 0x839   : > { %v954_v34 = vadd.f32 1.0, %v953_v32 }
 0x83b   : > { %v955_v36 = vmul.f32 %v954_v34, %v929_v33 }
 0x83d   : > { %v956_v37 = vmul.f32 %v955_v36, %v923_v35 }
 0x83f   : > { %v957_v38 = vpack.c.bf16 %v956_v37, %v956_v37 }
 0x841   : > { %1343 = vmatmul.mubr.bf16.vlgmr.msra.gmra.mrb[4].mxu1 %v957_v38 }
 0x914   : > { %v1061_v42 = vpop.f32.mrb[4].mxu1 }
 0x915   : > { %v1062_v43 = vadd.f32 %v1241_v41, %v1061_v42  ;;  %v1344_v44 = vpop.f32.mrb[5].mxu1 }
 0x916   : > { %v1064_v45 = vpop.f32.mrb[6].mxu1 }
 0x917   : > { %v1067_v46 = vadd.f32 %v1062_v43, %v1708_v28  ;;  %v1345_v47 = vpop.f32.mrb[7].mxu1 }
 0x919   : > { %v1068_v48 = vpack.c.bf16 %v1067_v46, %v1067_v46 }
 0x91b   : > { %1351 = vmatmul.mubr.msk.bf16.vlgmr.msra.gmra.mrb[20].mxu0 %vm443_vm1, %v1068_v48 }
 0x9ee   : > { %v1129_v49 = vpop.f32.mrb[20].mxu0 }
 0x9ef   : > { %v1130_v50 = vadd.f32 %v1250_v22, %v1129_v49  ;;  %v1352_v51 = vpop.f32.mrb[21].mxu0 }
 0x9f0   : > { %v1132_v28 = vpop.f32.mrb[22].mxu0 }
 0x9f1   : > { %1135 = vst [vmem:[%s433_s23] sm:$0xff] %v1130_v50  ;;  %v1353_v52 = vpop.f32.mrb[23].mxu0 }
 0x9f2   : > { %1450 = shalt.err (!%p1447_p3)
}
 0x9f3   : > { %s1451_s16 = scalar_lea.hbm %s1790_s1, 128  ;;  %s1455_s15 = scalar_lea.hbm %s1845_s13, 256 }
 0x9f4   : > { %p1452_p4 = scmp.ne.s32.totalorder %s1790_s1, %s1451_s16  ;;  %p1456_p9 = scmp.lt.u32.totalorder %s1790_s1, %s1845_s13 }
 0x9f5   : > { %p1457_p10 = scmp.lt.u32.totalorder %s1455_s15, %s1451_s16  ;;  %p1459_p12 = scmp.lt.u32.totalorder %s1451_s16, %s1790_s1 }
 0x9f6   : > { %p1453_p7 = pnand %p1452_p4, %p1614_p5 }
 0x9f7   : > { %p1458_p11 = por %p1457_p10, %p1456_p9 }
 0x9f8   : > { %p1454_p8 = pneg %p1453_p7 }
 0x9f9   : > { %p1460_p13 = por %p1459_p12, %p1458_p11 }
 0x9fb   : > { %p1461_p0 = pnand %p1460_p13, %p1454_p8 }
 0x9fd   : > { %1464 = shalt.err (!%p1461_p0)
}
 0x9fe   : > { %1354 = dma.vmem_to_hbm [thread:$0]  (%p1614_p5), %s1792_s24, 128, %s1790_s1, %s1137_s21  }
 0x9ff PF: > { %p1360_p1 = scmp.ge.s32.totalorder %s1499_s28, 2  ;;  %s1162_s29 = sand.u32 1, %s1487_s25  }
 0xa00   : > { %s1163_s30 = scalar_lea.sflag [#allocation3], %s1162_s29 }
 0xa01   : > { %p1357_p2 = pnand %p1360_p1, %p1618_p6 }
 0xa03   : > { %1482 = dma.done.wait (!%p1357_p2), %s1163_s30, 128  }
 0xa04   : > { %1484 = vsyncadd (!%p1357_p2), %s1163_s30, 4294967168  ;;  %p23_p3 = scmp.ge.s32.totalorder %s1601_s14, 4   ;;  %s1852_s25 = smov %s1491_s26 }
 0xa05   : > { %s1853_s26 = smov %s1495_s27  ;;  %s1854_s27 = smov %s1612_s17 }
 0xa06   : > { %s1855_s28 = smov %s1601_s14  ;;  %25 = sbr.rel (!%p23_p3) target bundleno = 6 (0x6), region = 107 }
 0xa0d   :  { %1168 = vsyncpa [#allocation3], 1 }
 0xa0e   :  { %1170 = vsyncpa [#allocation3 + $0x1], 1 }

// kernel: perceiver_forward.2
= control target key start
LH: loop header
LB: loop body
LE: loop exit
PB: predicated region body
PF: predicated region fallthrough
CT: control target
= control target key end

     0   :  { %s7098_s6 = smov 1   ;;  %s7099_s10 = smov 2   ;;  %s8352_s0 = inlined_call_operand.smem [shape: u32[31], index: -1, kind: input, shape index: {}] }
   0x1   :  { %s7169_s5 = sld [smem:[%s8352_s0]]   ;;  %s7100_s14 = smov 3  }
   0x2   :  { %s7174_s9 = sld [smem:[%s8352_s0 + %s7098_s6]]   ;;  %s7101_s18 = smov 4  }
   0x3   :  { %s7179_s13 = sld [smem:[%s8352_s0 + %s7099_s10]]   ;;  %s7102_s22 = smov 5  }
   0x4   :  { %s7184_s17 = sld [smem:[%s8352_s0 + %s7100_s14]]   ;;  %s7103_s26 = smov 6  }
   0x5   :  { %s7189_s21 = sld [smem:[%s8352_s0 + %s7101_s18]]   ;;  %s7104_s30 = smov 7  }
   0x6   :  { %s7194_s25 = sld [smem:[%s8352_s0 + %s7102_s22]]   ;;  %s7105_s4 = smov 8  }
   0x7   :  { %8385 = sst [smem:[#allocation43_spill]] %s7169_s5  ;;  %s7106_s10 = smov 9  }
   0x8   :  { %8386 = sst [smem:[#allocation44_spill]] %s7174_s9  ;;  %s7107_s15 = smov 10  }
   0x9   :  { %s7199_s29 = sld [smem:[%s8352_s0 + %s7103_s26]]   ;;  %s7108_s20 = smov 11  }
   0xa   :  { %8387 = sst [smem:[#allocation45_spill]] %s7184_s17  ;;  %s7109_s26 = smov 12  }
   0xb   :  { %s7204_s3 = sld [smem:[%s8352_s0 + %s7104_s30]]   ;;  %s7110_s1 = smov 13  }
   0xc   :  { %s7209_s8 = sld [smem:[%s8352_s0 + %s7105_s4]]   ;;  %s7111_s7 = smov 14  }
   0xd   :  { %s7214_s14 = sld [smem:[%s8352_s0 + %s7106_s10]]   ;;  %s7113_s22 = smov 16  }
   0xe   :  { %s7219_s19 = sld [smem:[%s8352_s0 + %s7107_s15]]   ;;  %s7112_s15 = smov 15  }
   0xf   :  { %s7224_s24 = sld [smem:[%s8352_s0 + %s7108_s20]]   ;;  %s7114_s28 = smov 17  }
  0x10   :  { %s7229_s30 = sld [smem:[%s8352_s0 + %s7109_s26]]  }
  0x11   :  { %8388 = sst [smem:[#allocation46_spill]] %s7204_s3 }
  0x12   :  { %8389 = sst [smem:[#allocation47_spill]] %s7209_s8 }
  0x13   :  { %8390 = sst [smem:[#allocation48_spill]] %s7214_s14 }
  0x14   :  { %8391 = sst [smem:[#allocation49_spill]] %s7219_s19 }
  0x15   :  { %s7234_s6 = sld [smem:[%s8352_s0 + %s7110_s1]]  }
  0x16   :  { %s7239_s12 = sld [smem:[%s8352_s0 + %s7111_s7]]   ;;  %s7115_s7 = smov 18  }
  0x17   :  { %s7244_s20 = sld [smem:[%s8352_s0 + %s7112_s15]]   ;;  %s7116_s15 = smov 19  }
  0x18   :  { %s7249_s27 = sld [smem:[%s8352_s0 + %s7113_s22]]   ;;  %s7117_s22 = smov 20  }
  0x19   :  { %s7254_s4 = sld [smem:[%s8352_s0 + %s7114_s28]]   ;;  %s7118_s28 = smov 21  }
  0x1a   :  { %s7269_s19 = sld [smem:[%s8352_s0 + %s7117_s22]]   ;;  %s7121_s22 = smov 24  }
  0x1b   :  { %8392 = sst [smem:[#allocation50_spill]] %s7234_s6 }
  0x1c   :  { %8393 = sst [smem:[#allocation51_spill]] %s7239_s12 }
  0x1d   :  { %8394 = sst [smem:[#allocation52_spill]] %s7244_s20 }
  0x1e   :  { %s7259_s6 = sld [smem:[%s8352_s0 + %s7115_s7]]   ;;  %s7119_s7 = smov 22  }
  0x1f   :  { %8395 = sst [smem:[#allocation53_spill]] %s7254_s4 }
  0x20   :  { %s7264_s20 = sld [smem:[%s8352_s0 + %s7116_s15]]   ;;  %s7120_s15 = smov 23  }
  0x21   :  { %8398 = sst [smem:[#allocation56_spill]] %s7269_s19 }
  0x22   :  { %s7274_s4 = sld [smem:[%s8352_s0 + %s7118_s28]]   ;;  %s7122_s28 = smov 25  }
  0x23   :  { %s7279_s14 = sld [smem:[%s8352_s0 + %s7119_s7]]   ;;  %s7123_s7 = smov 26  }
  0x24   :  { %8396 = sst [smem:[#allocation54_spill]] %s7259_s6 }
  0x25   :  { %s7284_s5 = sld [smem:[%s8352_s0 + %s7120_s15]]   ;;  %s7124_s15 = smov 27  }
  0x26   :  { %8397 = sst [smem:[#allocation55_spill]] %s7264_s20 }
  0x27   :  { %s7289_s19 = sld [smem:[%s8352_s0 + %s7121_s22]]   ;;  %s7125_s22 = smov 28  }
  0x28   :  { %8399 = sst [smem:[#allocation57_spill]] %s7274_s4 }
  0x29   :  { %8400 = sst [smem:[#allocation58_spill]] %s7279_s14 }
  0x2a   :  { %s7294_s17 = sld [smem:[%s8352_s0 + %s7122_s28]]   ;;  %s7126_s28 = smov 29  }
  0x2b   :  { %8401 = sst [smem:[#allocation59_spill]] %s7284_s5 }
  0x2c   :  { %s7299_s14 = sld [smem:[%s8352_s0 + %s7123_s7]]   ;;  %s7127_s7 = smov 30  }
  0x2d   :  { %8402 = sst [smem:[#allocation60_spill]] %s7289_s19 }
  0x2e   :  { %s7304_s5 = sld [smem:[%s8352_s0 + %s7124_s15]]  }
  0x2f   :  { %s7309_s19 = sld [smem:[%s8352_s0 + %s7125_s22]]  }
  0x30   :  { %s7314_s20 = sld [smem:[%s8352_s0 + %s7126_s28]]  }
  0x32   :  { %8403 = sst [smem:[#allocation61_spill]] %s7299_s14 }
  0x33   :  { %s7319_s14 = sld [smem:[%s8352_s0 + %s7127_s7]]  }
  0x36   :  { %8404 = sst [smem:[#allocation62_spill]] %s7314_s20 }
  0x39   :  { %8405 = sst [smem:[#allocation63_spill]] %s7319_s14 }
  0x3a   :  { %66 = vsyncpa [#allocation3], 0 }
  0x3b   :  { %67 = vsyncpa [#allocation5], 0 }
  0x3c   :  { %68 = vsyncpa [#allocation9], 0 }
  0x3d   :  { %69 = vsyncpa [#allocation12], 0 }
  0x3e   :  { %70 = vsyncpa [#allocation15], 0 }
  0x3f   :  { %71 = vsyncpa [#allocation18], 0 }
  0x40   :  { %72 = vsyncpa [#allocation21], 0 }
  0x41   :  { %73 = vsyncpa [#allocation24], 0 }
  0x42   :  { %74 = vsyncpa [#allocation27], 0 }
  0x43   :  { %75 = vsyncpa [#allocation30], 0  ;;  %s7321_s15 = smov 0   ;;  %s7323_s16 = smov 0  }
  0x44   :  { %s7325_s18 = smov 0   ;;  %s7327_s22 = smov 0  }
  0x45 LB: > { %s8406_s12 = sld [smem:[#allocation51_spill]]  ;;  %s8407_s8 = sld [smem:[#allocation47_spill]]  ;;  %s7088_s16 = sphi %s7323_s16, %s8467_s16   ;;  %s7084_s15 = sphi %s7321_s15, %s8466_s15   ;;  %s7096_s22 = sphi %s7327_s22, %s8469_s22   ;;  %s7092_s18 = sphi %s7325_s18, %s8468_s18  }
  0x46   : > { %s8408_s6 = sld [smem:[#allocation54_spill]]  ;;  %s8409_s4 = sld [smem:[#allocation57_spill]] }
  0x47   : > { %s8410_s9 = sld [smem:[#allocation44_spill]]  ;;  %s8411_s3 = sld [smem:[#allocation46_spill]] }
  0x48   : > { %s7128_s0 = smov [#allocation2]   ;;  %s7342_s26 = sadd.s32 4294967295, %s7096_s22  }
  0x49   : > { %s764_s23 = sshll.u32 %s7128_s0, 4  ;;  %p5336_p0 = scmp.ge.s32.totalorder %s7096_s22, 1  ;;  %s7347_s23 = int_to_ptr.vmem [resolvable:$true] %s764_s23 }
  0x4a   : > { %p8365_p1 = scmp.eq.s32.totalorder %s7342_s26, 0  ;;  %p752_p2 = scmp.lt.s32.totalorder %s7096_s22, 3 }
  0x4b   : > { %s7129_s1 = smov [#allocation4]   ;;  %s7130_s10 = smov [#allocation8]  }
  0x4c   : > { %p7349_p3 = pnand %p5336_p0, %p752_p2  ;;  %s778_s2 = sshll.u32 %s7129_s1, 4  ;;  %s7361_s2 = int_to_ptr.vmem [resolvable:$true] %s778_s2 }
  0x4d   : > { %s800_s11 = sshll.u32 %s7130_s10, 4  ;;  %s6484_s0 = scalar_lea.hbm %s8410_s9, 128  ;;  %s7363_s11 = int_to_ptr.vmem [resolvable:$true] %s800_s11 }
  0x4e   : > { %s8412_s28 = scalar_select %p7349_p3, 1, 0 }
  0x4f   : > { %p5983_p4 = pneg %p7349_p3  ;;  %p6485_p6 = scmp.ne.s32.totalorder %s8410_s9, %s6484_s0 }
  0x50   : > { %p6491_p10 = scmp.lt.u32.totalorder %s6484_s0, %s8410_s9 }
  0x51   : > { %p7357_p5 = pnand %p5983_p4, %p8365_p1 }
  0x53   : > { %p7369_p7 = pneg %p7357_p5 }
  0x55   : > { %p6487_p8 = pnand %p7369_p7, %p6485_p6 }
  0x57   : > { %p6488_p9 = pneg %p6487_p8 }
  0x59   : > { %p6493_p11 = pnand %p6491_p10, %p6488_p9 }
  0x5b   : > { %6496 = shalt.err (!%p6493_p11)
}
  0x5c   : > { %s6497_s1 = scalar_lea.vmem %s7347_s23, 128  ;;  %p6505_p2 = scmp.lt.s32.totalorder %s7347_s23, %s7347_s23 }
  0x5d   : > { %p6498_p12 = scmp.ne.s32.totalorder %s7347_s23, %s6497_s1  ;;  %p6506_p4 = scmp.lt.s32.totalorder %s6497_s1, %s6497_s1 }
  0x5f   : > { %p6500_p13 = pnand %p6498_p12, %p7369_p7  ;;  %p6507_p1 = por %p6506_p4, %p6505_p2 }
  0x61   : > { %p6501_p0 = pneg %p6500_p13 }
  0x63   : > { %p6508_p3 = pnand %p6507_p1, %p6501_p0 }
  0x65   : > { %6511 = shalt.err (!%p6508_p3)
}
  0x66   : > { %s8368_s10 = smov 64   ;;  %s8370_s0 = smov 4  }
  0x67   : > { %5986 = dma.hbm_to_vmem [thread:$0]  (!%p7357_p5), %s8410_s9, 128, %s7347_s23, [#allocation3], %s8368_s10, %s8368_s10, %s8370_s0  }
  0x68   : > { %s6512_s20 = scalar_lea.hbm %s7179_s13, 128 }
  0x69   : > { %p6513_p6 = scmp.ne.s32.totalorder %s7179_s13, %s6512_s20  ;;  %p6519_p3 = scmp.lt.u32.totalorder %s6512_s20, %s7179_s13 }
  0x6b   : > { %p6515_p8 = pnand %p6513_p6, %p7369_p7 }
  0x6d   : > { %p6516_p1 = pneg %p6515_p8 }
  0x6f   : > { %p6521_p9 = pnand %p6519_p3, %p6516_p1 }
  0x71   : > { %6524 = shalt.err (!%p6521_p9)
}
  0x72   : > { %s6525_s1 = scalar_lea.vmem %s7361_s2, 128  ;;  %p6533_p13 = scmp.lt.s32.totalorder %s7361_s2, %s7361_s2 }
  0x73   : > { %p6526_p10 = scmp.ne.s32.totalorder %s7361_s2, %s6525_s1  ;;  %p6534_p0 = scmp.lt.s32.totalorder %s6525_s1, %s6525_s1 }
  0x75   : > { %p6528_p11 = pnand %p6526_p10, %p7369_p7  ;;  %p6535_p2 = por %p6534_p0, %p6533_p13 }
  0x77   : > { %p6529_p12 = pneg %p6528_p11 }
  0x79   : > { %p6536_p4 = pnand %p6535_p2, %p6529_p12 }
  0x7b   : > { %6539 = shalt.err (!%p6536_p4)
}
  0x7c   : > { %5989 = dma.hbm_to_vmem [thread:$0]  (!%p7357_p5), %s7179_s13, 128, %s7361_s2, [#allocation5]  }
  0x7d   : > { %s6540_s20 = scalar_lea.hbm %s7194_s25, 128 }
  0x7e   : > { %p6541_p6 = scmp.ne.s32.totalorder %s7194_s25, %s6540_s20  ;;  %p6547_p3 = scmp.lt.u32.totalorder %s6540_s20, %s7194_s25 }
  0x80   : > { %p6543_p8 = pnand %p6541_p6, %p7369_p7 }
  0x82   : > { %p6544_p1 = pneg %p6543_p8 }
  0x84   : > { %p6549_p9 = pnand %p6547_p3, %p6544_p1 }
  0x86   : > { %6552 = shalt.err (!%p6549_p9)
}
  0x87   : > { %s6553_s23 = scalar_lea.vmem %s7363_s11, 128  ;;  %p6561_p13 = scmp.lt.s32.totalorder %s7363_s11, %s7363_s11 }
  0x88   : > { %p6554_p10 = scmp.ne.s32.totalorder %s7363_s11, %s6553_s23  ;;  %p6562_p0 = scmp.lt.s32.totalorder %s6553_s23, %s6553_s23 }
  0x8a   : > { %p6556_p11 = pnand %p6554_p10, %p7369_p7  ;;  %p6563_p2 = por %p6562_p0, %p6561_p13 }
  0x8c   : > { %p6557_p12 = pneg %p6556_p11 }
  0x8e   : > { %p6564_p4 = pnand %p6563_p2, %p6557_p12 }
  0x90   : > { %6567 = shalt.err (!%p6564_p4)
}
  0x91   : > { %5995 = dma.hbm_to_vmem [thread:$0]  (!%p7357_p5), %s7194_s25, 128, %s7363_s11, [#allocation9]  }
  0x92   : > { %s7133_s2 = smov [#allocation11]   ;;  %s7134_s20 = smov [#allocation14]  }
  0x93   : > { %s824_s1 = sshll.u32 %s7133_s2, 4  ;;  %s851_s10 = sshll.u32 %s7134_s20, 4  ;;  %s825_s1 = int_to_ptr.vmem [resolvable:$true] %s824_s1  ;;  %s852_s10 = int_to_ptr.vmem [resolvable:$true] %s851_s10 }
  0x94   : > { %s6568_s0 = scalar_lea.hbm %s8411_s3, 64 }
  0x95   : > { %p6569_p6 = scmp.ne.s32.totalorder %s8411_s3, %s6568_s0  ;;  %p6575_p3 = scmp.lt.u32.totalorder %s6568_s0, %s8411_s3 }
  0x97   : > { %p6571_p8 = pnand %p6569_p6, %p7369_p7 }
  0x99   : > { %p6572_p1 = pneg %p6571_p8 }
  0x9b   : > { %p6577_p9 = pnand %p6575_p3, %p6572_p1 }
  0x9d   : > { %6580 = shalt.err (!%p6577_p9)
}
  0x9e   : > { %s6581_s23 = scalar_lea.vmem %s825_s1, 64  ;;  %p6589_p13 = scmp.lt.s32.totalorder %s825_s1, %s825_s1 }
  0x9f   : > { %p6582_p10 = scmp.ne.s32.totalorder %s825_s1, %s6581_s23  ;;  %p6590_p0 = scmp.lt.s32.totalorder %s6581_s23, %s6581_s23 }
  0xa1   : > { %p6584_p11 = pnand %p6582_p10, %p7369_p7  ;;  %p6591_p2 = por %p6590_p0, %p6589_p13 }
  0xa3   : > { %p6585_p12 = pneg %p6584_p11 }
  0xa5   : > { %p6592_p4 = pnand %p6591_p2, %p6585_p12 }
  0xa7   : > { %6595 = shalt.err (!%p6592_p4)
}
  0xa8   : > { %6001 = dma.hbm_to_vmem [thread:$0]  (!%p7357_p5), %s8411_s3, 64, %s825_s1, [#allocation12]  }
  0xa9   : > { %s6596_s11 = scalar_lea.hbm %s7224_s24, 256 }
  0xaa   : > { %p6597_p6 = scmp.ne.s32.totalorder %s7224_s24, %s6596_s11  ;;  %p6603_p3 = scmp.lt.u32.totalorder %s6596_s11, %s7224_s24 }
  0xac   : > { %p6599_p8 = pnand %p6597_p6, %p7369_p7 }
  0xae   : > { %p6600_p1 = pneg %p6599_p8 }
  0xb0   : > { %p6605_p9 = pnand %p6603_p3, %p6600_p1 }
  0xb2   : > { %6608 = shalt.err (!%p6605_p9)
}
  0xb3   : > { %s6609_s0 = scalar_lea.vmem %s852_s10, 256  ;;  %p6617_p13 = scmp.lt.s32.totalorder %s852_s10, %s852_s10 }
  0xb4   : > { %p6610_p10 = scmp.ne.s32.totalorder %s852_s10, %s6609_s0  ;;  %p6618_p0 = scmp.lt.s32.totalorder %s6609_s0, %s6609_s0 }
  0xb6   : > { %p6612_p11 = pnand %p6610_p10, %p7369_p7  ;;  %p6619_p2 = por %p6618_p0, %p6617_p13 }
  0xb8   : > { %p6613_p12 = pneg %p6612_p11 }
  0xba   : > { %p6620_p4 = pnand %p6619_p2, %p6613_p12 }
  0xbc   : > { %6623 = shalt.err (!%p6620_p4)
}
  0xbd   : > { %s8415_s2 = smov 4   ;;  %s8416_s1 = smov 64  }
  0xbe   : > { %6007 = dma.hbm_to_vmem [thread:$0]  (!%p7357_p5), %s7224_s24, 256, %s852_s10, [#allocation15], %s8416_s1, %s8416_s1, %s8415_s2  }
  0xbf   : > { %s7135_s20 = smov [#allocation17]   ;;  %s7136_s11 = smov [#allocation20]  }
  0xc0   : > { %s879_s23 = sshll.u32 %s7135_s20, 4  ;;  %s906_s3 = sshll.u32 %s7136_s11, 4  ;;  %s880_s23 = int_to_ptr.vmem [resolvable:$true] %s879_s23  ;;  %s907_s3 = int_to_ptr.vmem [resolvable:$true] %s906_s3 }
  0xc1   : > { %s6624_s0 = scalar_lea.hbm %s8406_s12, 64 }
  0xc2   : > { %p6625_p6 = scmp.ne.s32.totalorder %s8406_s12, %s6624_s0  ;;  %p6631_p3 = scmp.lt.u32.totalorder %s6624_s0, %s8406_s12 }
  0xc4   : > { %p6627_p8 = pnand %p6625_p6, %p7369_p7 }
  0xc6   : > { %p6628_p1 = pneg %p6627_p8 }
  0xc8   : > { %p6633_p9 = pnand %p6631_p3, %p6628_p1 }
  0xca   : > { %6636 = shalt.err (!%p6633_p9)
}
  0xcb   : > { %s6637_s9 = scalar_lea.vmem %s880_s23, 64  ;;  %p6645_p13 = scmp.lt.s32.totalorder %s880_s23, %s880_s23 }
  0xcc   : > { %p6638_p10 = scmp.ne.s32.totalorder %s880_s23, %s6637_s9  ;;  %p6646_p0 = scmp.lt.s32.totalorder %s6637_s9, %s6637_s9 }
  0xce   : > { %p6640_p11 = pnand %p6638_p10, %p7369_p7  ;;  %p6647_p2 = por %p6646_p0, %p6645_p13 }
  0xd0   : > { %p6641_p12 = pneg %p6640_p11 }
  0xd2   : > { %p6648_p4 = pnand %p6647_p2, %p6641_p12 }
  0xd4   : > { %6651 = shalt.err (!%p6648_p4)
}
  0xd5   : > { %6013 = dma.hbm_to_vmem [thread:$0]  (!%p7357_p5), %s8406_s12, 64, %s880_s23, [#allocation18]  }
  0xd6   : > { %s6652_s10 = scalar_lea.hbm %s8408_s6, 512 }
  0xd7   : > { %p6653_p6 = scmp.ne.s32.totalorder %s8408_s6, %s6652_s10  ;;  %p6659_p3 = scmp.lt.u32.totalorder %s6652_s10, %s8408_s6 }
  0xd9   : > { %p6655_p8 = pnand %p6653_p6, %p7369_p7 }
  0xdb   : > { %p6656_p1 = pneg %p6655_p8 }
  0xdd   : > { %p6661_p9 = pnand %p6659_p3, %p6656_p1 }
  0xdf   : > { %6664 = shalt.err (!%p6661_p9)
}
  0xe0   : > { %s6665_s9 = scalar_lea.vmem %s907_s3, 512  ;;  %p6673_p13 = scmp.lt.s32.totalorder %s907_s3, %s907_s3 }
  0xe1   : > { %p6666_p10 = scmp.ne.s32.totalorder %s907_s3, %s6665_s9  ;;  %p6674_p0 = scmp.lt.s32.totalorder %s6665_s9, %s6665_s9 }
  0xe3   : > { %p6668_p11 = pnand %p6666_p10, %p7369_p7  ;;  %p6675_p2 = por %p6674_p0, %p6673_p13 }
  0xe5   : > { %p6669_p12 = pneg %p6668_p11 }
  0xe7   : > { %p6676_p4 = pnand %p6675_p2, %p6669_p12 }
  0xe9   : > { %6679 = shalt.err (!%p6676_p4)
}
  0xea   : > { %6019 = dma.hbm_to_vmem [thread:$0]  (!%p7357_p5), %s8408_s6, 512, %s907_s3, [#allocation21], %s8416_s1, %s8416_s1, %s8415_s2  }
  0xeb   : > { %s7137_s20 = smov [#allocation23]   ;;  %s7138_s11 = smov [#allocation26]  }
  0xec   : > { %s934_s23 = sshll.u32 %s7137_s20, 4  ;;  %s961_s0 = sshll.u32 %s7138_s11, 4  ;;  %s935_s23 = int_to_ptr.vmem [resolvable:$true] %s934_s23  ;;  %s962_s0 = int_to_ptr.vmem [resolvable:$true] %s961_s0 }
  0xed   : > { %s6680_s10 = scalar_lea.hbm %s8409_s4, 64 }
  0xee   : > { %p6681_p6 = scmp.ne.s32.totalorder %s8409_s4, %s6680_s10  ;;  %p6687_p3 = scmp.lt.u32.totalorder %s6680_s10, %s8409_s4 }
  0xf0   : > { %p6683_p8 = pnand %p6681_p6, %p7369_p7 }
  0xf2   : > { %p6684_p1 = pneg %p6683_p8 }
  0xf4   : > { %p6689_p9 = pnand %p6687_p3, %p6684_p1 }
  0xf6   : > { %6692 = shalt.err (!%p6689_p9)
}
  0xf7   : > { %s6693_s9 = scalar_lea.vmem %s935_s23, 64  ;;  %p6701_p13 = scmp.lt.s32.totalorder %s935_s23, %s935_s23 }
  0xf8   : > { %p6694_p10 = scmp.ne.s32.totalorder %s935_s23, %s6693_s9  ;;  %p6702_p0 = scmp.lt.s32.totalorder %s6693_s9, %s6693_s9 }
  0xfa   : > { %p6696_p11 = pnand %p6694_p10, %p7369_p7  ;;  %p6703_p2 = por %p6702_p0, %p6701_p13 }
  0xfc   : > { %p6697_p12 = pneg %p6696_p11 }
  0xfe   : > { %p6704_p4 = pnand %p6703_p2, %p6697_p12 }
 0x100   : > { %6707 = shalt.err (!%p6704_p4)
}
 0x101   : > { %6025 = dma.hbm_to_vmem [thread:$0]  (!%p7357_p5), %s8409_s4, 64, %s935_s23, [#allocation24]  }
 0x102   : > { %s6708_s3 = scalar_lea.hbm %s7294_s17, 512 }
 0x103   : > { %p6709_p6 = scmp.ne.s32.totalorder %s7294_s17, %s6708_s3  ;;  %p6715_p3 = scmp.lt.u32.totalorder %s6708_s3, %s7294_s17 }
 0x105   : > { %p6711_p8 = pnand %p6709_p6, %p7369_p7 }
 0x107   : > { %p6712_p1 = pneg %p6711_p8 }
 0x109   : > { %p6717_p9 = pnand %p6715_p3, %p6712_p1 }
 0x10b   : > { %6720 = shalt.err (!%p6717_p9)
}
 0x10c   : > { %s6721_s20 = scalar_lea.vmem %s962_s0, 512  ;;  %p6729_p13 = scmp.lt.s32.totalorder %s962_s0, %s962_s0 }
 0x10d   : > { %p6722_p10 = scmp.ne.s32.totalorder %s962_s0, %s6721_s20  ;;  %p6730_p0 = scmp.lt.s32.totalorder %s6721_s20, %s6721_s20 }
 0x10f   : > { %p6724_p11 = pnand %p6722_p10, %p7369_p7  ;;  %p6731_p2 = por %p6730_p0, %p6729_p13 }
 0x111   : > { %p6725_p12 = pneg %p6724_p11 }
 0x113   : > { %p6732_p4 = pnand %p6731_p2, %p6725_p12 }
 0x115   : > { %6735 = shalt.err (!%p6732_p4)
}
 0x116   : > { %6031 = dma.hbm_to_vmem [thread:$0]  (!%p7357_p5), %s7294_s17, 512, %s962_s0, [#allocation27], %s8416_s1, %s8416_s1, %s8415_s2  }
 0x117   : > { %s7139_s23 = smov [#allocation7]   ;;  %s7140_s10 = smov [#allocation10]  }
 0x118   : > { %s789_s11 = sshll.u32 %s7139_s23, 4  ;;  %s810_s9 = sshll.u32 %s7140_s10, 4  ;;  %s790_s11 = int_to_ptr.vmem [resolvable:$true] %s789_s11  ;;  %s811_s9 = int_to_ptr.vmem [resolvable:$true] %s810_s9 }
 0x119   : > { %s6736_s3 = scalar_lea.hbm %s7189_s21, 64 }
 0x11a   : > { %p6737_p6 = scmp.ne.s32.totalorder %s7189_s21, %s6736_s3  ;;  %p6743_p3 = scmp.lt.u32.totalorder %s6736_s3, %s7189_s21 }
 0x11c   : > { %p6739_p8 = pnand %p6737_p6, %p7369_p7 }
 0x11e   : > { %p6740_p1 = pneg %p6739_p8 }
 0x120   : > { %p6745_p9 = pnand %p6743_p3, %p6740_p1 }
 0x122   : > { %6748 = shalt.err (!%p6745_p9)
}
 0x123   : > { %s6749_s20 = scalar_lea.vmem %s790_s11, 64  ;;  %p6757_p13 = scmp.lt.s32.totalorder %s790_s11, %s790_s11 }
 0x124   : > { %p6750_p10 = scmp.ne.s32.totalorder %s790_s11, %s6749_s20  ;;  %p6758_p0 = scmp.lt.s32.totalorder %s6749_s20, %s6749_s20 }
 0x126   : > { %p6752_p11 = pnand %p6750_p10, %p7369_p7  ;;  %p6759_p2 = por %p6758_p0, %p6757_p13 }
 0x128   : > { %p6753_p12 = pneg %p6752_p11 }
 0x12a   : > { %p6760_p4 = pnand %p6759_p2, %p6753_p12 }
 0x12c   : > { %6763 = shalt.err (!%p6760_p4)
}
 0x12d   : > { %5992 = dma.hbm_to_vmem [thread:$0]  (!%p7357_p5), %s7189_s21, 64, %s790_s11, [#allocation5]  }
 0x12e   : > { %s6764_s2 = scalar_lea.hbm %s7199_s29, 256 }
 0x12f   : > { %p6765_p6 = scmp.ne.s32.totalorder %s7199_s29, %s6764_s2  ;;  %p6771_p3 = scmp.lt.u32.totalorder %s6764_s2, %s7199_s29 }
 0x131   : > { %p6767_p8 = pnand %p6765_p6, %p7369_p7 }
 0x133   : > { %p6768_p1 = pneg %p6767_p8 }
 0x135   : > { %p6773_p9 = pnand %p6771_p3, %p6768_p1 }
 0x137   : > { %6776 = shalt.err (!%p6773_p9)
}
 0x138   : > { %s6777_s1 = scalar_lea.vmem %s811_s9, 256  ;;  %p6785_p13 = scmp.lt.s32.totalorder %s811_s9, %s811_s9 }
 0x139   : > { %p6778_p10 = scmp.ne.s32.totalorder %s811_s9, %s6777_s1  ;;  %p6786_p0 = scmp.lt.s32.totalorder %s6777_s1, %s6777_s1 }
 0x13b   : > { %p6780_p11 = pnand %p6778_p10, %p7369_p7  ;;  %p6787_p2 = por %p6786_p0, %p6785_p13 }
 0x13d   : > { %p6781_p12 = pneg %p6780_p11 }
 0x13f   : > { %p6788_p4 = pnand %p6787_p2, %p6781_p12 }
 0x141   : > { %6791 = shalt.err (!%p6788_p4)
}
 0x142   : > { %s7141_s0 = smov 128   ;;  %s7142_s23 = smov 8  }
 0x143   : > { %5998 = dma.hbm_to_vmem [thread:$0]  (!%p7357_p5), %s7199_s29, 256, %s811_s9, [#allocation9], %s7141_s0, %s7141_s0, %s7142_s23  }
 0x144   : > { %s7143_s11 = smov [#allocation13]   ;;  %s7144_s3 = smov [#allocation16]  }
 0x145   : > { %s835_s10 = sshll.u32 %s7143_s11, 4  ;;  %s865_s20 = sshll.u32 %s7144_s3, 4  ;;  %s836_s10 = int_to_ptr.vmem [resolvable:$true] %s835_s10  ;;  %s866_s20 = int_to_ptr.vmem [resolvable:$true] %s865_s20 }
 0x146   : > { %s6792_s2 = scalar_lea.hbm %s8407_s8, 32 }
 0x147   : > { %p6793_p6 = scmp.ne.s32.totalorder %s8407_s8, %s6792_s2  ;;  %p6799_p3 = scmp.lt.u32.totalorder %s6792_s2, %s8407_s8 }
 0x149   : > { %p6795_p8 = pnand %p6793_p6, %p7369_p7 }
 0x14b   : > { %p6796_p1 = pneg %p6795_p8 }
 0x14d   : > { %p6801_p9 = pnand %p6799_p3, %p6796_p1 }
 0x14f   : > { %6804 = shalt.err (!%p6801_p9)
}
 0x150   : > { %s6805_s1 = scalar_lea.vmem %s836_s10, 32  ;;  %p6813_p13 = scmp.lt.s32.totalorder %s836_s10, %s836_s10 }
 0x151   : > { %p6806_p10 = scmp.ne.s32.totalorder %s836_s10, %s6805_s1  ;;  %p6814_p0 = scmp.lt.s32.totalorder %s6805_s1, %s6805_s1 }
 0x153   : > { %p6808_p11 = pnand %p6806_p10, %p7369_p7  ;;  %p6815_p2 = por %p6814_p0, %p6813_p13 }
 0x155   : > { %p6809_p12 = pneg %p6808_p11 }
 0x157   : > { %p6816_p4 = pnand %p6815_p2, %p6809_p12 }
 0x159   : > { %6819 = shalt.err (!%p6816_p4)
}
 0x15a   : > { %6004 = dma.hbm_to_vmem [thread:$0]  (!%p7357_p5), %s8407_s8, 32, %s836_s10, [#allocation12]  }
 0x15b   : > { %s6820_s9 = scalar_lea.hbm %s7229_s30, 64 }
 0x15c   : > { %p6821_p6 = scmp.ne.s32.totalorder %s7229_s30, %s6820_s9  ;;  %p6827_p3 = scmp.lt.u32.totalorder %s6820_s9, %s7229_s30 }
 0x15e   : > { %p6823_p8 = pnand %p6821_p6, %p7369_p7 }
 0x160   : > { %p6824_p1 = pneg %p6823_p8 }
 0x162   : > { %p6829_p9 = pnand %p6827_p3, %p6824_p1 }
 0x164   : > { %6832 = shalt.err (!%p6829_p9)
}
 0x165   : > { %s6833_s0 = scalar_lea.vmem %s866_s20, 64  ;;  %p6841_p13 = scmp.lt.s32.totalorder %s866_s20, %s866_s20 }
 0x166   : > { %p6834_p10 = scmp.ne.s32.totalorder %s866_s20, %s6833_s0  ;;  %p6842_p0 = scmp.lt.s32.totalorder %s6833_s0, %s6833_s0 }
 0x168   : > { %p6836_p11 = pnand %p6834_p10, %p7369_p7  ;;  %p6843_p2 = por %p6842_p0, %p6841_p13 }
 0x16a   : > { %p6837_p12 = pneg %p6836_p11 }
 0x16c   : > { %p6844_p4 = pnand %p6843_p2, %p6837_p12 }
 0x16e   : > { %6847 = shalt.err (!%p6844_p4)
}
 0x16f   : > { %6010 = dma.hbm_to_vmem [thread:$0]  (!%p7357_p5), %s7229_s30, 64, %s866_s20, [#allocation15]  }
 0x170   : > { %s7145_s23 = smov [#allocation19]   ;;  %s7146_s10 = smov [#allocation22]  }
 0x171   : > { %s893_s11 = sshll.u32 %s7145_s23, 4  ;;  %s920_s3 = sshll.u32 %s7146_s10, 4  ;;  %s894_s11 = int_to_ptr.vmem [resolvable:$true] %s893_s11  ;;  %s921_s3 = int_to_ptr.vmem [resolvable:$true] %s920_s3 }
 0x172   : > { %s6848_s2 = scalar_lea.hbm %s7249_s27, 64 }
 0x173   : > { %p6849_p6 = scmp.ne.s32.totalorder %s7249_s27, %s6848_s2  ;;  %p6855_p3 = scmp.lt.u32.totalorder %s6848_s2, %s7249_s27 }
 0x175   : > { %p6851_p8 = pnand %p6849_p6, %p7369_p7 }
 0x177   : > { %p6852_p1 = pneg %p6851_p8 }
 0x179   : > { %p6857_p9 = pnand %p6855_p3, %p6852_p1 }
 0x17b   : > { %6860 = shalt.err (!%p6857_p9)
}
 0x17c   : > { %s6861_s1 = scalar_lea.vmem %s894_s11, 64  ;;  %p6869_p13 = scmp.lt.s32.totalorder %s894_s11, %s894_s11 }
 0x17d   : > { %p6862_p10 = scmp.ne.s32.totalorder %s894_s11, %s6861_s1  ;;  %p6870_p0 = scmp.lt.s32.totalorder %s6861_s1, %s6861_s1 }
 0x17f   : > { %p6864_p11 = pnand %p6862_p10, %p7369_p7  ;;  %p6871_p2 = por %p6870_p0, %p6869_p13 }
 0x181   : > { %p6865_p12 = pneg %p6864_p11 }
 0x183   : > { %p6872_p4 = pnand %p6871_p2, %p6865_p12 }
 0x185   : > { %6875 = shalt.err (!%p6872_p4)
}
 0x186   : > { %s8417_s20 = sld [smem:[#allocation55_spill]] }
 0x187   : > { %6016 = dma.hbm_to_vmem [thread:$0]  (!%p7357_p5), %s7249_s27, 64, %s894_s11, [#allocation18]  }
 0x18c   : > { %s6876_s9 = scalar_lea.hbm %s8417_s20, 64 }
 0x18d   : > { %p6877_p6 = scmp.ne.s32.totalorder %s8417_s20, %s6876_s9  ;;  %p6883_p3 = scmp.lt.u32.totalorder %s6876_s9, %s8417_s20 }
 0x18f   : > { %p6879_p8 = pnand %p6877_p6, %p7369_p7 }
 0x191   : > { %p6880_p1 = pneg %p6879_p8 }
 0x193   : > { %p6885_p9 = pnand %p6883_p3, %p6880_p1 }
 0x195   : > { %6888 = shalt.err (!%p6885_p9)
}
 0x196   : > { %s6889_s0 = scalar_lea.vmem %s921_s3, 64  ;;  %p6897_p13 = scmp.lt.s32.totalorder %s921_s3, %s921_s3 }
 0x197   : > { %p6890_p10 = scmp.ne.s32.totalorder %s921_s3, %s6889_s0  ;;  %p6898_p0 = scmp.lt.s32.totalorder %s6889_s0, %s6889_s0 }
 0x199   : > { %p6892_p11 = pnand %p6890_p10, %p7369_p7  ;;  %p6899_p2 = por %p6898_p0, %p6897_p13 }
 0x19b   : > { %p6893_p12 = pneg %p6892_p11 }
 0x19d   : > { %p6900_p4 = pnand %p6899_p2, %p6893_p12 }
 0x19f   : > { %6903 = shalt.err (!%p6900_p4)
}
 0x1a0   : > { %s8418_s23 = sld [smem:[#allocation59_spill]]  ;;  %s7147_s11 = smov [#allocation25]  }
 0x1a1   : > { %6022 = dma.hbm_to_vmem [thread:$0]  (!%p7357_p5), %s8417_s20, 64, %s921_s3, [#allocation21]  }
 0x1a2   : > { %s948_s10 = sshll.u32 %s7147_s11, 4  ;;  %s7148_s2 = smov [#allocation28]   ;;  %s949_s10 = int_to_ptr.vmem [resolvable:$true] %s948_s10 }
 0x1a3   : > { %s975_s1 = sshll.u32 %s7148_s2, 4  ;;  %s976_s1 = int_to_ptr.vmem [resolvable:$true] %s975_s1 }
 0x1a6   : > { %s6904_s9 = scalar_lea.hbm %s8418_s23, 64 }
 0x1a7   : > { %p6905_p6 = scmp.ne.s32.totalorder %s8418_s23, %s6904_s9  ;;  %p6911_p3 = scmp.lt.u32.totalorder %s6904_s9, %s8418_s23 }
 0x1a9   : > { %p6907_p8 = pnand %p6905_p6, %p7369_p7 }
 0x1ab   : > { %p6908_p1 = pneg %p6907_p8 }
 0x1ad   : > { %p6913_p9 = pnand %p6911_p3, %p6908_p1 }
 0x1af   : > { %6916 = shalt.err (!%p6913_p9)
}
 0x1b0   : > { %s6917_s0 = scalar_lea.vmem %s949_s10, 64  ;;  %p6925_p13 = scmp.lt.s32.totalorder %s949_s10, %s949_s10 }
 0x1b1   : > { %p6918_p10 = scmp.ne.s32.totalorder %s949_s10, %s6917_s0  ;;  %p6926_p0 = scmp.lt.s32.totalorder %s6917_s0, %s6917_s0 }
 0x1b3   : > { %p6920_p11 = pnand %p6918_p10, %p7369_p7  ;;  %p6927_p2 = por %p6926_p0, %p6925_p13 }
 0x1b5   : > { %p6921_p12 = pneg %p6920_p11 }
 0x1b7   : > { %p6928_p4 = pnand %p6927_p2, %p6921_p12 }
 0x1b9   : > { %6931 = shalt.err (!%p6928_p4)
}
 0x1ba   : > { %s8419_s3 = sld [smem:[#allocation61_spill]] }
 0x1bb   : > { %6028 = dma.hbm_to_vmem [thread:$0]  (!%p7357_p5), %s8418_s23, 64, %s949_s10, [#allocation24]  }
 0x1c0   : > { %s6932_s11 = scalar_lea.hbm %s8419_s3, 64 }
 0x1c1   : > { %p6933_p6 = scmp.ne.s32.totalorder %s8419_s3, %s6932_s11  ;;  %p6939_p3 = scmp.lt.u32.totalorder %s6932_s11, %s8419_s3 }
 0x1c3   : > { %p6935_p8 = pnand %p6933_p6, %p7369_p7 }
 0x1c5   : > { %p6936_p1 = pneg %p6935_p8 }
 0x1c7   : > { %p6941_p9 = pnand %p6939_p3, %p6936_p1 }
 0x1c9   : > { %6944 = shalt.err (!%p6941_p9)
}
 0x1ca   : > { %s6945_s2 = scalar_lea.vmem %s976_s1, 64  ;;  %p6953_p13 = scmp.lt.s32.totalorder %s976_s1, %s976_s1 }
 0x1cb   : > { %p6946_p10 = scmp.ne.s32.totalorder %s976_s1, %s6945_s2  ;;  %p6954_p0 = scmp.lt.s32.totalorder %s6945_s2, %s6945_s2 }
 0x1cd   : > { %p6948_p11 = pnand %p6946_p10, %p7369_p7  ;;  %p6955_p2 = por %p6954_p0, %p6953_p13 }
 0x1cf   : > { %p6949_p12 = pneg %p6948_p11 }
 0x1d1   : > { %p6956_p4 = pnand %p6955_p2, %p6949_p12 }
 0x1d3   : > { %6959 = shalt.err (!%p6956_p4)
}
 0x1d4   : > { %6034 = dma.hbm_to_vmem [thread:$0]  (!%p7357_p5), %s8419_s3, 64, %s976_s1, [#allocation27]  }
 0x1d5   : > { %s7149_s10 = smov [#allocation29]   ;;  %s6960_s0 = scalar_lea.hbm %s7309_s19, 64 }
 0x1d6   : > { %s989_s9 = sshll.u32 %s7149_s10, 4  ;;  %p6961_p6 = scmp.ne.s32.totalorder %s7309_s19, %s6960_s0  ;;  %s990_s9 = int_to_ptr.vmem [resolvable:$true] %s989_s9 }
 0x1d7   : > { %p6967_p3 = scmp.lt.u32.totalorder %s6960_s0, %s7309_s19 }
 0x1d8   : > { %p6963_p8 = pnand %p6961_p6, %p7369_p7 }
 0x1da   : > { %p6964_p1 = pneg %p6963_p8 }
 0x1dc   : > { %p6969_p9 = pnand %p6967_p3, %p6964_p1 }
 0x1de   : > { %6972 = shalt.err (!%p6969_p9)
}
 0x1df   : > { %s6973_s11 = scalar_lea.vmem %s990_s9, 64  ;;  %p6981_p13 = scmp.lt.s32.totalorder %s990_s9, %s990_s9 }
 0x1e0   : > { %p6974_p10 = scmp.ne.s32.totalorder %s990_s9, %s6973_s11  ;;  %p6982_p0 = scmp.lt.s32.totalorder %s6973_s11, %s6973_s11 }
 0x1e2   : > { %p6976_p11 = pnand %p6974_p10, %p7369_p7  ;;  %p6983_p2 = por %p6982_p0, %p6981_p13 }
 0x1e4   : > { %p6977_p12 = pneg %p6976_p11 }
 0x1e6   : > { %p6984_p4 = pnand %p6983_p2, %p6977_p12 }
 0x1e8   : > { %6987 = shalt.err (!%p6984_p4)
}
 0x1e9   : > { %6037 = dma.hbm_to_vmem [thread:$0]  (!%p7357_p5), %s7309_s19, 64, %s990_s9, [#allocation30]  }
 0x1ea   : > { %s8420_s14 = sld [smem:[#allocation45_spill]]  ;;  %s7579_s1 = sadd.s32 1, %s7096_s22  }
 0x1eb   : > { %s156_s7 = sadd.s32 1, %s7092_s18  ;;  %s153_s2 = ssub.s32 %s7096_s22, %s7579_s1 }
 0x1ec   : > { %p163_p7 = scmp.ne.s32.totalorder %s7092_s18, %s7088_s16  ;;  %p154_p6 = scmp.eq.s32.totalorder %s153_s2, 0 }
 0x1ed   : > { %p164_p8 = scmp.eq.s32.totalorder %s7096_s22, 0  ;;  %p169_p1 = scmp.ne.s32.totalorder %s7088_s16, %s7084_s15 }
 0x1ee   : > { %p6060_p3 = scmp.lt.s32.totalorder %s7096_s22, 2  ;;  %p8421_p10 = scmp.eq.s32.totalorder %s7342_s26, 0 }
 0x1ef   : > { %s7591_s10 = scalar_select %p154_p6, %s7092_s18, %s156_s7  }
 0x1f0   : > { %p165_p9 = por %p164_p8, %p163_p7  ;;  %p7595_p11 = por %p8421_p10, %p169_p1 }
 0x1f1   : > { %s1010_s9 = sand.u32 1, %s7096_s22   ;;  %s1012_s11 = sand.u32 1, %s7092_s18  }
 0x1f2   : > { %s8422_s0 = scalar_select %p7595_p11, 1, 0 }
 0x1f3   : > { %s5356_s3 = sshll.u32 %s1012_s11, 3  ;;  %s5357_s4 = sshll.u32 %s7096_s22, 7 }
 0x1f4   : > { %s7603_s6 = scalar_lea.hbm %s8420_s14, %s5357_s4  ;;  %s1014_s15 = scalar_lea.vmem [#allocation6], %s5356_s3 }
 0x1f5   : > { %s1021_s7 = sshll.u32 %s1014_s15, 4  ;;  %p7607_p5 = pnand %p6060_p3, %p165_p9  ;;  %s7605_s7 = int_to_ptr.vmem [resolvable:$true] %s1021_s7 }
 0x1f6   : > { %s1011_s8 = scalar_lea.sflag [#allocation3], %s1010_s9  ;;  %s6988_s12 = scalar_lea.hbm %s7603_s6, 128 }
 0x1f7   : > { %p6989_p12 = scmp.ne.s32.totalorder %s7603_s6, %s6988_s12  ;;  %p6990_p13 = pneg %p7607_p5 }
 0x1f8   : > { %s6993_s4 = scalar_lea.hbm %s8420_s14, 256  ;;  %p6994_p4 = scmp.lt.u32.totalorder %s7603_s6, %s8420_s14 }
 0x1f9   : > { %p6991_p0 = pnand %p6990_p13, %p6989_p12  ;;  %p6995_p7 = scmp.lt.u32.totalorder %s6993_s4, %s6988_s12 }
 0x1fa   : > { %p6997_p8 = scmp.lt.u32.totalorder %s6988_s12, %s7603_s6 }
 0x1fb   : > { %p6992_p2 = pneg %p6991_p0  ;;  %p6996_p6 = por %p6995_p7, %p6994_p4 }
 0x1fd   : > { %p6998_p1 = por %p6997_p8, %p6996_p6 }
 0x1ff   : > { %p6999_p3 = pnand %p6998_p1, %p6992_p2 }
 0x201   : > { %7002 = shalt.err (!%p6999_p3)
}
 0x202   : > { %s7003_s22 = scalar_lea.vmem %s7605_s7, 128  ;;  %s7150_s3 = smov [#allocation6]  }
 0x203   : > { %p7004_p9 = scmp.ne.s32.totalorder %s7605_s7, %s7003_s22  ;;  %s7008_s9 = sshll.u32 %s7150_s3, 4  ;;  %s7009_s9 = int_to_ptr.vmem [resolvable:$false] %s7008_s9 }
 0x204   : > { %s7010_s11 = scalar_lea.vmem %s7009_s9, 256  ;;  %p7011_p12 = scmp.lt.s32.totalorder %s7605_s7, %s7009_s9 }
 0x205   : > { %p7006_p10 = pnand %p7004_p9, %p6990_p13  ;;  %p7012_p0 = scmp.lt.s32.totalorder %s7010_s11, %s7003_s22 }
 0x207   : > { %p7007_p11 = pneg %p7006_p10  ;;  %p7013_p4 = por %p7012_p0, %p7011_p12 }
 0x209   : > { %p7014_p7 = pnand %p7013_p4, %p7007_p11 }
 0x20b   : > { %7017 = shalt.err (!%p7014_p7)
}
 0x20c   : > { %6041 = dma.hbm_to_vmem [thread:$0]  (!%p7607_p5), %s7603_s6, 128, %s7605_s7, %s1011_s8  }
 0x20d   : > { %p8424_p2 = scmp.ne.s32.totalorder %s8412_s28, 0 }
 0x20e   : > { %p8425_p13 = scmp.eq.s32.totalorder (!%p8424_p2), %s7342_s26, 0 }
 0x20f   : > { %1030 = sbr.rel (%p8424_p2) target bundleno = 10602 (0x296a), region = 140 }
 0x216   : > { %7035 = dma.done.wait (%p8425_p13), [#allocation3], 128   ;;  %p8426_p6 = pmov %p8425_p13 }
 0x218   : > { %7037 = vsyncadd (%p8426_p6), [#allocation3], 4294967168  ;;  %p8427_p8 = pmov %p8426_p6 }
 0x219   : > { %p8428_p11 = pmov %p8426_p6 }
 0x21a   : > { %7039 = dma.done.wait (%p8427_p8), [#allocation5], 128  }
 0x21b   : > { %7041 = vsyncadd (%p8428_p11), [#allocation5], 4294967168  ;;  %s1040_s12 = sand.u32 1, %s7342_s26   ;;  %s1042_s8 = sand.u32 1, %s7088_s16  }
 0x21c   : > { %s7644_s6 = sshll.u32 %s1042_s8, 3  ;;  %s1041_s28 = scalar_lea.sflag [#allocation3], %s1040_s12 }
 0x21d   : > { %s1044_s15 = scalar_lea.vmem [#allocation6], %s7644_s6  ;;  %p8429_p5 = scmp.ne.s32.totalorder %s8422_s0, 0 }
 0x21f   : > { %7043 = dma.done.wait (%p8429_p5), %s1041_s28, 128  }
 0x220   : > { %7045 = vsyncadd (%p8429_p5), %s1041_s28, 4294967168  ;;  %p8430_p1 = pmov %p8426_p6 }
 0x222   : > { %7047 = dma.done.wait (%p8430_p1), [#allocation5], 64   ;;  %p8431_p3 = pmov %p8430_p1 }
 0x223   : > { %p8432_p9 = pmov %p8430_p1 }
 0x224   : > { %7049 = vsyncadd (%p8431_p3), [#allocation5], 4294967232 }
 0x225   : > { %7051 = dma.done.wait (%p8432_p9), [#allocation9], 384   ;;  %p8433_p10 = pmov %p8430_p1 }
 0x226   : > { %p8434_p12 = pmov %p8430_p1 }
 0x227   : > { %7053 = vsyncadd (%p8433_p10), [#allocation9], 4294966912 }
 0x228   : > { %7055 = dma.done.wait (%p8434_p12), [#allocation12], 96   ;;  %p8435_p0 = pmov %p8430_p1 }
 0x22a   : > { %7057 = vsyncadd (%p8435_p0), [#allocation12], 4294967200  ;;  %p8436_p4 = pmov %p8435_p0 }
 0x22b   : > { %p8437_p7 = pmov %p8435_p0 }
 0x22c   : > { %7059 = dma.done.wait (%p8436_p4), [#allocation15], 320  }
 0x22d   : > { %7061 = vsyncadd (%p8437_p7), [#allocation15], 4294966976  ;;  %p8438_p2 = pmov %p8435_p0 }
 0x22e   : > { %p8439_p13 = pmov %p8435_p0 }
 0x22f   : > { %7063 = dma.done.wait (%p8438_p2), [#allocation18], 128  }
 0x230   : > { %7065 = vsyncadd (%p8439_p13), [#allocation18], 4294967168  ;;  %p8440_p6 = pmov %p8435_p0 }
 0x231   : > { %p8441_p8 = pmov %p8435_p0 }
 0x232   : > { %7067 = dma.done.wait (%p8440_p6), [#allocation21], 576  }
 0x233   : > { %7069 = vsyncadd (%p8441_p8), [#allocation21], 4294966720  ;;  %p8442_p11 = pmov %p8435_p0 }
 0x234   : > { %p8443_p5 = pmov %p8435_p0 }
 0x235   : > { %7071 = dma.done.wait (%p8442_p11), [#allocation24], 128  }
 0x236   : > { %7073 = vsyncadd (%p8443_p5), [#allocation24], 4294967168  ;;  %p8444_p1 = pmov %p8435_p0 }
 0x237   : > { %p8445_p3 = pmov %p8435_p0 }
 0x238   : > { %7075 = dma.done.wait (%p8444_p1), [#allocation27], 576  }
 0x239   : > { %7077 = vsyncadd (%p8445_p3), [#allocation27], 4294966720  ;;  %p8446_p9 = pmov %p8435_p0 }
 0x23a   : > { %p8447_p10 = pmov %p8435_p0 }
 0x23b   : > { %7079 = dma.done.wait (%p8446_p9), [#allocation30], 64  }
 0x23c   : > { %7081 = vsyncadd (%p8447_p10), [#allocation30], 4294967232  ;;  %s8448_s0 = sld [smem:[#allocation43_spill]]  ;;  %p1189_p12 = scmp.lt.s32.totalorder %s7342_s26, 1  ;;  %v7151_v0 = vmov 0.0   ;;  %vm7152_vm0 = vmmov 0  }
 0x23d   : > { %5709 = vmatprep.subr.bf16.mxu0 %v7151_v0  ;;  %5715 = vmatprep.subr.bf16.mxu1 %v7151_v0  ;;  %vm1262_vm1 = vcmask 1043456   ;;  %v6173_v1 = vld [vmem:[#allocation2] sm:$0xff]   ;;  %vm1308_vm2 = vcmask 523264   ;;  %vm1210_vm3 = vcmask 130048   ;;  %v1254_v4 = vld [vmem:[%s1044_s15] sm:$0xff]  ;;  %vm1258_vm4 = vcmask 64512  }
 0x23e   : > { %5711 = vmatprep.mubr.msk.bf16.mxu0 %vm7152_vm0, %v7151_v0  ;;  %s8471_s26 = smov (!%p1189_p12, %s7342_s26), 1  ;;  %5717 = vmatprep.mubr.msk.bf16.mxu1 %vm7152_vm0, %v7151_v0  ;;  %v1256_v2 = vld [vmem:[#allocation7] sm:$0xf]  ;;  %v1255_v7 = vpack.c.bf16 %v1254_v4, %v1254_v4  ;;  %v7701_v8 = vld [vmem:[#allocation10] sm:$0xff]  ;;  %v7703_v9 = vld [vmem:[#allocation10 + $0x8] sm:$0xff]  ;;  %s8449_s4 = sld [smem:[#allocation48_spill]] }
 0x23f   : > { %s5378_s7 = sshll.u32 %s8471_s26, 3  ;;  %5710 = vmatpush3.bf16.msra.mxu0 %v6173_v1  ;;  %v1264_v5 = vsel %vm1262_vm1, %v1256_v2, 0  ;;  %v1309_v10 = vsel %vm1308_vm2, %v7701_v8, 0.0  ;;  %v1312_v11 = vsel %vm1308_vm2, %v7703_v9, 0.0  ;;  %v1203_v19 = vld [vmem:[#allocation4] sm:$0xff]  ;;  %s8450_s22 = sld [smem:[#allocation49_spill]] }
 0x240   : > { %5716 = vmatpush3.bf16.msra.mxu1 %v1264_v5  ;;  %5721 = vmatprep.subr.bf16.mxu0 %v7151_v0  ;;  %v1257_v20 = vld [vmem:[#allocation8] sm:$0xff]  ;;  %v5384_v58 = vld [vmem:[#allocation11] ss:$0 sm:$0xff]  ;;  %v5385_v62 = vld [vmem:[#allocation11 + $0x1] ss:$0 sm:$0xff]  ;;  %vm1546_vm5 = vcmask 261120  }
 0x241   : > { %1310 = vadd.xlane.f32.xlu0 %v1309_v10  ;;  %5751 = vmatprep.subr.bf16.mxu1 %v7151_v0  ;;  %s8383_s9 = smov 96   ;;  %s8452_s11 = sld [smem:[#allocation50_spill]] }
 0x242   : > { %s1192_s2 = scalar_lea.vmem %s8448_s0, %s5378_s7  ;;  %s8453_s12 = sld [smem:[#allocation52_spill]] }
 0x243   : > { %v1199_v3 = vld [vmem:[%s1192_s2] sm:$0xff]  ;;  %5718 = vmatmul.mubr.msk.bf16.vlgmr.msra.gmra.mrb[0].mxu1 %vm1258_vm4, %v1255_v7  ;;  %s8454_s8 = sld [smem:[#allocation53_spill]]  ;;  %s7155_s6 = smov 64  }
 0x244   : > { %v1200_v6 = vpack.c.bf16 %v1199_v3, %v1199_v3  ;;  %5753 = vmatprep.mubr.msk.bf16.mxu1 %vm7152_vm0, %v7151_v0  ;;  %v6174_v36 = vld [vmem:[%s8449_s4] sm:$0xff]   ;;  %v6175_v37 = vld [vmem:[%s8449_s4 + $0x8] sm:$0xff]   ;;  %v6176_v38 = vld [vmem:[%s8449_s4 + $0x10] sm:$0xff]   ;;  %s7156_s28 = smov 48   ;;  %s7157_s15 = smov 112  }
 0x245   : > { %1313 = vadd.xlane.f32.xlu0 %v1312_v11  ;;  %v6177_v39 = vld [vmem:[%s8449_s4 + $0x18] sm:$0xff]   ;;  %s8451_s3 = smov %s8450_s22  ;;  %v6178_v4 = vld [vmem:[%s8450_s22] sm:$0xff]   ;;  %s7158_s0 = smov 32  }
 0x246   : > { %5712 = vmatmul.mubr.msk.bf16.vlgmr.msra.gmra.mrb[0].mxu0 %vm1210_vm3, %v1200_v6  ;;  %v6179_v5 = vld [vmem:[%s8451_s3 + $0x8] sm:$0xff]   ;;  %v6180_v6 = vld [vmem:[%s8451_s3 + $0x10] sm:$0xff]   ;;  %v6181_v7 = vld [vmem:[%s8451_s3 + $0x18] sm:$0xff]   ;;  %s8381_s7 = smov 80   ;;  %s8380_s2 = smov 16  }
 0x247   : > { %5729 = vmatprep.mubr.msk.bf16.mxu0 %vm7152_vm0, %v7151_v0  ;;  %5722 = vmatpush3.bf16.msra.mxu0 %v6174_v36  ;;  %s8455_s22 = sld [smem:[#allocation56_spill]] }
 0x248   : > { %5723 = vmatprep.subr.bf16.mxu0 %v7151_v0 }
 0x24b   : > { %5724 = vmatpush3.bf16.msra.mxu0 %v6175_v37 }
 0x24c   : > { %5725 = vmatprep.subr.bf16.mxu0 %v7151_v0 }
 0x24f   : > { %5726 = vmatpush3.bf16.msra.mxu0 %v6176_v38 }
 0x250   : > { %5727 = vmatprep.subr.bf16.mxu0 %v7151_v0 }
 0x253   : > { %5728 = vmatpush3.bf16.msra.mxu0 %v6177_v39 }
 0x254   : > { %5733 = vmatprep.subr.bf16.mxu0 %v7151_v0 }
 0x2ce   : > { %v1311_v12 = vpop.xlane.xlu0 %1310 }
 0x2cf   : > { %v1316_v13 = vmul.f32 0.015625, %v1311_v12 }
 0x2d1   : > { %v1318_v14 = vsub.f32 %v7701_v8, %v1316_v13 }
 0x2d2   : > { %v1314_v17 = vpop.xlane.xlu0 %1313 }
 0x2d3   : > { %v1320_v15 = vmul.f32 %v1318_v14, %v1318_v14  ;;  %v1317_v18 = vmul.f32 0.015625, %v1314_v17 }
 0x2d5   : > { %v1322_v16 = vsel %vm1308_vm2, %v1320_v15, 0.0  ;;  %v1319_v25 = vsub.f32 %v7703_v9, %v1317_v18  ;;  %v5386_v18 = vld [vmem:[#allocation13] ss:$0 sm:$0xff] }
 0x2d6   : > { %1323 = vadd.xlane.f32.xlu0 %v1322_v16 }
 0x2d7   : > { %v1321_v34 = vmul.f32 %v1319_v25, %v1319_v25 }
 0x2d9   : > { %v1325_v35 = vsel %vm1308_vm2, %v1321_v34, 0.0 }
 0x316   : > { %v1300_v24 = vpop.f32.mrb[0].mxu1 }
 0x317   : > { %v1301_v26 = vadd.f32 %v1300_v24, %v1257_v20  ;;  %v5719_v28 = vpop.f32.mrb[1].mxu1 }
 0x318   : > { %v1303_v30 = vpop.f32.mrb[2].mxu1 }
 0x319   : > { %v1248_v21 = vpop.f32.mrb[0].mxu0  ;;  %v5720_v32 = vpop.f32.mrb[3].mxu1  ;;  %v1354_v33 = vsel %vm1308_vm2, %v1301_v26, 0.0 }
 0x31a   : > { %v1249_v22 = vadd.f32 %v1248_v21, %v1203_v19  ;;  %v5713_v23 = vpop.f32.mrb[1].mxu0 }
 0x31b   : > { %v1251_v27 = vpop.f32.mrb[2].mxu0 }
 0x31c   : > { %v5714_v29 = vpop.f32.mrb[3].mxu0  ;;  %v1351_v31 = vsel %vm1308_vm2, %v1249_v22, 0.0 }
 0x31d   : > { %1352 = vadd.xlane.f32.xlu1 %v1351_v31 }
 0x321   : > { %1355 = vadd.xlane.f32.xlu1 %v1354_v33 }
 0x325   : > { %1326 = vadd.xlane.f32.xlu1 %v1325_v35 }
 0x363   : > { %v1324_v40 = vpop.xlane.xlu0 %1323 }
 0x364   : > { %v1328_v41 = vmul.f32 0.015625, %v1324_v40 }
 0x366   : > { %v1330_v44 = vadd.f32 1e-05, %v1328_v41 }
 0x368   : > { %6336 = vrsqrt.f32 %v1330_v44 }
 0x372   : > { %v6337_v56 = vpop.eup %6336 }
 0x373   : > { %v1334_v57 = vmul.f32 %v6337_v56, %v1318_v14  ;;  %v6182_v56 = vld [vmem:[#allocation14] sm:$0xff]  }
 0x375   : > { %v1341_v60 = vmul.f32 %v5384_v58, %v1334_v57 }
 0x377   : > { %v1348_v1 = vadd.f32 %v5385_v62, %v1341_v60 }
 0x3aa   : > { %v1353_v42 = vpop.xlane.xlu1 %1352 }
 0x3ab   : > { %v1357_v43 = vmul.f32 0.015625, %v1353_v42 }
 0x3ad   : > { %v1359_v45 = vsub.f32 %v1249_v22, %v1357_v43  ;;  %v5387_v22 = vld [vmem:[#allocation13 + $0x1] ss:$0 sm:$0xff] }
 0x3ae   : > { %v1356_v46 = vpop.xlane.xlu1 %1355 }
 0x3af   : > { %v1358_v47 = vmul.f32 0.015625, %v1356_v46  ;;  %v1361_v48 = vmul.f32 %v1359_v45, %v1359_v45 }
 0x3b1   : > { %v1360_v49 = vsub.f32 %v1301_v26, %v1358_v47  ;;  %v1363_v50 = vsel %vm1308_vm2, %v1361_v48, 0.0 }
 0x3b2   : > { %1364 = vadd.xlane.f32.xlu0 %v1363_v50  ;;  %v1327_v51 = vpop.xlane.xlu1 %1326 }
 0x3b3   : > { %v1329_v52 = vmul.f32 0.015625, %v1327_v51  ;;  %v1362_v53 = vmul.f32 %v1360_v49, %v1360_v49 }
 0x3b5   : > { %v1331_v54 = vadd.f32 1e-05, %v1329_v52  ;;  %v1366_v55 = vsel %vm1308_vm2, %v1362_v53, 0.0 }
 0x3b6   : > { %1367 = vadd.xlane.f32.xlu1 %v1366_v55 }
 0x3b7   : > { %6338 = vrsqrt.f32 %v1331_v54 }
 0x3c1   : > { %v6339_v59 = vpop.eup %6338 }
 0x3c2   : > { %v1335_v61 = vmul.f32 %v6339_v59, %v1319_v25 }
 0x3c4   : > { %v1342_v63 = vmul.f32 %v5384_v58, %v1335_v61 }
 0x3c6   : > { %v1349_v2 = vadd.f32 %v5385_v62, %v1342_v63 }
 0x3c8   : > { %v1350_v3 = vpack.c.bf16 %v1349_v2, %v1348_v1  ;;  %v6183_v2 = vld [vmem:[#allocation14 + $0x8] sm:$0xff]  }
 0x3ca   : > { %5730 = vmatmul.mubr.msk.bf16.vlgmr.msra.gmra.mrb[4].mxu0 %vm1308_vm2, %v1350_v3 }
 0x3cb   : > { %5741 = vmatprep.mubr.msk.bf16.mxu0 %vm7152_vm0, %v7151_v0  ;;  %5734 = vmatpush3.bf16.msra.mxu0 %v6178_v4 }
 0x3cc   : > { %5735 = vmatprep.subr.bf16.mxu0 %v7151_v0 }
 0x3cf   : > { %5736 = vmatpush3.bf16.msra.mxu0 %v6179_v5 }
 0x3d0   : > { %5737 = vmatprep.subr.bf16.mxu0 %v7151_v0 }
 0x3d3   : > { %5738 = vmatpush3.bf16.msra.mxu0 %v6180_v6 }
 0x3d4   : > { %5739 = vmatprep.subr.bf16.mxu0 %v7151_v0 }
 0x3d7   : > { %5740 = vmatpush3.bf16.msra.mxu0 %v6181_v7 }
 0x3d8   : > { %5745 = vmatprep.subr.bf16.mxu0 %v7151_v0 }
 0x43f   : > { %v1365_v10 = vpop.xlane.xlu0 %1364 }
 0x440   : > { %v1369_v11 = vmul.f32 0.015625, %v1365_v10 }
 0x442   : > { %v1371_v12 = vadd.f32 1e-05, %v1369_v11  ;;  %v5403_v11 = vld [vmem:[#allocation11 + $0x2] ss:$0 sm:$0xff] }
 0x443   : > { %v1368_v13 = vpop.xlane.xlu1 %1367 }
 0x444   : > { %6340 = vrsqrt.f32 %v1371_v12  ;;  %v1370_v14 = vmul.f32 0.015625, %v1368_v13 }
 0x446   : > { %v1372_v15 = vadd.f32 1e-05, %v1370_v14 }
 0x448   : > { %6342 = vrsqrt.f32 %v1372_v15 }
 0x44e   : > { %v6341_v16 = vpop.eup %6340 }
 0x44f   : > { %v1375_v17 = vmul.f32 %v6341_v16, %v1359_v45 }
 0x451   : > { %v1382_v20 = vmul.f32 %v5386_v18, %v1375_v17 }
 0x452   : > { %v6343_v19 = vpop.eup %6342 }
 0x453   : > { %v1376_v21 = vmul.f32 %v6343_v19, %v1360_v49  ;;  %v1389_v24 = vadd.f32 %v5387_v22, %v1382_v20 }
 0x455   : > { %v1383_v23 = vmul.f32 %v5386_v18, %v1376_v21 }
 0x457   : > { %v1390_v25 = vadd.f32 %v5387_v22, %v1383_v23 }
 0x459   : > { %v1391_v26 = vpack.c.bf16 %v1390_v25, %v1389_v24 }
 0x45b   : > { %5742 = vmatmul.mubr.msk.bf16.vlgmr.msra.gmra.mrb[8].mxu0 %vm1308_vm2, %v1391_v26 }
 0x45c   : > { %5747 = vmatprep.mubr.msk.bf16.mxu0 %vm7152_vm0, %v7151_v0 }
 0x49d   : > { %v1461_v27 = vpop.f32.mrb[4].mxu0 }
 0x49e   : > { %v5731_v28 = vpop.f32.mrb[5].mxu0 }
 0x49f   : > { %v1464_v29 = vpop.f32.mrb[6].mxu0 }
 0x4a0   : > { %v1544_v30 = vpack.c.bf16 %v1464_v29, %v1461_v27  ;;  %v5732_v31 = vpop.f32.mrb[7].mxu0  ;;  %v6186_v29 = vld [vmem:[%s8452_s11 + $0x4] ss:$16 sps:$4 sm:$0xff]  }
 0x4a1   : > { %v6184_v31 = vld [vmem:[%s8452_s11] ss:$16 sps:$4 sm:$0xff]  }
 0x52e   : > { %v1537_v32 = vpop.f32.mrb[8].mxu0 }
 0x52f   : > { %v5743_v33 = vpop.f32.mrb[9].mxu0 }
 0x530   : > { %v1540_v34 = vpop.f32.mrb[10].mxu0  ;;  %v6192_v33 = vld [vmem:[%s8452_s11 + $0x24] ss:$16 sps:$4 sm:$0xff]  }
 0x531   : > { %v1545_v35 = vpack.c.bf16 %v1540_v34, %v1537_v32  ;;  %v5744_v36 = vpop.f32.mrb[11].mxu0  ;;  %v6187_v32 = vld [vmem:[%s8452_s11 + $0x8] ss:$16 sps:$4 sm:$0xff]   ;;  %v6195_v34 = vld [vmem:[%s8452_s11 + $0x2c] ss:$16 sps:$4 sm:$0xff]  }
 0x532   : > { %v6193_v36 = vld [vmem:[%s8452_s11 + $0x28] ss:$16 sps:$4 sm:$0xff]  }
 0x533   : > { %v1551_v37 = vsel %vm1546_vm5, %v1545_v35, 0 }
 0x534   : > { %5746 = vmatpush3.bf16.xpose.msra.mxu0 %v1551_v37  ;;  %v6198_v37 = vld [vmem:[%s8452_s11 + $0x44] ss:$16 sps:$4 sm:$0xff]  }
 0x535   : > { %5757 = vmatprep.subr.bf16.mxu0 %v7151_v0 }
 0x53b   : > { %5748 = vmatmul.mubr.msk.bf16.vlgmr.msra.gmra.mrb[12].mxu0 %vm1546_vm5, %v1544_v30  ;;  %v6189_v30 = vld [vmem:[%s8452_s11 + $0xc] ss:$16 sps:$4 sm:$0xff]  }
 0x53c   : > { %5761 = vmatprep.mubr.msk.bf16.mxu0 %vm7152_vm0, %v7151_v0  ;;  %5758 = vmatpush3.bf16.msra.mxu0 %v6182_v56 }
 0x53d   : > { %5759 = vmatprep.subr.bf16.mxu0 %v7151_v0 }
 0x540   : > { %5760 = vmatpush3.bf16.msra.mxu0 %v6183_v2  ;;  %v6210_v2 = vld [vmem:[%s8453_s12 + $0x48] sm:$0xff]  }
 0x541   : > { %1942 = vmatprep.subr.bf16.mxu0 %v6189_v30 }
 0x60e   : > { %v1587_v38 = vpop.f32.mrb[12].mxu0 }
 0x60f   : > { %v1594_v39 = vmul.f32 0.17677669, %v1587_v38  ;;  %v5749_v40 = vpop.f32.mrb[13].mxu0  ;;  %v6201_v38 = vld [vmem:[%s8452_s11 + $0x4c] ss:$16 sps:$4 sm:$0xff]  }
 0x610   : > { %v1590_v41 = vpop.f32.mrb[14].mxu0  ;;  %v6199_v40 = vld [vmem:[%s8452_s11 + $0x48] ss:$16 sps:$4 sm:$0xff]  }
 0x611   : > { %v1595_v42 = vmul.f32 0.17677669, %v1590_v41  ;;  %v5750_v43 = vpop.f32.mrb[15].mxu0  ;;  %v1596_v44 = vsel %vm1210_vm3, %v1594_v39, -inf  ;;  %v6202_v41 = vld [vmem:[%s8452_s11 + $0x60] ss:$16 sps:$4 sm:$0xff]  }
 0x612   : > { %1597 = vmax.xlane.f32.xlu0 %v1596_v44  ;;  %v6205_v43 = vld [vmem:[%s8452_s11 + $0x68] ss:$16 sps:$4 sm:$0xff]   ;;  %v6207_v44 = vld [vmem:[%s8452_s11 + $0x6c] ss:$16 sps:$4 sm:$0xff]  }
 0x613   : > { %v1599_v45 = vsel %vm1210_vm3, %v1595_v42, -inf }
 0x614   : > { %1600 = vmax.xlane.f32.xlu1 %v1599_v45  ;;  %v7154_v45 = vmov 0  }
 0x69f   : > { %v1598_v46 = vpop.xlane.xlu0 %1597 }
 0x6a0   : > { %v1602_v47 = vsub.f32 %v1594_v39, %v1598_v46  ;;  %v6196_v39 = vld [vmem:[%s8452_s11 + $0x40] ss:$16 sps:$4 sm:$0xff]  }
 0x6a1   : > { %v1601_v48 = vpop.xlane.xlu1 %1600 }
 0x6a2   : > { %v1604_v49 = vmul.f32 1.442695, %v1602_v47  ;;  %v1603_v50 = vsub.f32 %v1595_v42, %v1601_v48  ;;  %v6204_v42 = vld [vmem:[%s8452_s11 + $0x64] ss:$16 sps:$4 sm:$0xff]  }
 0x6a4   : > { %6344 = vpow2.f32 %v1604_v49  ;;  %v1606_v51 = vmul.f32 1.442695, %v1603_v50 }
 0x6a6   : > { %6346 = vpow2.f32 %v1606_v51 }
 0x6ae   : > { %v6345_v52 = vpop.eup %6344 }
 0x6af   : > { %v1608_v53 = vsel %vm1210_vm3, %v6345_v52, 0.0 }
 0x6b0   : > { %v6347_v54 = vpop.eup %6346  ;;  %1609 = vadd.xlane.f32.xlu0 %v1608_v53 }
 0x6b1   : > { %v1611_v55 = vsel %vm1210_vm3, %v6347_v54, 0.0 }
 0x6b2   : > { %1612 = vadd.xlane.f32.xlu1 %v1611_v55 }
 0x6c6   : > { %1620 = vrot.lane.b32.xlu0 %v1545_v35, %s8383_s9  ;;  %v6190_v35 = vld [vmem:[%s8452_s11 + $0x20] ss:$16 sps:$4 sm:$0xff]  }
 0x73d   : > { %v1610_v57 = vpop.xlane.xlu0 %1609 }
 0x73e   : > { %6348 = vrcp.f32 %v1610_v57 }
 0x73f   : > { %v1613_v58 = vpop.xlane.xlu1 %1612 }
 0x740   : > { %6350 = vrcp.f32 %v1613_v58  ;;  %v5405_v58 = vld [vmem:[#allocation16 + $0x1] ss:$0 sm:$0xff] }
 0x741   : > { %v1621_v59 = vpop.permute.xlu0 %1620 }
 0x742   : > { %5752 = vmatpush3.bf16.msra.mxu1 %v1621_v59 }
 0x743   : > { %1899 = vmatprep.subr.bf16.mxu1 %v6186_v29 }
 0x748   : > { %v6349_v60 = vpop.eup %6348 }
 0x749   : > { %v1615_v62 = vmul.f32 %v6349_v60, %v6345_v52 }
 0x74a   : > { %v6351_v61 = vpop.eup %6350 }
 0x74b   : > { %v1617_v63 = vmul.f32 %v6351_v61, %v6347_v54  ;;  %v5404_v54 = vld [vmem:[#allocation16] ss:$0 sm:$0xff] }
 0x74d   : > { %v1618_v1 = vpack.c.bf16 %v1617_v63, %v1615_v62  ;;  %v6208_v63 = vld [vmem:[%s8453_s12 + $0x40] sm:$0xff]  }
 0x74f   : > { %5754 = vmatmul.mubr.msk.bf16.vlgmr.msra.gmra.mrb[4].mxu1 %vm1210_vm3, %v1618_v1  ;;  %v6209_v1 = vld [vmem:[%s8453_s12] sm:$0xff]  }
 0x750   : > { %1900 = vmatpush1.bf16.msra.mxu1 %v6184_v31  ;;  %1931 = vmatprep.mubr.bf16.mxu1 %v7154_v45 }
 0x751   : > { %1901 = vmatprep.subr.bf16.mxu1 %v6192_v33 }
 0x754   : > { %1902 = vmatpush1.bf16.msra.mxu1 %v6190_v35 }
 0x755   : > { %1903 = vmatprep.subr.bf16.mxu1 %v6198_v37 }
 0x758   : > { %1904 = vmatpush1.bf16.msra.mxu1 %v6196_v39 }
 0x759   : > { %1905 = vmatprep.subr.bf16.mxu1 %v6204_v42 }
 0x75c   : > { %1906 = vmatpush1.bf16.msra.mxu1 %v6202_v41 }
 0x75d   : > { %5595 = vmatprep.subr.bf16.mxu1 %v6208_v63 }
 0x822   : > { %v1660_v3 = vpop.f32.mrb[4].mxu1 }
 0x823   : > { %v5755_v4 = vpop.f32.mrb[5].mxu1 }
 0x824   : > { %v1663_v5 = vpop.f32.mrb[6].mxu1  ;;  %v6212_v4 = vld [vmem:[%s8453_s12 + $0x50] sm:$0xff]  }
 0x825   : > { %v1667_v6 = vpack.c.bf16 %v1663_v5, %v1660_v3  ;;  %v5756_v7 = vpop.f32.mrb[7].mxu1  ;;  %v6211_v3 = vld [vmem:[%s8453_s12 + $0x8] sm:$0xff]   ;;  %v6213_v5 = vld [vmem:[%s8453_s12 + $0x10] sm:$0xff]  }
 0x826   : > { %v6215_v7 = vld [vmem:[%s8453_s12 + $0x18] sm:$0xff]  }
 0x827   : > { %5762 = vmatmul.mubr.msk.bf16.vlgmr.msra.gmra.mrb[16].mxu0 %vm1546_vm5, %v1667_v6  ;;  %v6214_v6 = vld [vmem:[%s8453_s12 + $0x58] sm:$0xff]  }
 0x828   : > { %1943 = vmatpush1.bf16.msra.mxu0 %v6187_v32  ;;  %1974 = vmatprep.mubr.bf16.mxu0 %v7154_v45 }
 0x829   : > { %1944 = vmatprep.subr.bf16.mxu0 %v6195_v34 }
 0x82c   : > { %1945 = vmatpush1.bf16.msra.mxu0 %v6193_v36 }
 0x82d   : > { %1946 = vmatprep.subr.bf16.mxu0 %v6201_v38 }
 0x830   : > { %1947 = vmatpush1.bf16.msra.mxu0 %v6199_v40 }
 0x831   : > { %1948 = vmatprep.subr.bf16.mxu0 %v6207_v44 }
 0x834   : > { %1949 = vmatpush1.bf16.msra.mxu0 %v6205_v43 }
 0x8fa   : > { %v1721_v10 = vpop.f32.mrb[16].mxu0 }
 0x8fb   : > { %v1728_v12 = vadd.f32 %v1721_v10, %v7701_v8  ;;  %v5763_v13 = vpop.f32.mrb[17].mxu0  ;;  %v6216_v10 = vld [vmem:[%s8453_s12 + $0x60] sm:$0xff]  }
 0x8fc   : > { %v1724_v14 = vpop.f32.mrb[18].mxu0  ;;  %v6219_v13 = vld [vmem:[%s8453_s12 + $0x28] sm:$0xff]  }
 0x8fd   : > { %v7760_v15 = vadd.f32 %v5403_v11, %v1728_v12  ;;  %v1729_v16 = vadd.f32 %v1724_v14, %v7703_v9  ;;  %v5764_v17 = vpop.f32.mrb[19].mxu0  ;;  %v6218_v12 = vld [vmem:[%s8453_s12 + $0x68] sm:$0xff]   ;;  %v6220_v14 = vld [vmem:[%s8453_s12 + $0x70] sm:$0xff]  }
 0x8fe   : > { %v6222_v17 = vld [vmem:[%s8453_s12 + $0x78] sm:$0xff]  }
 0x8ff   : > { %v7763_v18 = vadd.f32 %v5403_v11, %v1729_v16  ;;  %v1737_v19 = vsel %vm1308_vm2, %v7760_v15, 0.0  ;;  %v6217_v11 = vld [vmem:[%s8453_s12 + $0x20] sm:$0xff]   ;;  %v6221_v16 = vld [vmem:[%s8453_s12 + $0x30] sm:$0xff]  }
 0x900   : > { %1738 = vadd.xlane.f32.xlu1 %v1737_v19  ;;  %v6223_v19 = vld [vmem:[%s8453_s12 + $0x38] sm:$0xff]  }
 0x901   : > { %v1740_v20 = vsel %vm1308_vm2, %v7763_v18, 0.0 }
 0x904   : > { %1741 = vadd.xlane.f32.xlu1 %v1740_v20  ;;  %v1796_v20 = vlaneseq }
 0x98d   : > { %v1739_v8 = vpop.xlane.xlu1 %1738 }
 0x98e   : > { %v1743_v21 = vmul.f32 0.015625, %v1739_v8  ;;  %v7811_v8 = vshrl.u32 %v1796_v20, 7 }
 0x990   : > { %v1745_v22 = vsub.f32 %v7760_v15, %v1743_v21  ;;  %v7814_v21 = vsub.s32 2, %v7811_v8 }
 0x991   : > { %v1742_v9 = vpop.xlane.xlu1 %1741 }
 0x992   : > { %v1744_v23 = vmul.f32 0.015625, %v1742_v9  ;;  %v1747_v24 = vmul.f32 %v1745_v22, %v1745_v22  ;;  %v7819_v9 = vsub.s32 3, %v7811_v8 }
 0x994   : > { %v1746_v25 = vsub.f32 %v7763_v18, %v1744_v23  ;;  %v1749_v26 = vsel %vm1308_vm2, %v1747_v24, 0.0 }
 0x995   : > { %1750 = vadd.xlane.f32.xlu1 %v1749_v26 }
 0x996   : > { %v1748_v27 = vmul.f32 %v1746_v25, %v1746_v25 }
 0x998   : > { %v1752_v28 = vsel %vm1308_vm2, %v1748_v27, 0.0 }
 0x999   : > { %1753 = vadd.xlane.f32.xlu1 %v1752_v28 }
 0xa22   : > { %v1751_v46 = vpop.xlane.xlu1 %1750 }
 0xa23   : > { %v1755_v47 = vmul.f32 0.015625, %v1751_v46 }
 0xa25   : > { %v1757_v48 = vadd.f32 1e-05, %v1755_v47 }
 0xa26   : > { %v1754_v49 = vpop.xlane.xlu1 %1753 }
 0xa27   : > { %6352 = vrsqrt.f32 %v1757_v48  ;;  %v1756_v50 = vmul.f32 0.015625, %v1754_v49 }
 0xa29   : > { %v1758_v51 = vadd.f32 1e-05, %v1756_v50 }
 0xa2b   : > { %6354 = vrsqrt.f32 %v1758_v51 }
 0xa31   : > { %v6353_v52 = vpop.eup %6352 }
 0xa32   : > { %v1761_v53 = vmul.f32 %v6353_v52, %v1745_v22  ;;  %v7816_v22 = vld [vmem:[#allocation17] sm:$0xf] }
 0xa33   : > { %v1807_v23 = vrot.slane %v7816_v22, %v7814_v21  ;;  %v1811_v24 = vrot.slane %v7816_v22, %v7819_v9 }
 0xa34   : > { %v1768_v56 = vmul.f32 %v5404_v54, %v1761_v53 }
 0xa35   : > { %v6355_v55 = vpop.eup %6354 }
 0xa36   : > { %v1762_v57 = vmul.f32 %v6355_v55, %v1746_v25  ;;  %v1775_v60 = vadd.f32 %v5405_v58, %v1768_v56 }
 0xa38   : > { %v1769_v59 = vmul.f32 %v5404_v54, %v1762_v57 }
 0xa3a   : > { %v1776_v61 = vadd.f32 %v5405_v58, %v1769_v59 }
 0xa3c   : > { %v1777_v62 = vpack.c.bf16 %v1776_v61, %v1775_v60 }
 0xa3e   : > { %5422 = vmatmul.mubr.msk.bf16.vlgmr.msra.gmra.mrb[8].mxu1 %vm1308_vm2, %v1777_v62  ;;  %5423 = vmatmul.mubr.msk.bf16.vlgmr.msra.gmra.mrb[20].mxu0 %vm1308_vm2, %v1777_v62 }
 0xa3f   : > { %2399 = vmatprep.mubr.bf16.mxu0 %v7154_v45  ;;  %5596 = vmatpush3.bf16.msra.mxu1 %v6209_v1 }
 0xa40   : > { %5597 = vmatprep.subr.bf16.mxu1 %v6210_v2 }
 0xa43   : > { %5598 = vmatpush3.bf16.msra.mxu1 %v6211_v3 }
 0xa44   : > { %5599 = vmatprep.subr.bf16.mxu1 %v6212_v4 }
 0xa47   : > { %5600 = vmatpush3.bf16.msra.mxu1 %v6213_v5 }
 0xa48   : > { %5601 = vmatprep.subr.bf16.mxu1 %v6214_v6 }
 0xa4b   : > { %5602 = vmatpush3.bf16.msra.mxu1 %v6215_v7 }
 0xa4c   : > { %5603 = vmatprep.subr.bf16.mxu1 %v6216_v10 }
 0xa4f   : > { %5604 = vmatpush3.bf16.msra.mxu1 %v6217_v11 }
 0xa50   : > { %5605 = vmatprep.subr.bf16.mxu1 %v6218_v12 }
 0xa53   : > { %5606 = vmatpush3.bf16.msra.mxu1 %v6219_v13 }
 0xa54   : > { %5607 = vmatprep.subr.bf16.mxu1 %v6220_v14 }
 0xa57   : > { %5608 = vmatpush3.bf16.msra.mxu1 %v6221_v16 }
 0xa58   : > { %5609 = vmatprep.subr.bf16.mxu1 %v6222_v17 }
 0xa5b   : > { %5610 = vmatpush3.bf16.msra.mxu1 %v6223_v19 }
 0xa5c   : > { %5777 = vmatprep.subr.bf16.mxu1 %v7151_v0 }
 0xb11   : > { %v7825_v25 = vpop.f32.mrb[8].mxu1  ;;  %v1976_v26 = vpop.f32.mrb[20].mxu0 }
 0xb12   : > { %v7827_v27 = vadd.f32 %v1976_v26, %v1807_v23  ;;  %v7829_v28 = vpop.f32.mrb[9].mxu1  ;;  %v1978_v29 = vpop.f32.mrb[21].mxu0 }
 0xb13   : > { %v7831_v30 = vadd.f32 %v1978_v29, %v1811_v24  ;;  %v7833_v31 = vpop.f32.mrb[10].mxu1  ;;  %v1980_v32 = vpop.f32.mrb[22].mxu0 }
 0xb14   : > { %v7836_v33 = vmul.f32 0.70710677, %v7827_v27  ;;  %v7838_v34 = vadd.f32 %v1980_v32, %v1807_v23  ;;  %v7840_v35 = vpop.f32.mrb[11].mxu1  ;;  %v1982_v36 = vpop.f32.mrb[23].mxu0 }
 0xb15   : > { %v7843_v37 = vmul.f32 0.70710677, %v7831_v30  ;;  %v7845_v38 = vadd.f32 %v1982_v36, %v1811_v24 }
 0xb16   : > { %v1993_v39 = vand.u32 2147483647, %v7836_v33  ;;  %v7849_v40 = vmul.f32 0.70710677, %v7838_v34  ;;  %vm2073_vm6 = vcmp.ge.f32.partialorder %v7836_v33, 0.0 }
 0xb17   : > { %v1994_v41 = vand.u32 2147483647, %v7843_v37  ;;  %v7853_v42 = vmul.f32 0.70710677, %v7845_v38  ;;  %vm2074_vm7 = vcmp.ge.f32.partialorder %v7843_v37, 0.0 }
 0xb18   : > { %v1997_v43 = vmul.f32 0.3275911, %v1993_v39  ;;  %v1995_v44 = vand.u32 2147483647, %v7849_v40  ;;  %v2049_v54 = vsub.f32 0.0, %v1993_v39  ;;  %vm2075_vm8 = vcmp.ge.f32.partialorder %v7849_v40, 0.0 }
 0xb19   : > { %v1998_v46 = vmul.f32 0.3275911, %v1994_v41  ;;  %v1996_v47 = vand.u32 2147483647, %v7853_v42  ;;  %v2050_v55 = vsub.f32 0.0, %v1994_v41  ;;  %vm2076_vm9 = vcmp.ge.f32.partialorder %v7853_v42, 0.0 }
 0xb1a   : > { %v2001_v48 = vadd.f32 1.0, %v1997_v43  ;;  %v1999_v49 = vmul.f32 0.3275911, %v1995_v44  ;;  %v2053_v57 = vmul.f32 %v2049_v54, %v1993_v39  ;;  %v2051_v58 = vsub.f32 0.0, %v1995_v44  ;;  %v5424_v42 = vld [vmem:[#allocation16 + $0x2] ss:$0 sm:$0xff] }
 0xb1b   : > { %v2002_v50 = vadd.f32 1.0, %v1998_v46  ;;  %v2000_v51 = vmul.f32 0.3275911, %v1996_v47  ;;  %v2054_v61 = vmul.f32 %v2050_v55, %v1994_v41  ;;  %v2052_v63 = vsub.f32 0.0, %v1996_v47 }
 0xb1c   : > { %6356 = vrcp.f32 %v2001_v48  ;;  %v2003_v52 = vadd.f32 1.0, %v1999_v49  ;;  %v2057_v3 = vmul.f32 1.442695, %v2053_v57  ;;  %v2055_v5 = vmul.f32 %v2051_v58, %v1995_v44 }
 0xb1d   : > { %6358 = vrcp.f32 %v2002_v50  ;;  %v2004_v53 = vadd.f32 1.0, %v2000_v51  ;;  %v2059_v7 = vmul.f32 1.442695, %v2054_v61  ;;  %v2056_v13 = vmul.f32 %v2052_v63, %v1996_v47 }
 0xb1e   : > { %6360 = vrcp.f32 %v2003_v52  ;;  %v2061_v20 = vmul.f32 1.442695, %v2055_v5 }
 0xb1f   : > { %6362 = vrcp.f32 %v2004_v53  ;;  %v2063_v32 = vmul.f32 1.442695, %v2056_v13 }
 0xb20   : > { %6364 = vpow2.f32 %v2057_v3  ;;  %v7861_v3 = vsub.s32 1, %v7811_v8 }
 0xb21   : > { %6366 = vpow2.f32 %v2059_v7 }
 0xb22   : > { %6368 = vpow2.f32 %v2061_v20 }
 0xb23   : > { %6370 = vpow2.f32 %v2063_v32 }
 0xb26   : > { %v6357_v56 = vpop.eup %6356 }
 0xb27   : > { %v6359_v59 = vpop.eup %6358  ;;  %v2013_v60 = vmul.f32 1.0614054, %v6357_v56 }
 0xb28   : > { %v2014_v62 = vmul.f32 1.0614054, %v6359_v59  ;;  %v6361_v2 = vpop.eup %6360 }
 0xb29   : > { %v2017_v1 = vadd.f32 -1.4531521, %v2013_v60  ;;  %v2015_v10 = vmul.f32 1.0614054, %v6361_v2  ;;  %v6363_v11 = vpop.eup %6362 }
 0xb2a   : > { %v2018_v4 = vadd.f32 -1.4531521, %v2014_v62  ;;  %v2016_v17 = vmul.f32 1.0614054, %v6363_v11  ;;  %v6365_v57 = vpop.eup %6364 }
 0xb2b   : > { %v2021_v6 = vmul.f32 %v6357_v56, %v2017_v1  ;;  %v2019_v16 = vadd.f32 -1.4531521, %v2015_v10  ;;  %v6367_v60 = vpop.eup %6366  ;;  %v7858_v1 = vsub.s32 0, %v7811_v8 }
 0xb2c   : > { %v2022_v12 = vmul.f32 %v6359_v59, %v2018_v4  ;;  %v2020_v26 = vadd.f32 -1.4531521, %v2016_v17  ;;  %v6369_v10 = vpop.eup %6368  ;;  %v1803_v17 = vrot.slane %v7816_v22, %v7861_v3 }
 0xb2d   : > { %v2025_v14 = vadd.f32 1.4214138, %v2021_v6  ;;  %v2023_v24 = vmul.f32 %v6361_v2, %v2019_v16  ;;  %v1799_v16 = vrot.slane %v7816_v22, %v7858_v1 }
 0xb2e   : > { %v2026_v19 = vadd.f32 1.4214138, %v2022_v12  ;;  %v2024_v41 = vmul.f32 %v6363_v11, %v2020_v26  ;;  %v1936_v22 = vadd.f32 %v7829_v28, %v1803_v17  ;;  %v1940_v28 = vadd.f32 %v7840_v35, %v1803_v17  ;;  %v6229_v17 = vld [vmem:[%s8454_s8 + $0x14] ss:$8 sps:$4 sm:$0xff]  }
 0xb2f   : > { %v2029_v23 = vmul.f32 %v6357_v56, %v2025_v14  ;;  %v2027_v39 = vadd.f32 1.4214138, %v2023_v24  ;;  %v1934_v33 = vadd.f32 %v7825_v25, %v1799_v16  ;;  %v1988_v25 = vmul.f32 0.5, %v7845_v38 }
 0xb30   : > { %v2030_v29 = vmul.f32 %v6359_v59, %v2026_v19  ;;  %v2028_v47 = vadd.f32 1.4214138, %v2024_v41 }
 0xb31   : > { %v2033_v36 = vadd.f32 -0.28449672, %v2029_v23  ;;  %v2031_v46 = vmul.f32 %v6361_v2, %v2027_v39  ;;  %v1985_v23 = vmul.f32 0.5, %v7827_v27  ;;  %v1987_v27 = vmul.f32 0.5, %v7838_v34 }
 0xb32   : > { %v2034_v43 = vadd.f32 -0.28449672, %v2030_v29  ;;  %v2032_v51 = vmul.f32 %v6363_v11, %v2028_v47 }
 0xb33   : > { %v2037_v44 = vmul.f32 %v6357_v56, %v2033_v36  ;;  %v2035_v50 = vadd.f32 -0.28449672, %v2031_v46 }
 0xb34   : > { %v2038_v48 = vmul.f32 %v6359_v59, %v2034_v43  ;;  %v2036_v55 = vadd.f32 -0.28449672, %v2032_v51 }
 0xb35   : > { %v2041_v49 = vadd.f32 0.2548296, %v2037_v44  ;;  %v2039_v54 = vmul.f32 %v6361_v2, %v2035_v50 }
 0xb36   : > { %v2042_v52 = vadd.f32 0.2548296, %v2038_v48  ;;  %v2040_v63 = vmul.f32 %v6363_v11, %v2036_v55  ;;  %v1938_v48 = vadd.f32 %v7833_v31, %v1799_v16  ;;  %v6224_v16 = vld [vmem:[%s8454_s8] ss:$8 sps:$4 sm:$0xff]  }
 0xb37   : > { %v2045_v53 = vmul.f32 %v6357_v56, %v2041_v49  ;;  %v2043_v62 = vadd.f32 0.2548296, %v2039_v54 }
 0xb38   : > { %v2046_v58 = vmul.f32 %v6359_v59, %v2042_v52  ;;  %v2044_v7 = vadd.f32 0.2548296, %v2040_v63  ;;  %v6371_v59 = vpop.eup %6370 }
 0xb39   : > { %v2065_v61 = vmul.f32 %v6365_v57, %v2045_v53  ;;  %v2047_v6 = vmul.f32 %v6361_v2, %v2043_v62 }
 0xb3a   : > { %v2066_v4 = vmul.f32 %v6367_v60, %v2046_v58  ;;  %v2048_v14 = vmul.f32 %v6363_v11, %v2044_v7  ;;  %v1986_v11 = vmul.f32 0.5, %v7831_v30 }
 0xb3b   : > { %v2069_v5 = vsub.f32 1.0, %v2065_v61  ;;  %v2067_v13 = vmul.f32 %v6369_v10, %v2047_v6 }
 0xb3c   : > { %v2070_v56 = vsub.f32 1.0, %v2066_v4  ;;  %v2068_v20 = vmul.f32 %v6371_v59, %v2048_v14  ;;  %v6226_v59 = vld [vmem:[%s8454_s8 + $0x4] ss:$8 sps:$4 sm:$0xff]  }
 0xb3d   : > { %v2077_v12 = vsub.f32 0.0, %v2069_v5  ;;  %v2071_v2 = vsub.f32 1.0, %v2067_v13  ;;  %2367 = vmatprep.subr.bf16.mxu0 %v6226_v59 }
 0xb3e   : > { %v2078_v8 = vsub.f32 0.0, %v2070_v56  ;;  %v2072_v36 = vsub.f32 1.0, %v2068_v20  ;;  %2368 = vmatpush1.bf16.msra.mxu0 %v6224_v16  ;;  %v6233_v20 = vld [vmem:[%s8454_s8 + $0x30] ss:$8 sps:$4 sm:$0xff]  }
 0xb3f   : > { %v2081_v19 = vsel %vm2073_vm6, %v2069_v5, %v2077_v12  ;;  %v2079_v32 = vsub.f32 0.0, %v2071_v2  ;;  %2369 = vmatprep.subr.bf16.mxu0 %v6229_v17 }
 0xb40   : > { %v2085_v24 = vadd.f32 1.0, %v2081_v19  ;;  %v2082_v26 = vsel %vm2074_vm7, %v2070_v56, %v2078_v8  ;;  %v2080_v43 = vsub.f32 0.0, %v2072_v36  ;;  %v6227_v8 = vld [vmem:[%s8454_s8 + $0x10] ss:$8 sps:$4 sm:$0xff]   ;;  %v6232_v19 = vld [vmem:[%s8454_s8 + $0x24] ss:$8 sps:$4 sm:$0xff]  }
 0xb41   : > { %v2086_v29 = vadd.f32 1.0, %v2082_v26  ;;  %v2083_v37 = vsel %vm2075_vm8, %v2071_v2, %v2079_v32  ;;  %v6230_v2 = vld [vmem:[%s8454_s8 + $0x20] ss:$8 sps:$4 sm:$0xff]  }
 0xb42   : > { %v2089_v39 = vmul.f32 %v2085_v24, %v1985_v23  ;;  %v2087_v46 = vadd.f32 1.0, %v2083_v37  ;;  %v2084_v30 = vsel %vm2076_vm9, %v2072_v36, %v2080_v43  ;;  %2370 = vmatpush1.bf16.msra.mxu0 %v6227_v8  ;;  %v6235_v23 = vld [vmem:[%s8454_s8 + $0x34] ss:$8 sps:$4 sm:$0xff]  }
 0xb43   : > { %v2090_v41 = vmul.f32 %v2086_v29, %v1986_v11  ;;  %v2088_v50 = vadd.f32 1.0, %v2084_v30  ;;  %2371 = vmatprep.subr.bf16.mxu0 %v6232_v19 }
 0xb44   : > { %v2093_v44 = vmul.f32 %v2089_v39, %v1934_v33  ;;  %v2091_v49 = vmul.f32 %v2087_v46, %v1987_v27 }
 0xb45   : > { %v2094_v47 = vmul.f32 %v2090_v41, %v1936_v22  ;;  %v2092_v51 = vmul.f32 %v2088_v50, %v1988_v25  ;;  %v5441_v22 = vld [vmem:[#allocation19] ss:$0 sm:$0xff] }
 0xb46   : > { %v2095_v40 = vmul.f32 %v2091_v49, %v1938_v48  ;;  %2372 = vmatpush1.bf16.msra.mxu0 %v6230_v2 }
 0xb47   : > { %v2096_v52 = vmul.f32 %v2092_v51, %v1940_v28  ;;  %2373 = vmatprep.subr.bf16.mxu0 %v6235_v23 }
 0xb48   : > { %v2097_v53 = vpack.c.bf16 %v2095_v40, %v2093_v44  ;;  %v5442_v44 = vld [vmem:[#allocation19 + $0x1] ss:$0 sm:$0xff] }
 0xb49   : > { %v2098_v54 = vpack.c.bf16 %v2096_v52, %v2094_v47 }
 0xb4a   : > { %2374 = vmatpush1.bf16.msra.mxu0 %v6233_v20 }
 0xb4b   : > { %2264 = vmatprep.mubr.bf16.mxu1 %v2098_v54  ;;  %5765 = vmatprep.subr.bf16.mxu0 %v7151_v0 }
 0xb4c   : > { %2265 = vmatmul.mubr.bf16.vlgmr.msra.gmra.mrb[12].mxu1 %v2097_v53 }
 0xb4d   : > { %5779 = vmatprep.mubr.msk.bf16.mxu1 %vm7152_vm0, %v7151_v0 }
 0xc1f   : > { %v5611_v34 = vpop.f32.mrb[12].mxu1 }
 0xc20   : > { %v5612_v55 = vpop.f32.mrb[13].mxu1 }
 0xc21   : > { %v5613_v31 = vadd.f32 %v5612_v55, %v5611_v34  ;;  %v5614_v57 = vpop.f32.mrb[14].mxu1 }
 0xc22   : > { %v5615_v58 = vpop.f32.mrb[15].mxu1 }
 0xc23   : > { %v2267_v38 = vadd.f32 %v5613_v31, %v5424_v42  ;;  %v5616_v60 = vadd.f32 %v5615_v58, %v5614_v57 }
 0xc25   : > { %v7882_v61 = vadd.f32 %v2267_v38, %v7760_v15  ;;  %v2270_v35 = vadd.f32 %v5616_v60, %v5424_v42 }
 0xc27   : > { %v7885_v62 = vadd.f32 %v2270_v35, %v7763_v18  ;;  %v2275_v63 = vsel %vm1308_vm2, %v7882_v61, 0.0 }
 0xc28   : > { %2276 = vadd.xlane.f32.xlu1 %v2275_v63 }
 0xc29   : > { %v2278_v4 = vsel %vm1308_vm2, %v7885_v62, 0.0 }
 0xc2c   : > { %2279 = vadd.xlane.f32.xlu1 %v2278_v4 }
 0xcb5   : > { %v2277_v5 = vpop.xlane.xlu1 %2276 }
 0xcb6   : > { %v2281_v6 = vmul.f32 0.015625, %v2277_v5 }
 0xcb8   : > { %v2283_v15 = vsub.f32 %v7882_v61, %v2281_v6 }
 0xcb9   : > { %v2280_v7 = vpop.xlane.xlu1 %2279 }
 0xcba   : > { %v2282_v10 = vmul.f32 0.015625, %v2280_v7  ;;  %v2285_v18 = vmul.f32 %v2283_v15, %v2283_v15 }
 0xcbc   : > { %v2284_v56 = vsub.f32 %v7885_v62, %v2282_v10  ;;  %v2287_v12 = vsel %vm1308_vm2, %v2285_v18, 0.0 }
 0xcbd   : > { %2288 = vadd.xlane.f32.xlu0 %v2287_v12 }
 0xcbe   : > { %v2286_v13 = vmul.f32 %v2284_v56, %v2284_v56 }
 0xcc0   : > { %v2290_v14 = vsel %vm1308_vm2, %v2286_v13, 0.0 }
 0xcc1   : > { %2291 = vadd.xlane.f32.xlu1 %v2290_v14 }
 0xd4a   : > { %v2289_v24 = vpop.xlane.xlu0 %2288 }
 0xd4b   : > { %v2293_v26 = vmul.f32 0.015625, %v2289_v24 }
 0xd4d   : > { %v2295_v11 = vadd.f32 1e-05, %v2293_v26 }
 0xd4e   : > { %v2292_v29 = vpop.xlane.xlu1 %2291 }
 0xd4f   : > { %6372 = vrsqrt.f32 %v2295_v11  ;;  %v2294_v32 = vmul.f32 0.015625, %v2292_v29 }
 0xd51   : > { %v2296_v36 = vadd.f32 1e-05, %v2294_v32 }
 0xd53   : > { %6374 = vrsqrt.f32 %v2296_v36 }
 0xd59   : > { %v6373_v33 = vpop.eup %6372 }
 0xd5a   : > { %v2299_v39 = vmul.f32 %v6373_v33, %v2283_v15 }
 0xd5c   : > { %v2306_v37 = vmul.f32 %v5441_v22, %v2299_v39 }
 0xd5d   : > { %v6375_v41 = vpop.eup %6374 }
 0xd5e   : > { %v2300_v43 = vmul.f32 %v6375_v41, %v2284_v56  ;;  %v2313_v46 = vadd.f32 %v5442_v44, %v2306_v37 }
 0xd60   : > { %v2307_v27 = vmul.f32 %v5441_v22, %v2300_v43 }
 0xd62   : > { %v2314_v30 = vadd.f32 %v5442_v44, %v2307_v27 }
 0xd64   : > { %v2315_v47 = vpack.c.bf16 %v2314_v30, %v2313_v46 }
 0xd66   : > { %5451 = vmatmul.mubr.msk.bf16.vlgmr.msra.gmra.mrb[24].mxu0 %vm1308_vm2, %v2315_v47 }
 0xd67   : > { %5767 = vmatprep.mubr.msk.bf16.mxu0 %vm7152_vm0, %v7151_v0 }
 0xe39   : > { %v2401_v48 = vpop.f32.mrb[24].mxu0 }
 0xe3a   : > { %v2403_v49 = vpop.f32.mrb[25].mxu0 }
 0xe3b   : > { %v2405_v25 = vpop.f32.mrb[26].mxu0 }
 0xe3c   : > { %v7907_v50 = vpack.c.bf16 %v2405_v25, %v2401_v48  ;;  %v2407_v40 = vpop.f32.mrb[27].mxu0 }
 0xe3d   : > { %v7909_v28 = vpack.c.bf16 %v2407_v40, %v2403_v49 }
 0xe3e   : > { %2412 = vrot.lane.b32.xlu1 %v7907_v50, %s7155_s6 }
 0xe42   : > { %2536 = vrot.lane.b32.xlu1 %v7907_v50, %s7156_s28 }
 0xe46   : > { %2534 = vrot.lane.b32.xlu1 %v7907_v50, %s7157_s15 }
 0xeb0   : > { %v2413_v51 = vpop.permute.xlu1 %2412 }
 0xeb1   : > { %v2418_v52 = vsel %vm1210_vm3, %v2413_v51, 0 }
 0xeb2   : > { %5766 = vmatpush3.bf16.xpose.msra.mxu0 %v2418_v52 }
 0xeb3   : > { %5771 = vmatprep.subr.bf16.mxu0 %v7151_v0 }
 0xeb4   : > { %v2537_v53 = vpop.permute.xlu1 %2536 }
 0xeb5   : > { %v2542_v54 = vsel %vm1210_vm3, %v2537_v53, 0  ;;  %v6236_v53 = vld [vmem:[#allocation20] sm:$0xff]  }
 0xeb6   : > { %5778 = vmatpush3.bf16.xpose.msra.mxu1 %v2542_v54  ;;  %v6237_v54 = vld [vmem:[#allocation20 + $0x8] sm:$0xff]  }
 0xeb7   : > { %5789 = vmatprep.subr.bf16.mxu1 %v7151_v0 }
 0xeb8   : > { %v2535_v34 = vpop.permute.xlu1 %2534 }
 0xeb9   : > { %5768 = vmatmul.mubr.msk.bf16.vlgmr.msra.gmra.mrb[28].mxu0 %vm1210_vm3, %v7907_v50 }
 0xeba   : > { %5772 = vmatpush3.bf16.msra.mxu0 %v7909_v28  ;;  %5773 = vmatprep.mubr.msk.bf16.mxu0 %vm7152_vm0, %v7151_v0 }
 0xebb   : > { %5783 = vmatprep.subr.bf16.mxu0 %v7151_v0 }
 0xebd   : > { %5780 = vmatmul.mubr.msk.bf16.vlgmr.msra.gmra.mrb[16].mxu1 %vm1210_vm3, %v2535_v34 }
 0xebe   : > { %5791 = vmatprep.mubr.msk.bf16.mxu1 %vm7152_vm0, %v7151_v0  ;;  %5790 = vmatpush3.bf16.msra.mxu1 %v6237_v54 }
 0xebf   : > { %5801 = vmatprep.subr.bf16.mxu1 %v7151_v0 }
 0xf8c   : > { %v2454_v42 = vpop.f32.mrb[28].mxu0 }
 0xf8d   : > { %v2461_v55 = vmul.f32 0.25, %v2454_v42  ;;  %v5769_v31 = vpop.f32.mrb[29].mxu0 }
 0xf8e   : > { %v2457_v57 = vpop.f32.mrb[30].mxu0 }
 0xf8f   : > { %v2462_v58 = vmul.f32 0.25, %v2457_v57  ;;  %v5770_v38 = vpop.f32.mrb[31].mxu0  ;;  %v2463_v60 = vsel %vm1210_vm3, %v2461_v55, -inf }
 0xf90   : > { %v2578_v35 = vpop.f32.mrb[16].mxu1  ;;  %2464 = vmax.xlane.f32.xlu0 %v2463_v60 }
 0xf91   : > { %v2585_v63 = vmul.f32 0.25, %v2578_v35  ;;  %v5781_v4 = vpop.f32.mrb[17].mxu1  ;;  %v2466_v5 = vsel %vm1210_vm3, %v2462_v58, -inf }
 0xf92   : > { %v2581_v6 = vpop.f32.mrb[18].mxu1  ;;  %2467 = vmax.xlane.f32.xlu1 %v2466_v5 }
 0xf93   : > { %v2586_v15 = vmul.f32 0.25, %v2581_v6  ;;  %v5782_v7 = vpop.f32.mrb[19].mxu1  ;;  %v2587_v10 = vsel %vm1210_vm3, %v2585_v63, -inf }
 0xf94   : > { %2588 = vmax.xlane.f32.xlu0 %v2587_v10 }
 0xf95   : > { %v2590_v18 = vsel %vm1210_vm3, %v2586_v15, -inf }
 0xf98   : > { %2591 = vmax.xlane.f32.xlu0 %v2590_v18 }
 0xfa3   : > { %2763 = vrot.lane.b32.xlu1 %v7907_v50, %s7158_s0 }
0x101d   : > { %v2465_v56 = vpop.xlane.xlu0 %2464 }
0x101e   : > { %v2469_v12 = vsub.f32 %v2461_v55, %v2465_v56 }
0x101f   : > { %v2468_v13 = vpop.xlane.xlu1 %2467 }
0x1020   : > { %v2471_v14 = vmul.f32 1.442695, %v2469_v12  ;;  %v2470_v59 = vsub.f32 %v2462_v58, %v2468_v13 }
0x1021   : > { %v2589_v16 = vpop.xlane.xlu0 %2588 }
0x1022   : > { %6376 = vpow2.f32 %v2471_v14  ;;  %v2593_v17 = vsub.f32 %v2585_v63, %v2589_v16  ;;  %v2473_v8 = vmul.f32 1.442695, %v2470_v59 }
0x1023   : > { %v2764_v60 = vpop.permute.xlu1 %2763 }
0x1024   : > { %v2595_v19 = vmul.f32 1.442695, %v2593_v17  ;;  %v2769_v5 = vsel %vm1210_vm3, %v2764_v60, 0 }
0x1025   : > { %v2592_v2 = vpop.xlane.xlu0 %2591 }
0x1026   : > { %6378 = vpow2.f32 %v2595_v19  ;;  %v2594_v20 = vsub.f32 %v2586_v15, %v2592_v2 }
0x1027   : > { %6380 = vpow2.f32 %v2473_v8 }
0x1028   : > { %v2597_v23 = vmul.f32 1.442695, %v2594_v20 }
0x102a   : > { %6382 = vpow2.f32 %v2597_v23 }
0x102c   : > { %v6377_v24 = vpop.eup %6376 }
0x102d   : > { %v2475_v26 = vsel %vm1210_vm3, %v6377_v24, 0.0 }
0x102e   : > { %2476 = vadd.xlane.f32.xlu0 %v2475_v26 }
0x1030   : > { %v6379_v11 = vpop.eup %6378 }
0x1031   : > { %v2599_v29 = vsel %vm1210_vm3, %v6379_v11, 0.0  ;;  %v6381_v32 = vpop.eup %6380 }
0x1032   : > { %2600 = vadd.xlane.f32.xlu0 %v2599_v29  ;;  %v2478_v36 = vsel %vm1210_vm3, %v6381_v32, 0.0 }
0x1034   : > { %v6383_v33 = vpop.eup %6382 }
0x1035   : > { %v2602_v39 = vsel %vm1210_vm3, %v6383_v33, 0.0 }
0x1036   : > { %2479 = vadd.xlane.f32.xlu0 %v2478_v36 }
0x103a   : > { %2603 = vadd.xlane.f32.xlu0 %v2602_v39 }
0x1050   : > { %2611 = vrot.lane.b32.xlu0 %v7909_v28, %s7157_s15 }
0x1054   : > { %2761 = vrot.lane.b32.xlu0 %v7907_v50, %s8383_s9 }
0x10bb   : > { %v2477_v22 = vpop.xlane.xlu0 %2476 }
0x10bc   : > { %6384 = vrcp.f32 %v2477_v22 }
0x10bf   : > { %v2601_v41 = vpop.xlane.xlu0 %2600 }
0x10c3   : > { %v2480_v37 = vpop.xlane.xlu0 %2479 }
0x10c4   : > { %6386 = vrcp.f32 %v2480_v37 }
0x10c6   : > { %v6385_v44 = vpop.eup %6384 }
0x10c7   : > { %v2604_v43 = vpop.xlane.xlu0 %2603  ;;  %v2482_v46 = vmul.f32 %v6385_v44, %v6377_v24 }
0x10c8   : > { %6388 = vrcp.f32 %v2604_v43 }
0x10c9   : > { %6390 = vrcp.f32 %v2601_v41 }
0x10cb   : > { %v2612_v49 = vpop.permute.xlu0 %2611 }
0x10ce   : > { %v6387_v27 = vpop.eup %6386 }
0x10cf   : > { %v2484_v30 = vmul.f32 %v6387_v27, %v6381_v32  ;;  %v2762_v6 = vpop.permute.xlu0 %2761 }
0x10d1   : > { %v2485_v47 = vpack.c.bf16 %v2484_v30, %v2482_v46 }
0x10d2   : > { %v6389_v48 = vpop.eup %6388 }
0x10d3   : > { %5774 = vmatmul.mubr.msk.bf16.vlgmr.msra.gmra.mrb[32].mxu0 %vm1210_vm3, %v2485_v47  ;;  %v6391_v25 = vpop.eup %6390  ;;  %v2608_v40 = vmul.f32 %v6389_v48, %v6383_v33 }
0x10d4   : > { %5784 = vmatpush3.bf16.msra.mxu0 %v2612_v49  ;;  %5785 = vmatprep.mubr.msk.bf16.mxu0 %vm7152_vm0, %v7151_v0  ;;  %v2606_v51 = vmul.f32 %v6391_v25, %v6379_v11 }
0x10d5   : > { %5795 = vmatprep.subr.bf16.mxu0 %v7151_v0 }
0x10d6   : > { %v2609_v52 = vpack.c.bf16 %v2608_v40, %v2606_v51 }
0x10db   : > { %5786 = vmatmul.mubr.msk.bf16.vlgmr.msra.gmra.mrb[36].mxu0 %vm1210_vm3, %v2609_v52  ;;  %v6238_v52 = vld [vmem:[#allocation20 + $0x10] sm:$0xff]  }
0x10dc   : > { %5797 = vmatprep.mubr.msk.bf16.mxu0 %vm7152_vm0, %v7151_v0  ;;  %5796 = vmatpush3.bf16.msra.mxu0 %v6236_v53 }
0x10dd   : > { %5807 = vmatprep.subr.bf16.mxu0 %v7151_v0 }
0x11a6   : > { %v2524_v34 = vpop.f32.mrb[32].mxu0 }
0x11a7   : > { %v5775_v42 = vpop.f32.mrb[33].mxu0 }
0x11a8   : > { %v2527_v55 = vpop.f32.mrb[34].mxu0 }
0x11a9   : > { %v2531_v31 = vpack.c.bf16 %v2527_v55, %v2524_v34  ;;  %v5776_v57 = vpop.f32.mrb[35].mxu0 }
0x11ab   : > { %5798 = vmatmul.mubr.msk.bf16.vlgmr.msra.gmra.mrb[40].mxu0 %vm1210_vm3, %v2531_v31 }
0x11ac   : > { %5809 = vmatprep.mubr.msk.bf16.mxu0 %vm7152_vm0, %v7151_v0 }
0x11ae   : > { %v2651_v58 = vpop.f32.mrb[36].mxu0 }
0x11af   : > { %v5787_v38 = vpop.f32.mrb[37].mxu0 }
0x11b0   : > { %v2654_v35 = vpop.f32.mrb[38].mxu0 }
0x11b1   : > { %v2658_v63 = vpack.c.bf16 %v2654_v35, %v2651_v58  ;;  %v5788_v4 = vpop.f32.mrb[39].mxu0 }
0x11b3   : > { %5792 = vmatmul.mubr.msk.bf16.vlgmr.msra.gmra.mrb[20].mxu1 %vm1210_vm3, %v2658_v63 }
0x11b4   : > { %5802 = vmatpush3.bf16.xpose.msra.mxu1 %v2769_v5  ;;  %5803 = vmatprep.mubr.msk.bf16.mxu1 %vm7152_vm0, %v7151_v0 }
0x11b5   : > { %5813 = vmatprep.subr.bf16.mxu1 %v7151_v0 }
0x11bb   : > { %5804 = vmatmul.mubr.msk.bf16.vlgmr.msra.gmra.mrb[24].mxu1 %vm1210_vm3, %v2762_v6 }
0x11bc   : > { %5815 = vmatprep.mubr.msk.bf16.mxu1 %vm7152_vm0, %v7151_v0  ;;  %5814 = vmatpush3.bf16.msra.mxu1 %v6238_v52 }
0x11bd   : > { %5825 = vmatprep.subr.bf16.mxu1 %v7151_v0 }
0x127e   : > { %v2754_v15 = vpop.f32.mrb[40].mxu0 }
0x127f   : > { %v5799_v7 = vpop.f32.mrb[41].mxu0 }
0x1280   : > { %v2757_v10 = vpop.f32.mrb[42].mxu0 }
0x1281   : > { %v5800_v18 = vpop.f32.mrb[43].mxu0 }
0x1286   : > { %v2704_v56 = vpop.f32.mrb[20].mxu1 }
0x1287   : > { %v7964_v12 = vadd.f32 %v2754_v15, %v2704_v56  ;;  %v5793_v13 = vpop.f32.mrb[21].mxu1 }
0x1288   : > { %v2707_v14 = vpop.f32.mrb[22].mxu1 }
0x1289   : > { %v7966_v59 = vadd.f32 %v2757_v10, %v2707_v14  ;;  %v5794_v16 = vpop.f32.mrb[23].mxu1 }
0x128e   : > { %v2805_v17 = vpop.f32.mrb[24].mxu1 }
0x128f   : > { %v2812_v8 = vmul.f32 0.25, %v2805_v17  ;;  %v5805_v19 = vpop.f32.mrb[25].mxu1  ;;  %v6239_v17 = vld [vmem:[#allocation20 + $0x18] sm:$0xff]  }
0x1290   : > { %v2808_v2 = vpop.f32.mrb[26].mxu1 }
0x1291   : > { %v2813_v20 = vmul.f32 0.25, %v2808_v2  ;;  %v5806_v23 = vpop.f32.mrb[27].mxu1  ;;  %v2814_v24 = vsel %vm1210_vm3, %v2812_v8, -inf }
0x1292   : > { %2815 = vmax.xlane.f32.xlu1 %v2814_v24 }
0x1293   : > { %v2817_v26 = vsel %vm1210_vm3, %v2813_v20, -inf }
0x1294   : > { %2818 = vmax.xlane.f32.xlu0 %v2817_v26 }
0x12a3   : > { %2837 = vrot.lane.b32.xlu1 %v7909_v28, %s8383_s9 }
0x12a7   : > { %2939 = vrot.lane.b32.xlu1 %v7907_v50, %s8381_s7 }
0x131f   : > { %v2816_v11 = vpop.xlane.xlu1 %2815 }
0x1320   : > { %v2820_v29 = vsub.f32 %v2812_v8, %v2816_v11 }
0x1321   : > { %v2819_v32 = vpop.xlane.xlu0 %2818 }
0x1322   : > { %v2822_v36 = vmul.f32 1.442695, %v2820_v29  ;;  %v2821_v33 = vsub.f32 %v2813_v20, %v2819_v32 }
0x1323   : > { %v2838_v39 = vpop.permute.xlu1 %2837 }
0x1324   : > { %6392 = vpow2.f32 %v2822_v36  ;;  %v2824_v22 = vmul.f32 1.442695, %v2821_v33  ;;  %5808 = vmatpush3.bf16.msra.mxu0 %v2838_v39 }
0x1325   : > { %5819 = vmatprep.subr.bf16.mxu0 %v7151_v0 }
0x1326   : > { %6394 = vpow2.f32 %v2824_v22 }
0x132e   : > { %v6393_v41 = vpop.eup %6392 }
0x132f   : > { %v2826_v37 = vsel %vm1210_vm3, %v6393_v41, 0.0 }
0x1330   : > { %v6395_v43 = vpop.eup %6394  ;;  %2827 = vadd.xlane.f32.xlu0 %v2826_v37 }
0x1331   : > { %v2829_v44 = vsel %vm1210_vm3, %v6395_v43, 0.0 }
0x1334   : > { %2830 = vadd.xlane.f32.xlu0 %v2829_v44 }
0x134a   : > { %2941 = vrot.lane.b32.xlu0 %v7907_v50, %s8380_s2  ;;  %v2940_v50 = vpop.permute.xlu1 %2939  ;;  %s8456_s2 = smov %s8455_s22 }
0x13bd   : > { %v2828_v27 = vpop.xlane.xlu0 %2827 }
0x13be   : > { %6396 = vrcp.f32 %v2828_v27 }
0x13c1   : > { %v2831_v46 = vpop.xlane.xlu0 %2830 }
0x13c2   : > { %6398 = vrcp.f32 %v2831_v46  ;;  %v5468_v46 = vld [vmem:[#allocation19 + $0x2] ss:$0 sm:$0xff] }
0x13c5   : > { %v2942_v25 = vpop.permute.xlu0 %2941 }
0x13c6   : > { %v2947_v51 = vsel %vm1210_vm3, %v2942_v25, 0 }
0x13c8   : > { %v6397_v30 = vpop.eup %6396 }
0x13c9   : > { %v2833_v48 = vmul.f32 %v6397_v30, %v6393_v41 }
0x13cc   : > { %v6399_v47 = vpop.eup %6398 }
0x13cd   : > { %v2835_v49 = vmul.f32 %v6399_v47, %v6395_v43 }
0x13cf   : > { %v2836_v40 = vpack.c.bf16 %v2835_v49, %v2833_v48 }
0x13d1   : > { %5810 = vmatmul.mubr.msk.bf16.vlgmr.msra.gmra.mrb[44].mxu0 %vm1210_vm3, %v2836_v40 }
0x13d2   : > { %5820 = vmatpush3.bf16.xpose.msra.mxu0 %v2947_v51  ;;  %5821 = vmatprep.mubr.msk.bf16.mxu0 %vm7152_vm0, %v7151_v0 }
0x13d3   : > { %5831 = vmatprep.subr.bf16.mxu0 %v7151_v0 }
0x13d9   : > { %5822 = vmatmul.mubr.msk.bf16.vlgmr.msra.gmra.mrb[48].mxu0 %vm1210_vm3, %v2940_v50 }
0x13da   : > { %5833 = vmatprep.mubr.msk.bf16.mxu0 %vm7152_vm0, %v7151_v0  ;;  %5832 = vmatpush3.bf16.msra.mxu0 %v6239_v17  ;;  %v6263_v17 = vld [vmem:[%s8456_s2 + $0x6c] ss:$16 sps:$4 sm:$0xff]  }
0x14a4   : > { %v2877_v53 = vpop.f32.mrb[44].mxu0 }
0x14a5   : > { %v5811_v54 = vpop.f32.mrb[45].mxu0 }
0x14a6   : > { %v2880_v34 = vpop.f32.mrb[46].mxu0 }
0x14a7   : > { %v2884_v42 = vpack.c.bf16 %v2880_v34, %v2877_v53  ;;  %v5812_v55 = vpop.f32.mrb[47].mxu0 }
0x14a9   : > { %5816 = vmatmul.mubr.msk.bf16.vlgmr.msra.gmra.mrb[28].mxu1 %vm1210_vm3, %v2884_v42 }
0x14aa   : > { %5827 = vmatprep.mubr.msk.bf16.mxu1 %vm7152_vm0, %v7151_v0 }
0x14ac   : > { %v2983_v31 = vpop.f32.mrb[48].mxu0 }
0x14ad   : > { %v2990_v57 = vmul.f32 0.25, %v2983_v31  ;;  %v5823_v58 = vpop.f32.mrb[49].mxu0 }
0x14ae   : > { %v2986_v38 = vpop.f32.mrb[50].mxu0 }
0x14af   : > { %v2991_v60 = vmul.f32 0.25, %v2986_v38  ;;  %v5824_v35 = vpop.f32.mrb[51].mxu0  ;;  %v2992_v63 = vsel %vm1210_vm3, %v2990_v57, -inf  ;;  %v6242_v38 = vld [vmem:[%s8455_s22 + $0x4] ss:$16 sps:$4 sm:$0xff]   ;;  %s8457_s22 = sld [smem:[#allocation58_spill]] }
0x14b0   : > { %2993 = vmax.xlane.f32.xlu1 %v2992_v63  ;;  %v6240_v35 = vld [vmem:[%s8456_s2] ss:$16 sps:$4 sm:$0xff]   ;;  %v6243_v63 = vld [vmem:[%s8456_s2 + $0x8] ss:$16 sps:$4 sm:$0xff]  }
0x14b1   : > { %v2995_v4 = vsel %vm1210_vm3, %v2991_v60, -inf }
0x14b2   : > { %2996 = vmax.xlane.f32.xlu0 %v2995_v4  ;;  %v6248_v4 = vld [vmem:[%s8456_s2 + $0x24] ss:$16 sps:$4 sm:$0xff]  }
0x153d   : > { %v2994_v5 = vpop.xlane.xlu1 %2993 }
0x153e   : > { %v2998_v6 = vsub.f32 %v2990_v57, %v2994_v5  ;;  %v6251_v5 = vld [vmem:[%s8456_s2 + $0x2c] ss:$16 sps:$4 sm:$0xff]  }
0x153f   : > { %v2997_v15 = vpop.xlane.xlu0 %2996 }
0x1540   : > { %v3000_v7 = vmul.f32 1.442695, %v2998_v6  ;;  %v2999_v10 = vsub.f32 %v2991_v60, %v2997_v15  ;;  %v6245_v60 = vld [vmem:[%s8456_s2 + $0xc] ss:$16 sps:$4 sm:$0xff]   ;;  %v6246_v6 = vld [vmem:[%s8456_s2 + $0x20] ss:$16 sps:$4 sm:$0xff]  }
0x1541   : > { %3331 = vmatprep.subr.bf16.mxu0 %v6245_v60  ;;  %v6249_v15 = vld [vmem:[%s8456_s2 + $0x28] ss:$16 sps:$4 sm:$0xff]  }
0x1542   : > { %6400 = vpow2.f32 %v3000_v7  ;;  %v3002_v18 = vmul.f32 1.442695, %v2999_v10  ;;  %v6254_v7 = vld [vmem:[%s8456_s2 + $0x44] ss:$16 sps:$4 sm:$0xff]   ;;  %v6257_v10 = vld [vmem:[%s8456_s2 + $0x4c] ss:$16 sps:$4 sm:$0xff]  }
0x1544   : > { %6402 = vpow2.f32 %v3002_v18  ;;  %v6252_v18 = vld [vmem:[%s8456_s2 + $0x40] ss:$16 sps:$4 sm:$0xff]  }
0x154c   : > { %v6401_v56 = vpop.eup %6400 }
0x154d   : > { %v3004_v13 = vsel %vm1210_vm3, %v6401_v56, 0.0 }
0x154e   : > { %v6403_v14 = vpop.eup %6402  ;;  %3005 = vadd.xlane.f32.xlu0 %v3004_v13  ;;  %v6258_v13 = vld [vmem:[%s8456_s2 + $0x60] ss:$16 sps:$4 sm:$0xff]  }
0x154f   : > { %v3007_v16 = vsel %vm1210_vm3, %v6403_v14, 0.0 }
0x1550   : > { %3008 = vadd.xlane.f32.xlu1 %v3007_v16  ;;  %v6261_v16 = vld [vmem:[%s8456_s2 + $0x68] ss:$16 sps:$4 sm:$0xff]  }
0x1564   : > { %3015 = vrot.lane.b32.xlu0 %v7909_v28, %s8381_s7  ;;  %s8458_s7 = smov %s8457_s22 }
0x157c   : > { %v2930_v8 = vpop.f32.mrb[28].mxu1 }
0x157d   : > { %v2937_v19 = vadd.f32 %v2930_v8, %v7964_v12  ;;  %v5817_v2 = vpop.f32.mrb[29].mxu1 }
0x157e   : > { %v2933_v20 = vpop.f32.mrb[30].mxu1 }
0x157f   : > { %v2938_v23 = vadd.f32 %v2933_v20, %v7966_v59  ;;  %v5818_v24 = vpop.f32.mrb[31].mxu1 }
0x15db   : > { %v3006_v26 = vpop.xlane.xlu0 %3005 }
0x15dc   : > { %6404 = vrcp.f32 %v3006_v26 }
0x15dd   : > { %v3009_v11 = vpop.xlane.xlu1 %3008 }
0x15de   : > { %6406 = vrcp.f32 %v3009_v11 }
0x15df   : > { %v3016_v29 = vpop.permute.xlu0 %3015 }
0x15e0   : > { %5826 = vmatpush3.bf16.msra.mxu1 %v3016_v29  ;;  %v5469_v29 = vld [vmem:[#allocation22] ss:$0 sm:$0xff] }
0x15e1   : > { %3288 = vmatprep.subr.bf16.mxu1 %v6242_v38 }
0x15e6   : > { %v6405_v32 = vpop.eup %6404 }
0x15e7   : > { %v3011_v33 = vmul.f32 %v6405_v32, %v6401_v56  ;;  %v6255_v56 = vld [vmem:[%s8456_s2 + $0x48] ss:$16 sps:$4 sm:$0xff]  }
0x15e8   : > { %v6407_v36 = vpop.eup %6406 }
0x15e9   : > { %v3013_v28 = vmul.f32 %v6407_v36, %v6403_v14  ;;  %v6260_v14 = vld [vmem:[%s8456_s2 + $0x64] ss:$16 sps:$4 sm:$0xff]  }
0x15eb   : > { %v3014_v39 = vpack.c.bf16 %v3013_v28, %v3011_v33  ;;  %v5470_v28 = vld [vmem:[#allocation22 + $0x1] ss:$0 sm:$0xff] }
0x15ed   : > { %5828 = vmatmul.mubr.msk.bf16.vlgmr.msra.gmra.mrb[32].mxu1 %vm1210_vm3, %v3014_v39 }
0x15ee   : > { %3320 = vmatprep.mubr.bf16.mxu1 %v7154_v45  ;;  %3289 = vmatpush1.bf16.msra.mxu1 %v6240_v35 }
0x15ef   : > { %3290 = vmatprep.subr.bf16.mxu1 %v6248_v4 }
0x15f2   : > { %3291 = vmatpush1.bf16.msra.mxu1 %v6246_v6 }
0x15f3   : > { %3292 = vmatprep.subr.bf16.mxu1 %v6254_v7 }
0x15f6   : > { %3293 = vmatpush1.bf16.msra.mxu1 %v6252_v18 }
0x15f7   : > { %3294 = vmatprep.subr.bf16.mxu1 %v6260_v14 }
0x15fa   : > { %3295 = vmatpush1.bf16.msra.mxu1 %v6258_v13 }
0x16c0   : > { %v3055_v12 = vpop.f32.mrb[32].mxu1 }
0x16c1   : > { %v5829_v22 = vpop.f32.mrb[33].mxu1 }
0x16c2   : > { %v3058_v41 = vpop.f32.mrb[34].mxu1 }
0x16c3   : > { %v3062_v59 = vpack.c.bf16 %v3058_v41, %v3055_v12  ;;  %v5830_v37 = vpop.f32.mrb[35].mxu1 }
0x16c4   : > { %v6265_v37 = vld [vmem:[%s8458_s7] sm:$0xff]  }
0x16c5   : > { %5834 = vmatmul.mubr.msk.bf16.vlgmr.msra.gmra.mrb[52].mxu0 %vm1210_vm3, %v3062_v59  ;;  %v6264_v59 = vld [vmem:[%s8457_s22 + $0x40] sm:$0xff]   ;;  %s8459_s22 = sld [smem:[#allocation60_spill]] }
0x16c6   : > { %3363 = vmatprep.mubr.bf16.mxu0 %v7154_v45  ;;  %3332 = vmatpush1.bf16.msra.mxu0 %v6243_v63 }
0x16c7   : > { %3333 = vmatprep.subr.bf16.mxu0 %v6251_v5  ;;  %5641 = vmatprep.subr.bf16.mxu1 %v6264_v59 }
0x16ca   : > { %3334 = vmatpush1.bf16.msra.mxu0 %v6249_v15 }
0x16cb   : > { %3335 = vmatprep.subr.bf16.mxu0 %v6257_v10  ;;  %s8460_s9 = smov %s8459_s22 }
0x16ce   : > { %3336 = vmatpush1.bf16.msra.mxu0 %v6255_v56 }
0x16cf   : > { %3337 = vmatprep.subr.bf16.mxu0 %v6263_v17 }
0x16d2   : > { %3338 = vmatpush1.bf16.msra.mxu0 %v6261_v16 }
0x1798   : > { %v3108_v43 = vpop.f32.mrb[52].mxu0 }
0x1799   : > { %v3115_v44 = vadd.f32 %v3108_v43, %v2937_v19  ;;  %v5835_v27 = vpop.f32.mrb[53].mxu0  ;;  %v6266_v43 = vld [vmem:[%s8458_s7 + $0x48] sm:$0xff]  }
0x179a   : > { %v3111_v30 = vpop.f32.mrb[54].mxu0  ;;  %v6268_v27 = vld [vmem:[%s8458_s7 + $0x50] sm:$0xff]  }
0x179b   : > { %v3117_v47 = vadd.f32 %v3115_v44, %v7882_v61  ;;  %v3116_v48 = vadd.f32 %v3111_v30, %v2938_v23  ;;  %v5836_v49 = vpop.f32.mrb[55].mxu0  ;;  %v6267_v44 = vld [vmem:[%s8458_s7 + $0x8] sm:$0xff]   ;;  %v6270_v30 = vld [vmem:[%s8458_s7 + $0x58] sm:$0xff]  }
0x179c   : > { %v6273_v49 = vld [vmem:[%s8458_s7 + $0x20] sm:$0xff]  }
0x179d   : > { %v8004_v25 = vadd.f32 %v5468_v46, %v3117_v47  ;;  %v3118_v40 = vadd.f32 %v3116_v48, %v7885_v62  ;;  %v6271_v47 = vld [vmem:[%s8458_s7 + $0x18] sm:$0xff]   ;;  %v6272_v48 = vld [vmem:[%s8458_s7 + $0x60] sm:$0xff]  }
0x179f   : > { %v8007_v51 = vadd.f32 %v5468_v46, %v3118_v40  ;;  %v3126_v50 = vsel %vm1308_vm2, %v8004_v25, 0.0  ;;  %v6269_v46 = vld [vmem:[%s8458_s7 + $0x10] sm:$0xff]   ;;  %v6274_v40 = vld [vmem:[%s8458_s7 + $0x68] sm:$0xff]  }
0x17a0   : > { %3127 = vadd.xlane.f32.xlu1 %v3126_v50  ;;  %v6275_v50 = vld [vmem:[%s8458_s7 + $0x28] sm:$0xff]  }
0x17a1   : > { %v3129_v52 = vsel %vm1308_vm2, %v8007_v51, 0.0 }
0x17a4   : > { %3130 = vadd.xlane.f32.xlu1 %v3129_v52  ;;  %v6276_v52 = vld [vmem:[%s8458_s7 + $0x70] sm:$0xff]  }
0x182d   : > { %v3128_v61 = vpop.xlane.xlu1 %3127 }
0x182e   : > { %v3132_v53 = vmul.f32 0.015625, %v3128_v61  ;;  %v6277_v61 = vld [vmem:[%s8458_s7 + $0x30] sm:$0xff]  }
0x1830   : > { %v3134_v54 = vsub.f32 %v8004_v25, %v3132_v53  ;;  %v6278_v53 = vld [vmem:[%s8458_s7 + $0x78] sm:$0xff]  }
0x1831   : > { %v3131_v34 = vpop.xlane.xlu1 %3130 }
0x1832   : > { %v3133_v62 = vmul.f32 0.015625, %v3131_v34  ;;  %v3136_v42 = vmul.f32 %v3134_v54, %v3134_v54  ;;  %v8053_v34 = vld [vmem:[#allocation23] sm:$0xf] }
0x1834   : > { %v3135_v55 = vsub.f32 %v8007_v51, %v3133_v62  ;;  %v3138_v31 = vsel %vm1308_vm2, %v3136_v42, 0.0  ;;  %v3196_v62 = vrot.slane %v8053_v34, %v7814_v21  ;;  %v3200_v42 = vrot.slane %v8053_v34, %v7819_v9 }
0x1835   : > { %3139 = vadd.xlane.f32.xlu1 %v3138_v31 }
0x1836   : > { %v3137_v57 = vmul.f32 %v3135_v55, %v3135_v55 }
0x1838   : > { %v3141_v58 = vsel %vm1308_vm2, %v3137_v57, 0.0 }
0x1839   : > { %3142 = vadd.xlane.f32.xlu1 %v3141_v58 }
0x18c2   : > { %v3140_v8 = vpop.xlane.xlu1 %3139 }
0x18c3   : > { %v3144_v19 = vmul.f32 0.015625, %v3140_v8 }
0x18c5   : > { %v3146_v2 = vadd.f32 1e-05, %v3144_v19 }
0x18c6   : > { %v3143_v20 = vpop.xlane.xlu1 %3142 }
0x18c7   : > { %6408 = vrsqrt.f32 %v3146_v2  ;;  %v3145_v23 = vmul.f32 0.015625, %v3143_v20 }
0x18c9   : > { %v3147_v24 = vadd.f32 1e-05, %v3145_v23 }
0x18cb   : > { %6410 = vrsqrt.f32 %v3147_v24 }
0x18d1   : > { %v6409_v26 = vpop.eup %6408 }
0x18d2   : > { %v3150_v11 = vmul.f32 %v6409_v26, %v3134_v54  ;;  %v6279_v54 = vld [vmem:[%s8458_s7 + $0x38] sm:$0xff]  }
0x18d4   : > { %v3157_v36 = vmul.f32 %v5469_v29, %v3150_v11 }
0x18d5   : > { %v6411_v32 = vpop.eup %6410 }
0x18d6   : > { %v3151_v33 = vmul.f32 %v6411_v32, %v3135_v55  ;;  %v3164_v12 = vadd.f32 %v5470_v28, %v3157_v36 }
0x18d8   : > { %v3158_v39 = vmul.f32 %v5469_v29, %v3151_v33 }
0x18da   : > { %v3165_v22 = vadd.f32 %v5470_v28, %v3158_v39 }
0x18dc   : > { %v3166_v41 = vpack.c.bf16 %v3165_v22, %v3164_v12 }
0x18de   : > { %5487 = vmatmul.mubr.msk.bf16.vlgmr.msra.gmra.mrb[36].mxu1 %vm1308_vm2, %v3166_v41  ;;  %5488 = vmatmul.mubr.msk.bf16.vlgmr.msra.gmra.mrb[56].mxu0 %vm1308_vm2, %v3166_v41 }
0x18df   : > { %3788 = vmatprep.mubr.bf16.mxu0 %v7154_v45  ;;  %5642 = vmatpush3.bf16.msra.mxu1 %v6265_v37 }
0x18e0   : > { %5643 = vmatprep.subr.bf16.mxu1 %v6266_v43 }
0x18e3   : > { %5644 = vmatpush3.bf16.msra.mxu1 %v6267_v44 }
0x18e4   : > { %5645 = vmatprep.subr.bf16.mxu1 %v6268_v27 }
0x18e7   : > { %5646 = vmatpush3.bf16.msra.mxu1 %v6269_v46 }
0x18e8   : > { %5647 = vmatprep.subr.bf16.mxu1 %v6270_v30 }
0x18eb   : > { %5648 = vmatpush3.bf16.msra.mxu1 %v6271_v47 }
0x18ec   : > { %5649 = vmatprep.subr.bf16.mxu1 %v6272_v48 }
0x18ef   : > { %5650 = vmatpush3.bf16.msra.mxu1 %v6273_v49 }
0x18f0   : > { %5651 = vmatprep.subr.bf16.mxu1 %v6274_v40 }
0x18f3   : > { %5652 = vmatpush3.bf16.msra.mxu1 %v6275_v50 }
0x18f4   : > { %5653 = vmatprep.subr.bf16.mxu1 %v6276_v52 }
0x18f7   : > { %5654 = vmatpush3.bf16.msra.mxu1 %v6277_v61 }
0x18f8   : > { %5655 = vmatprep.subr.bf16.mxu1 %v6278_v53 }
0x18fb   : > { %5656 = vmatpush3.bf16.msra.mxu1 %v6279_v54 }
0x18fc   : > { %5849 = vmatprep.subr.bf16.mxu1 %v7151_v0 }
0x19b1   : > { %v8059_v55 = vpop.f32.mrb[36].mxu1  ;;  %v3365_v31 = vpop.f32.mrb[56].mxu0 }
0x19b2   : > { %v8061_v57 = vadd.f32 %v3365_v31, %v3196_v62  ;;  %v8063_v58 = vpop.f32.mrb[37].mxu1  ;;  %v3367_v38 = vpop.f32.mrb[57].mxu0 }
0x19b3   : > { %v8065_v60 = vadd.f32 %v3367_v38, %v3200_v42  ;;  %v8067_v35 = vpop.f32.mrb[38].mxu1  ;;  %v3369_v63 = vpop.f32.mrb[58].mxu0 }
0x19b4   : > { %v8070_v4 = vmul.f32 0.70710677, %v8061_v57  ;;  %v8072_v5 = vadd.f32 %v3369_v63, %v3196_v62  ;;  %v8074_v6 = vpop.f32.mrb[39].mxu1  ;;  %v3371_v15 = vpop.f32.mrb[59].mxu0 }
0x19b5   : > { %v8077_v7 = vmul.f32 0.70710677, %v8065_v60  ;;  %v8079_v10 = vadd.f32 %v3371_v15, %v3200_v42 }
0x19b6   : > { %v3382_v18 = vand.u32 2147483647, %v8070_v4  ;;  %v8083_v56 = vmul.f32 0.70710677, %v8072_v5  ;;  %vm3462_vm10 = vcmp.ge.f32.partialorder %v8070_v4, 0.0 }
0x19b7   : > { %v3383_v13 = vand.u32 2147483647, %v8077_v7  ;;  %v8087_v14 = vmul.f32 0.70710677, %v8079_v10  ;;  %vm3463_vm11 = vcmp.ge.f32.partialorder %v8077_v7, 0.0 }
0x19b8   : > { %v3386_v16 = vmul.f32 0.3275911, %v3382_v18  ;;  %v3384_v17 = vand.u32 2147483647, %v8083_v56  ;;  %v3438_v29 = vsub.f32 0.0, %v3382_v18  ;;  %vm3464_vm12 = vcmp.ge.f32.partialorder %v8083_v56, 0.0 }
0x19b9   : > { %v3387_v8 = vmul.f32 0.3275911, %v3383_v13  ;;  %v3385_v19 = vand.u32 2147483647, %v8087_v14  ;;  %v3439_v32 = vsub.f32 0.0, %v3383_v13  ;;  %vm3465_vm13 = vcmp.ge.f32.partialorder %v8087_v14, 0.0 }
0x19ba   : > { %v3390_v2 = vadd.f32 1.0, %v3386_v16  ;;  %v3388_v20 = vmul.f32 0.3275911, %v3384_v17  ;;  %v3442_v33 = vmul.f32 %v3438_v29, %v3382_v18  ;;  %v3440_v28 = vsub.f32 0.0, %v3384_v17  ;;  %v5489_v14 = vld [vmem:[#allocation22 + $0x2] ss:$0 sm:$0xff] }
0x19bb   : > { %v3391_v23 = vadd.f32 1.0, %v3387_v8  ;;  %v3389_v24 = vmul.f32 0.3275911, %v3385_v19  ;;  %v3443_v22 = vmul.f32 %v3439_v32, %v3383_v13  ;;  %v3441_v59 = vsub.f32 0.0, %v3385_v19 }
0x19bc   : > { %6412 = vrcp.f32 %v3390_v2  ;;  %v3392_v26 = vadd.f32 1.0, %v3388_v20  ;;  %v3446_v44 = vmul.f32 1.442695, %v3442_v33  ;;  %v3444_v46 = vmul.f32 %v3440_v28, %v3384_v17 }
0x19bd   : > { %6414 = vrcp.f32 %v3391_v23  ;;  %v3393_v11 = vadd.f32 1.0, %v3389_v24  ;;  %v3448_v47 = vmul.f32 1.442695, %v3443_v22  ;;  %v3445_v50 = vmul.f32 %v3441_v59, %v3385_v19 }
0x19be   : > { %6416 = vrcp.f32 %v3392_v26  ;;  %v3450_v62 = vmul.f32 1.442695, %v3444_v46 }
0x19bf   : > { %6418 = vrcp.f32 %v3393_v11  ;;  %v3452_v15 = vmul.f32 1.442695, %v3445_v50 }
0x19c0   : > { %6420 = vpow2.f32 %v3446_v44 }
0x19c1   : > { %6422 = vpow2.f32 %v3448_v47 }
0x19c2   : > { %6424 = vpow2.f32 %v3450_v62 }
0x19c3   : > { %6426 = vpow2.f32 %v3452_v15 }
0x19c6   : > { %v6413_v36 = vpop.eup %6412 }
0x19c7   : > { %v6415_v39 = vpop.eup %6414  ;;  %v3402_v12 = vmul.f32 1.0614054, %v6413_v36 }
0x19c8   : > { %v3403_v41 = vmul.f32 1.0614054, %v6415_v39  ;;  %v6417_v43 = vpop.eup %6416 }
0x19c9   : > { %v3406_v37 = vadd.f32 -1.4531521, %v3402_v12  ;;  %v3404_v48 = vmul.f32 1.0614054, %v6417_v43  ;;  %v6419_v49 = vpop.eup %6418 }
0x19ca   : > { %v3407_v27 = vadd.f32 -1.4531521, %v3403_v41  ;;  %v3405_v53 = vmul.f32 1.0614054, %v6419_v49  ;;  %v6421_v28 = vpop.eup %6420 }
0x19cb   : > { %v3410_v30 = vmul.f32 %v6413_v36, %v3406_v37  ;;  %v3408_v61 = vadd.f32 -1.4531521, %v3404_v48  ;;  %v6423_v22 = vpop.eup %6422 }
0x19cc   : > { %v3411_v40 = vmul.f32 %v6415_v39, %v3407_v27  ;;  %v3409_v38 = vadd.f32 -1.4531521, %v3405_v53  ;;  %v6425_v47 = vpop.eup %6424 }
0x19cd   : > { %v3414_v52 = vadd.f32 1.4214138, %v3410_v30  ;;  %v3412_v31 = vmul.f32 %v6417_v43, %v3408_v61  ;;  %v6427_v61 = vpop.eup %6426 }
0x19ce   : > { %v3415_v54 = vadd.f32 1.4214138, %v3411_v40  ;;  %v3413_v16 = vmul.f32 %v6419_v49, %v3409_v38 }
0x19cf   : > { %v3418_v42 = vmul.f32 %v6413_v36, %v3414_v52  ;;  %v3416_v13 = vadd.f32 1.4214138, %v3412_v31 }
0x19d0   : > { %v3419_v63 = vmul.f32 %v6415_v39, %v3415_v54  ;;  %v3417_v19 = vadd.f32 1.4214138, %v3413_v16 }
0x19d1   : > { %v3422_v18 = vadd.f32 -0.28449672, %v3418_v42  ;;  %v3420_v2 = vmul.f32 %v6417_v43, %v3416_v13  ;;  %v3374_v42 = vmul.f32 0.5, %v8061_v57  ;;  %v3376_v57 = vmul.f32 0.5, %v8072_v5 }
0x19d2   : > { %v3423_v17 = vadd.f32 -0.28449672, %v3419_v63  ;;  %v3421_v26 = vmul.f32 %v6419_v49, %v3417_v19 }
0x19d3   : > { %v3426_v8 = vmul.f32 %v6413_v36, %v3422_v18  ;;  %v3424_v24 = vadd.f32 -0.28449672, %v3420_v2 }
0x19d4   : > { %v3427_v20 = vmul.f32 %v6415_v39, %v3423_v17  ;;  %v3425_v33 = vadd.f32 -0.28449672, %v3421_v26 }
0x19d5   : > { %v3430_v23 = vadd.f32 0.2548296, %v3426_v8  ;;  %v3428_v32 = vmul.f32 %v6417_v43, %v3424_v24 }
0x19d6   : > { %v3431_v11 = vadd.f32 0.2548296, %v3427_v20  ;;  %v3429_v37 = vmul.f32 %v6419_v49, %v3425_v33 }
0x19d7   : > { %v3434_v29 = vmul.f32 %v6413_v36, %v3430_v23  ;;  %v3432_v59 = vadd.f32 0.2548296, %v3428_v32  ;;  %v3188_v36 = vrot.slane %v8053_v34, %v7858_v1 }
0x19d8   : > { %v3435_v12 = vmul.f32 %v6415_v39, %v3431_v11  ;;  %v3433_v30 = vadd.f32 0.2548296, %v3429_v37  ;;  %v3192_v39 = vrot.slane %v8053_v34, %v7861_v3 }
0x19d9   : > { %v3454_v41 = vmul.f32 %v6421_v28, %v3434_v29  ;;  %v3436_v46 = vmul.f32 %v6417_v43, %v3432_v59  ;;  %v3323_v4 = vadd.f32 %v8059_v55, %v3188_v36  ;;  %v3327_v20 = vadd.f32 %v8067_v35, %v3188_v36  ;;  %v6280_v36 = vld [vmem:[%s8460_s9] ss:$8 sps:$4 sm:$0xff]  }
0x19da   : > { %v3455_v44 = vmul.f32 %v6423_v22, %v3435_v12  ;;  %v3437_v52 = vmul.f32 %v6419_v49, %v3433_v30  ;;  %v3375_v49 = vmul.f32 0.5, %v8065_v60  ;;  %v3325_v34 = vadd.f32 %v8063_v58, %v3192_v39 }
0x19db   : > { %v3458_v27 = vsub.f32 1.0, %v3454_v41  ;;  %v3456_v50 = vmul.f32 %v6425_v47, %v3436_v46  ;;  %v3377_v55 = vmul.f32 0.5, %v8079_v10  ;;  %v3329_v58 = vadd.f32 %v8074_v6, %v3192_v39  ;;  %v6285_v39 = vld [vmem:[%s8460_s9 + $0x14] ss:$8 sps:$4 sm:$0xff]  }
0x19dc   : > { %v3459_v48 = vsub.f32 1.0, %v3455_v44  ;;  %v3457_v62 = vmul.f32 %v6427_v61, %v3437_v52  ;;  %v6282_v61 = vld [vmem:[%s8459_s22 + $0x4] ss:$8 sps:$4 sm:$0xff]   ;;  %s8465_s22 = sld [smem:[#allocation63_spill]] }
0x19dd   : > { %v3466_v40 = vsub.f32 0.0, %v3458_v27  ;;  %v3460_v43 = vsub.f32 1.0, %v3456_v50  ;;  %3756 = vmatprep.subr.bf16.mxu0 %v6282_v61 }
0x19de   : > { %v3467_v53 = vsub.f32 0.0, %v3459_v48  ;;  %v3461_v18 = vsub.f32 1.0, %v3457_v62  ;;  %3757 = vmatpush1.bf16.msra.mxu0 %v6280_v36  ;;  %v6289_v62 = vld [vmem:[%s8460_s9 + $0x30] ss:$8 sps:$4 sm:$0xff]  }
0x19df   : > { %v3470_v54 = vsel %vm3462_vm10, %v3458_v27, %v3466_v40  ;;  %v3468_v15 = vsub.f32 0.0, %v3460_v43  ;;  %3758 = vmatprep.subr.bf16.mxu0 %v6285_v39 }
0x19e0   : > { %v3474_v31 = vadd.f32 1.0, %v3470_v54  ;;  %v3471_v38 = vsel %vm3463_vm11, %v3459_v48, %v3467_v53  ;;  %v3469_v17 = vsub.f32 0.0, %v3461_v18  ;;  %v6283_v53 = vld [vmem:[%s8460_s9 + $0x10] ss:$8 sps:$4 sm:$0xff]   ;;  %v6288_v54 = vld [vmem:[%s8460_s9 + $0x24] ss:$8 sps:$4 sm:$0xff]  }
0x19e1   : > { %v3475_v63 = vadd.f32 1.0, %v3471_v38  ;;  %v3472_v7 = vsel %vm3464_vm12, %v3460_v43, %v3468_v15  ;;  %v6286_v43 = vld [vmem:[%s8460_s9 + $0x20] ss:$8 sps:$4 sm:$0xff]  }
0x19e2   : > { %v3478_v13 = vmul.f32 %v3474_v31, %v3374_v42  ;;  %v3476_v2 = vadd.f32 1.0, %v3472_v7  ;;  %v3473_v60 = vsel %vm3465_vm13, %v3461_v18, %v3469_v17  ;;  %3759 = vmatpush1.bf16.msra.mxu0 %v6283_v53  ;;  %v6291_v42 = vld [vmem:[%s8460_s9 + $0x34] ss:$8 sps:$4 sm:$0xff]  }
0x19e3   : > { %v3479_v16 = vmul.f32 %v3475_v63, %v3375_v49  ;;  %v3477_v24 = vadd.f32 1.0, %v3473_v60  ;;  %3760 = vmatprep.subr.bf16.mxu0 %v6288_v54 }
0x19e4   : > { %v3482_v8 = vmul.f32 %v3478_v13, %v3323_v4  ;;  %v3480_v23 = vmul.f32 %v3476_v2, %v3376_v57 }
0x19e5   : > { %v3483_v19 = vmul.f32 %v3479_v16, %v3325_v34  ;;  %v3481_v26 = vmul.f32 %v3477_v24, %v3377_v55  ;;  %v5506_v34 = vld [vmem:[#allocation25] ss:$0 sm:$0xff] }
0x19e6   : > { %v3484_v56 = vmul.f32 %v3480_v23, %v3327_v20  ;;  %3761 = vmatpush1.bf16.msra.mxu0 %v6286_v43 }
0x19e7   : > { %v3485_v11 = vmul.f32 %v3481_v26, %v3329_v58  ;;  %3762 = vmatprep.subr.bf16.mxu0 %v6291_v42 }
0x19e8   : > { %v3486_v29 = vpack.c.bf16 %v3484_v56, %v3482_v8  ;;  %v5507_v8 = vld [vmem:[#allocation25 + $0x1] ss:$0 sm:$0xff] }
0x19e9   : > { %v3487_v32 = vpack.c.bf16 %v3485_v11, %v3483_v19 }
0x19ea   : > { %3763 = vmatpush1.bf16.msra.mxu0 %v6289_v62 }
0x19eb   : > { %3653 = vmatprep.mubr.bf16.mxu1 %v3487_v32  ;;  %5837 = vmatprep.subr.bf16.mxu0 %v7151_v0 }
0x19ec   : > { %3654 = vmatmul.mubr.bf16.vlgmr.msra.gmra.mrb[40].mxu1 %v3486_v29 }
0x19ed   : > { %5851 = vmatprep.mubr.msk.bf16.mxu1 %vm7152_vm0, %v7151_v0 }
0x1abf   : > { %v5657_v5 = vpop.f32.mrb[40].mxu1 }
0x1ac0   : > { %v5658_v33 = vpop.f32.mrb[41].mxu1 }
0x1ac1   : > { %v5659_v35 = vadd.f32 %v5658_v33, %v5657_v5  ;;  %v5660_v28 = vpop.f32.mrb[42].mxu1 }
0x1ac2   : > { %v5661_v12 = vpop.f32.mrb[43].mxu1 }
0x1ac3   : > { %v3656_v10 = vadd.f32 %v5659_v35, %v5489_v14  ;;  %v5662_v22 = vadd.f32 %v5661_v12, %v5660_v28 }
0x1ac5   : > { %v8110_v41 = vadd.f32 %v3656_v10, %v8004_v25  ;;  %v3659_v6 = vadd.f32 %v5662_v22, %v5489_v14 }
0x1ac7   : > { %v8113_v59 = vadd.f32 %v3659_v6, %v8007_v51  ;;  %v3664_v37 = vsel %vm1308_vm2, %v8110_v41, 0.0 }
0x1ac8   : > { %3665 = vadd.xlane.f32.xlu1 %v3664_v37 }
0x1ac9   : > { %v3667_v44 = vsel %vm1308_vm2, %v8113_v59, 0.0 }
0x1acc   : > { %3668 = vadd.xlane.f32.xlu1 %v3667_v44 }
0x1b55   : > { %v3666_v27 = vpop.xlane.xlu1 %3665 }
0x1b56   : > { %v3670_v46 = vmul.f32 0.015625, %v3666_v27 }
0x1b58   : > { %v3672_v25 = vsub.f32 %v8110_v41, %v3670_v46 }
0x1b59   : > { %v3669_v30 = vpop.xlane.xlu1 %3668 }
0x1b5a   : > { %v3671_v47 = vmul.f32 0.015625, %v3669_v30  ;;  %v3674_v51 = vmul.f32 %v3672_v25, %v3672_v25 }
0x1b5c   : > { %v3673_v48 = vsub.f32 %v8113_v59, %v3671_v47  ;;  %v3676_v40 = vsel %vm1308_vm2, %v3674_v51, 0.0 }
0x1b5d   : > { %3677 = vadd.xlane.f32.xlu0 %v3676_v40 }
0x1b5e   : > { %v3675_v50 = vmul.f32 %v3673_v48, %v3673_v48 }
0x1b60   : > { %v3679_v52 = vsel %vm1308_vm2, %v3675_v50, 0.0 }
0x1b61   : > { %3680 = vadd.xlane.f32.xlu1 %v3679_v52 }
0x1bea   : > { %v3678_v31 = vpop.xlane.xlu0 %3677 }
0x1beb   : > { %v3682_v38 = vmul.f32 0.015625, %v3678_v31 }
0x1bed   : > { %v3684_v49 = vadd.f32 1e-05, %v3682_v38 }
0x1bee   : > { %v3681_v63 = vpop.xlane.xlu1 %3680 }
0x1bef   : > { %6428 = vrsqrt.f32 %v3684_v49  ;;  %v3683_v15 = vmul.f32 0.015625, %v3681_v63 }
0x1bf1   : > { %v3685_v18 = vadd.f32 1e-05, %v3683_v15 }
0x1bf3   : > { %6430 = vrsqrt.f32 %v3685_v18 }
0x1bf9   : > { %v6429_v4 = vpop.eup %6428 }
0x1bfa   : > { %v3688_v13 = vmul.f32 %v6429_v4, %v3672_v25 }
0x1bfc   : > { %v3695_v7 = vmul.f32 %v5506_v34, %v3688_v13 }
0x1bfd   : > { %v6431_v16 = vpop.eup %6430 }
0x1bfe   : > { %v3689_v17 = vmul.f32 %v6431_v16, %v3673_v48  ;;  %v3702_v2 = vadd.f32 %v5507_v8, %v3695_v7 }
0x1c00   : > { %v3696_v57 = vmul.f32 %v5506_v34, %v3689_v17 }
0x1c02   : > { %v3703_v60 = vadd.f32 %v5507_v8, %v3696_v57 }
0x1c04   : > { %v3704_v19 = vpack.c.bf16 %v3703_v60, %v3702_v2 }
0x1c06   : > { %5516 = vmatmul.mubr.msk.bf16.vlgmr.msra.gmra.mrb[60].mxu0 %vm1308_vm2, %v3704_v19 }
0x1c07   : > { %5839 = vmatprep.mubr.msk.bf16.mxu0 %vm7152_vm0, %v7151_v0 }
0x1cd9   : > { %v3790_v20 = vpop.f32.mrb[60].mxu0 }
0x1cda   : > { %v3792_v23 = vpop.f32.mrb[61].mxu0 }
0x1cdb   : > { %v3794_v55 = vpop.f32.mrb[62].mxu0 }
0x1cdc   : > { %v8135_v24 = vpack.c.bf16 %v3794_v55, %v3790_v20  ;;  %v3796_v56 = vpop.f32.mrb[63].mxu0 }
0x1cdd   : > { %v8137_v58 = vpack.c.bf16 %v3796_v56, %v3792_v23 }
0x1cde   : > { %3801 = vrot.lane.b32.xlu1 %v8135_v24, %s7155_s6  ;;  %s8461_s6 = smov 96  }
0x1ce2   : > { %3925 = vrot.lane.b32.xlu1 %v8135_v24, %s7156_s28  ;;  %s8462_s28 = smov 80  }
0x1ce6   : > { %3923 = vrot.lane.b32.xlu1 %v8135_v24, %s7157_s15 }
0x1d50   : > { %v3802_v26 = vpop.permute.xlu1 %3801 }
0x1d51   : > { %v3807_v11 = vsel %vm1210_vm3, %v3802_v26, 0 }
0x1d52   : > { %5838 = vmatpush3.bf16.xpose.msra.mxu0 %v3807_v11 }
0x1d53   : > { %5843 = vmatprep.subr.bf16.mxu0 %v7151_v0 }
0x1d54   : > { %v3926_v29 = vpop.permute.xlu1 %3925 }
0x1d55   : > { %v3931_v32 = vsel %vm1210_vm3, %v3926_v29, 0  ;;  %v6292_v29 = vld [vmem:[#allocation26] sm:$0xff]  }
0x1d56   : > { %5850 = vmatpush3.bf16.xpose.msra.mxu1 %v3931_v32  ;;  %v6293_v32 = vld [vmem:[#allocation26 + $0x8] sm:$0xff]  }
0x1d57   : > { %5861 = vmatprep.subr.bf16.mxu1 %v7151_v0 }
0x1d58   : > { %v3924_v5 = vpop.permute.xlu1 %3923 }
0x1d59   : > { %5840 = vmatmul.mubr.msk.bf16.vlgmr.msra.gmra.mrb[64].mxu0 %vm1210_vm3, %v8135_v24 }
0x1d5a   : > { %5844 = vmatpush3.bf16.msra.mxu0 %v8137_v58  ;;  %5845 = vmatprep.mubr.msk.bf16.mxu0 %vm7152_vm0, %v7151_v0 }
0x1d5b   : > { %5855 = vmatprep.subr.bf16.mxu0 %v7151_v0 }
0x1d5d   : > { %5852 = vmatmul.mubr.msk.bf16.vlgmr.msra.gmra.mrb[44].mxu1 %vm1210_vm3, %v3924_v5 }
0x1d5e   : > { %5863 = vmatprep.mubr.msk.bf16.mxu1 %vm7152_vm0, %v7151_v0  ;;  %5862 = vmatpush3.bf16.msra.mxu1 %v6293_v32 }
0x1d5f   : > { %5873 = vmatprep.subr.bf16.mxu1 %v7151_v0 }
0x1e2c   : > { %v3843_v14 = vpop.f32.mrb[64].mxu0 }
0x1e2d   : > { %v3850_v33 = vmul.f32 0.25, %v3843_v14  ;;  %v5841_v35 = vpop.f32.mrb[65].mxu0 }
0x1e2e   : > { %v3846_v28 = vpop.f32.mrb[66].mxu0 }
0x1e2f   : > { %v3851_v12 = vmul.f32 0.25, %v3846_v28  ;;  %v5842_v10 = vpop.f32.mrb[67].mxu0  ;;  %v3852_v22 = vsel %vm1210_vm3, %v3850_v33, -inf }
0x1e30   : > { %v3967_v6 = vpop.f32.mrb[44].mxu1  ;;  %3853 = vmax.xlane.f32.xlu0 %v3852_v22 }
0x1e31   : > { %v3974_v37 = vmul.f32 0.25, %v3967_v6  ;;  %v5853_v44 = vpop.f32.mrb[45].mxu1  ;;  %v3855_v27 = vsel %vm1210_vm3, %v3851_v12, -inf }
0x1e32   : > { %v3970_v46 = vpop.f32.mrb[46].mxu1  ;;  %3856 = vmax.xlane.f32.xlu1 %v3855_v27 }
0x1e33   : > { %v3975_v25 = vmul.f32 0.25, %v3970_v46  ;;  %v5854_v30 = vpop.f32.mrb[47].mxu1  ;;  %v3976_v47 = vsel %vm1210_vm3, %v3974_v37, -inf }
0x1e34   : > { %3977 = vmax.xlane.f32.xlu0 %v3976_v47 }
0x1e35   : > { %v3979_v51 = vsel %vm1210_vm3, %v3975_v25, -inf }
0x1e38   : > { %3980 = vmax.xlane.f32.xlu0 %v3979_v51 }
0x1e43   : > { %4152 = vrot.lane.b32.xlu1 %v8135_v24, %s7158_s0  ;;  %s8464_s0 = sld [smem:[#allocation62_spill]] }
0x1ebd   : > { %v3854_v48 = vpop.xlane.xlu0 %3853 }
0x1ebe   : > { %v3858_v40 = vsub.f32 %v3850_v33, %v3854_v48 }
0x1ebf   : > { %v3857_v50 = vpop.xlane.xlu1 %3856 }
0x1ec0   : > { %v3860_v52 = vmul.f32 1.442695, %v3858_v40  ;;  %v3859_v61 = vsub.f32 %v3851_v12, %v3857_v50 }
0x1ec1   : > { %v3978_v36 = vpop.xlane.xlu0 %3977 }
0x1ec2   : > { %6432 = vpow2.f32 %v3860_v52  ;;  %v3982_v39 = vsub.f32 %v3974_v37, %v3978_v36  ;;  %v3862_v53 = vmul.f32 1.442695, %v3859_v61 }
0x1ec3   : > { %v4153_v22 = vpop.permute.xlu1 %4152 }
0x1ec4   : > { %v3984_v54 = vmul.f32 1.442695, %v3982_v39  ;;  %v4158_v27 = vsel %vm1210_vm3, %v4153_v22, 0 }
0x1ec5   : > { %v3981_v43 = vpop.xlane.xlu0 %3980 }
0x1ec6   : > { %6434 = vpow2.f32 %v3984_v54  ;;  %v3983_v62 = vsub.f32 %v3975_v25, %v3981_v43 }
0x1ec7   : > { %6436 = vpow2.f32 %v3862_v53 }
0x1ec8   : > { %v3986_v42 = vmul.f32 1.442695, %v3983_v62 }
0x1eca   : > { %6438 = vpow2.f32 %v3986_v42 }
0x1ecc   : > { %v6433_v31 = vpop.eup %6432 }
0x1ecd   : > { %v3864_v38 = vsel %vm1210_vm3, %v6433_v31, 0.0 }
0x1ece   : > { %3865 = vadd.xlane.f32.xlu0 %v3864_v38 }
0x1ed0   : > { %v6435_v49 = vpop.eup %6434 }
0x1ed1   : > { %v3988_v63 = vsel %vm1210_vm3, %v6435_v49, 0.0  ;;  %v6437_v15 = vpop.eup %6436 }
0x1ed2   : > { %3989 = vadd.xlane.f32.xlu0 %v3988_v63  ;;  %v3867_v18 = vsel %vm1210_vm3, %v6437_v15, 0.0 }
0x1ed4   : > { %v6439_v4 = vpop.eup %6438 }
0x1ed5   : > { %v3991_v13 = vsel %vm1210_vm3, %v6439_v4, 0.0 }
0x1ed6   : > { %3868 = vadd.xlane.f32.xlu0 %v3867_v18 }
0x1eda   : > { %3992 = vadd.xlane.f32.xlu0 %v3991_v13 }
0x1ef0   : > { %4000 = vrot.lane.b32.xlu0 %v8137_v58, %s7157_s15  ;;  %s8463_s15 = smov 16  }
0x1ef4   : > { %4150 = vrot.lane.b32.xlu0 %v8135_v24, %s8461_s6 }
0x1f5b   : > { %v3866_v34 = vpop.xlane.xlu0 %3865 }
0x1f5c   : > { %6440 = vrcp.f32 %v3866_v34 }
0x1f5f   : > { %v3990_v16 = vpop.xlane.xlu0 %3989 }
0x1f63   : > { %v3869_v7 = vpop.xlane.xlu0 %3868 }
0x1f64   : > { %6442 = vrcp.f32 %v3869_v7 }
0x1f66   : > { %v6441_v8 = vpop.eup %6440 }
0x1f67   : > { %v3993_v17 = vpop.xlane.xlu0 %3992  ;;  %v3871_v2 = vmul.f32 %v6441_v8, %v6433_v31 }
0x1f68   : > { %6444 = vrcp.f32 %v3993_v17 }
0x1f69   : > { %6446 = vrcp.f32 %v3990_v16 }
0x1f6b   : > { %v4001_v23 = vpop.permute.xlu0 %4000 }
0x1f6e   : > { %v6443_v57 = vpop.eup %6442 }
0x1f6f   : > { %v3873_v60 = vmul.f32 %v6443_v57, %v6437_v15  ;;  %v4151_v46 = vpop.permute.xlu0 %4150 }
0x1f71   : > { %v3874_v19 = vpack.c.bf16 %v3873_v60, %v3871_v2 }
0x1f72   : > { %v6445_v20 = vpop.eup %6444 }
0x1f73   : > { %5846 = vmatmul.mubr.msk.bf16.vlgmr.msra.gmra.mrb[68].mxu0 %vm1210_vm3, %v3874_v19  ;;  %v6447_v55 = vpop.eup %6446  ;;  %v3997_v56 = vmul.f32 %v6445_v20, %v6439_v4 }
0x1f74   : > { %5856 = vmatpush3.bf16.msra.mxu0 %v4001_v23  ;;  %5857 = vmatprep.mubr.msk.bf16.mxu0 %vm7152_vm0, %v7151_v0  ;;  %v3995_v26 = vmul.f32 %v6447_v55, %v6435_v49 }
0x1f75   : > { %5867 = vmatprep.subr.bf16.mxu0 %v7151_v0 }
0x1f76   : > { %v3998_v11 = vpack.c.bf16 %v3997_v56, %v3995_v26 }
0x1f7b   : > { %5858 = vmatmul.mubr.msk.bf16.vlgmr.msra.gmra.mrb[72].mxu0 %vm1210_vm3, %v3998_v11  ;;  %v6294_v11 = vld [vmem:[#allocation26 + $0x10] sm:$0xff]  }
0x1f7c   : > { %5869 = vmatprep.mubr.msk.bf16.mxu0 %vm7152_vm0, %v7151_v0  ;;  %5868 = vmatpush3.bf16.msra.mxu0 %v6292_v29 }
0x1f7d   : > { %5879 = vmatprep.subr.bf16.mxu0 %v7151_v0 }
0x2046   : > { %v3913_v5 = vpop.f32.mrb[68].mxu0 }
0x2047   : > { %v5847_v14 = vpop.f32.mrb[69].mxu0 }
0x2048   : > { %v3916_v33 = vpop.f32.mrb[70].mxu0 }
0x2049   : > { %v3920_v35 = vpack.c.bf16 %v3916_v33, %v3913_v5  ;;  %v5848_v28 = vpop.f32.mrb[71].mxu0 }
0x204b   : > { %5870 = vmatmul.mubr.msk.bf16.vlgmr.msra.gmra.mrb[76].mxu0 %vm1210_vm3, %v3920_v35 }
0x204c   : > { %5881 = vmatprep.mubr.msk.bf16.mxu0 %vm7152_vm0, %v7151_v0 }
0x204e   : > { %v4040_v12 = vpop.f32.mrb[72].mxu0 }
0x204f   : > { %v5859_v10 = vpop.f32.mrb[73].mxu0 }
0x2050   : > { %v4043_v6 = vpop.f32.mrb[74].mxu0 }
0x2051   : > { %v4047_v37 = vpack.c.bf16 %v4043_v6, %v4040_v12  ;;  %v5860_v44 = vpop.f32.mrb[75].mxu0 }
0x2053   : > { %5864 = vmatmul.mubr.msk.bf16.vlgmr.msra.gmra.mrb[48].mxu1 %vm1210_vm3, %v4047_v37 }
0x2054   : > { %5874 = vmatpush3.bf16.xpose.msra.mxu1 %v4158_v27  ;;  %5875 = vmatprep.mubr.msk.bf16.mxu1 %vm7152_vm0, %v7151_v0 }
0x2055   : > { %5885 = vmatprep.subr.bf16.mxu1 %v7151_v0 }
0x205b   : > { %5876 = vmatmul.mubr.msk.bf16.vlgmr.msra.gmra.mrb[52].mxu1 %vm1210_vm3, %v4151_v46 }
0x205c   : > { %5887 = vmatprep.mubr.msk.bf16.mxu1 %vm7152_vm0, %v7151_v0  ;;  %5886 = vmatpush3.bf16.msra.mxu1 %v6294_v11 }
0x205d   : > { %5897 = vmatprep.subr.bf16.mxu1 %v7151_v0 }
0x211e   : > { %v4143_v25 = vpop.f32.mrb[76].mxu0 }
0x211f   : > { %v5871_v30 = vpop.f32.mrb[77].mxu0 }
0x2120   : > { %v4146_v47 = vpop.f32.mrb[78].mxu0 }
0x2121   : > { %v5872_v51 = vpop.f32.mrb[79].mxu0 }
0x2126   : > { %v4093_v48 = vpop.f32.mrb[48].mxu1 }
0x2127   : > { %v8192_v40 = vadd.f32 %v4143_v25, %v4093_v48  ;;  %v5865_v50 = vpop.f32.mrb[49].mxu1 }
0x2128   : > { %v4096_v52 = vpop.f32.mrb[50].mxu1 }
0x2129   : > { %v8194_v61 = vadd.f32 %v4146_v47, %v4096_v52  ;;  %v5866_v36 = vpop.f32.mrb[51].mxu1 }
0x212a   : > { %v6295_v36 = vld [vmem:[#allocation26 + $0x18] sm:$0xff]  }
0x212e   : > { %v4194_v39 = vpop.f32.mrb[52].mxu1 }
0x212f   : > { %v4201_v53 = vmul.f32 0.25, %v4194_v39  ;;  %v5877_v54 = vpop.f32.mrb[53].mxu1 }
0x2130   : > { %v4197_v43 = vpop.f32.mrb[54].mxu1 }
0x2131   : > { %v4202_v62 = vmul.f32 0.25, %v4197_v43  ;;  %v5878_v42 = vpop.f32.mrb[55].mxu1  ;;  %v4203_v31 = vsel %vm1210_vm3, %v4201_v53, -inf }
0x2132   : > { %4204 = vmax.xlane.f32.xlu1 %v4203_v31 }
0x2133   : > { %v4206_v38 = vsel %vm1210_vm3, %v4202_v62, -inf }
0x2134   : > { %4207 = vmax.xlane.f32.xlu0 %v4206_v38 }
0x2143   : > { %4226 = vrot.lane.b32.xlu1 %v8137_v58, %s8461_s6  ;;  %s5573_s6 = sshll.u32 %s8471_s26, 4 }
0x2147   : > { %4328 = vrot.lane.b32.xlu1 %v8135_v24, %s8462_s28 }
0x21bf   : > { %v4205_v49 = vpop.xlane.xlu1 %4204 }
0x21c0   : > { %v4209_v63 = vsub.f32 %v4201_v53, %v4205_v49 }
0x21c1   : > { %v4208_v15 = vpop.xlane.xlu0 %4207 }
0x21c2   : > { %v4211_v18 = vmul.f32 1.442695, %v4209_v63  ;;  %v4210_v4 = vsub.f32 %v4202_v62, %v4208_v15 }
0x21c3   : > { %v4227_v13 = vpop.permute.xlu1 %4226 }
0x21c4   : > { %6448 = vpow2.f32 %v4211_v18  ;;  %v4213_v34 = vmul.f32 1.442695, %v4210_v4  ;;  %5880 = vmatpush3.bf16.msra.mxu0 %v4227_v13 }
0x21c5   : > { %5891 = vmatprep.subr.bf16.mxu0 %v7151_v0 }
0x21c6   : > { %6450 = vpow2.f32 %v4213_v34 }
0x21ce   : > { %v6449_v16 = vpop.eup %6448 }
0x21cf   : > { %v4215_v7 = vsel %vm1210_vm3, %v6449_v16, 0.0 }
0x21d0   : > { %v6451_v17 = vpop.eup %6450  ;;  %4216 = vadd.xlane.f32.xlu0 %v4215_v7 }
0x21d1   : > { %v4218_v8 = vsel %vm1210_vm3, %v6451_v17, 0.0 }
0x21d4   : > { %4219 = vadd.xlane.f32.xlu0 %v4218_v8 }
0x21ea   : > { %4330 = vrot.lane.b32.xlu0 %v8135_v24, %s8463_s15  ;;  %v4329_v24 = vpop.permute.xlu1 %4328 }
0x225d   : > { %v4217_v57 = vpop.xlane.xlu0 %4216 }
0x225e   : > { %6452 = vrcp.f32 %v4217_v57  ;;  %v5533_v57 = vld [vmem:[#allocation25 + $0x2] ss:$0 sm:$0xff] }
0x2261   : > { %v4220_v2 = vpop.xlane.xlu0 %4219 }
0x2262   : > { %6454 = vrcp.f32 %v4220_v2 }
0x2265   : > { %v4331_v55 = vpop.permute.xlu0 %4330 }
0x2266   : > { %v4336_v26 = vsel %vm1210_vm3, %v4331_v55, 0 }
0x2268   : > { %v6453_v60 = vpop.eup %6452 }
0x2269   : > { %v4222_v20 = vmul.f32 %v6453_v60, %v6449_v16 }
0x226c   : > { %v6455_v19 = vpop.eup %6454 }
0x226d   : > { %v4224_v23 = vmul.f32 %v6455_v19, %v6451_v17 }
0x226f   : > { %v4225_v56 = vpack.c.bf16 %v4224_v23, %v4222_v20 }
0x2271   : > { %5882 = vmatmul.mubr.msk.bf16.vlgmr.msra.gmra.mrb[80].mxu0 %vm1210_vm3, %v4225_v56 }
0x2272   : > { %5892 = vmatpush3.bf16.xpose.msra.mxu0 %v4336_v26  ;;  %5893 = vmatprep.mubr.msk.bf16.mxu0 %vm7152_vm0, %v7151_v0 }
0x2273   : > { %5903 = vmatprep.subr.bf16.mxu0 %v7151_v0 }
0x2279   : > { %5894 = vmatmul.mubr.msk.bf16.vlgmr.msra.gmra.mrb[84].mxu0 %vm1210_vm3, %v4329_v24 }
0x227a   : > { %5905 = vmatprep.mubr.msk.bf16.mxu0 %vm7152_vm0, %v7151_v0  ;;  %5904 = vmatpush3.bf16.msra.mxu0 %v6295_v36 }
0x2344   : > { %v4266_v29 = vpop.f32.mrb[80].mxu0 }
0x2345   : > { %v5883_v32 = vpop.f32.mrb[81].mxu0 }
0x2346   : > { %v4269_v5 = vpop.f32.mrb[82].mxu0 }
0x2347   : > { %v4273_v14 = vpack.c.bf16 %v4269_v5, %v4266_v29  ;;  %v5884_v33 = vpop.f32.mrb[83].mxu0 }
0x2349   : > { %5888 = vmatmul.mubr.msk.bf16.vlgmr.msra.gmra.mrb[56].mxu1 %vm1210_vm3, %v4273_v14 }
0x234a   : > { %5899 = vmatprep.mubr.msk.bf16.mxu1 %vm7152_vm0, %v7151_v0 }
0x234c   : > { %v4372_v35 = vpop.f32.mrb[84].mxu0 }
0x234d   : > { %v4379_v28 = vmul.f32 0.25, %v4372_v35  ;;  %v5895_v12 = vpop.f32.mrb[85].mxu0 }
0x234e   : > { %v4375_v10 = vpop.f32.mrb[86].mxu0  ;;  %v6301_v12 = vld [vmem:[%s7304_s5 + $0xc] ss:$16 sps:$4 sm:$0xff]  }
0x234f   : > { %v4380_v22 = vmul.f32 0.25, %v4375_v10  ;;  %v5896_v6 = vpop.f32.mrb[87].mxu0  ;;  %v4381_v37 = vsel %vm1210_vm3, %v4379_v28, -inf  ;;  %v6296_v10 = vld [vmem:[%s7304_s5] ss:$16 sps:$4 sm:$0xff]   ;;  %4720 = vmatprep.subr.bf16.mxu0 %v6301_v12 }
0x2350   : > { %4382 = vmax.xlane.f32.xlu1 %v4381_v37  ;;  %v6304_v6 = vld [vmem:[%s7304_s5 + $0x24] ss:$16 sps:$4 sm:$0xff]   ;;  %v6307_v37 = vld [vmem:[%s7304_s5 + $0x2c] ss:$16 sps:$4 sm:$0xff]  }
0x2351   : > { %v4384_v44 = vsel %vm1210_vm3, %v4380_v22, -inf }
0x2352   : > { %4385 = vmax.xlane.f32.xlu0 %v4384_v44  ;;  %v6302_v44 = vld [vmem:[%s7304_s5 + $0x20] ss:$16 sps:$4 sm:$0xff]  }
0x23dd   : > { %v4383_v27 = vpop.xlane.xlu1 %4382 }
0x23de   : > { %v4387_v46 = vsub.f32 %v4379_v28, %v4383_v27  ;;  %v6298_v28 = vld [vmem:[%s7304_s5 + $0x4] ss:$16 sps:$4 sm:$0xff]   ;;  %v6305_v27 = vld [vmem:[%s7304_s5 + $0x28] ss:$16 sps:$4 sm:$0xff]  }
0x23df   : > { %v4386_v25 = vpop.xlane.xlu0 %4385 }
0x23e0   : > { %v4389_v30 = vmul.f32 1.442695, %v4387_v46  ;;  %v4388_v47 = vsub.f32 %v4380_v22, %v4386_v25  ;;  %v6299_v22 = vld [vmem:[%s7304_s5 + $0x8] ss:$16 sps:$4 sm:$0xff]   ;;  %v6310_v46 = vld [vmem:[%s7304_s5 + $0x44] ss:$16 sps:$4 sm:$0xff]  }
0x23e1   : > { %v6313_v25 = vld [vmem:[%s7304_s5 + $0x4c] ss:$16 sps:$4 sm:$0xff]  }
0x23e2   : > { %6456 = vpow2.f32 %v4389_v30  ;;  %v4391_v51 = vmul.f32 1.442695, %v4388_v47  ;;  %v6308_v30 = vld [vmem:[%s7304_s5 + $0x40] ss:$16 sps:$4 sm:$0xff]   ;;  %v6311_v47 = vld [vmem:[%s7304_s5 + $0x48] ss:$16 sps:$4 sm:$0xff]  }
0x23e4   : > { %6458 = vpow2.f32 %v4391_v51  ;;  %v6314_v51 = vld [vmem:[%s7304_s5 + $0x60] ss:$16 sps:$4 sm:$0xff]  }
0x23ec   : > { %v6457_v0 = vpop.eup %6456 }
0x23ed   : > { %v4393_v48 = vsel %vm1210_vm3, %v6457_v0, 0.0 }
0x23ee   : > { %v6459_v50 = vpop.eup %6458  ;;  %4394 = vadd.xlane.f32.xlu0 %v4393_v48  ;;  %v6317_v48 = vld [vmem:[%s7304_s5 + $0x68] ss:$16 sps:$4 sm:$0xff]  }
0x23ef   : > { %v4396_v52 = vsel %vm1210_vm3, %v6459_v50, 0.0 }
0x23f0   : > { %4397 = vadd.xlane.f32.xlu1 %v4396_v52 }
0x2404   : > { %4404 = vrot.lane.b32.xlu0 %v8137_v58, %s8462_s28  ;;  %s1197_s28 = scalar_lea.vmem %s8465_s22, %s5573_s6 }
0x241c   : > { %v4319_v39 = vpop.f32.mrb[56].mxu1 }
0x241d   : > { %v4326_v53 = vadd.f32 %v4319_v39, %v8192_v40  ;;  %v5889_v54 = vpop.f32.mrb[57].mxu1 }
0x241e   : > { %v4322_v43 = vpop.f32.mrb[58].mxu1 }
0x241f   : > { %v4327_v62 = vadd.f32 %v4322_v43, %v8194_v61  ;;  %v5890_v42 = vpop.f32.mrb[59].mxu1 }
0x247b   : > { %v4395_v31 = vpop.xlane.xlu0 %4394 }
0x247c   : > { %6460 = vrcp.f32 %v4395_v31  ;;  %v5534_v31 = vld [vmem:[#allocation28] ss:$0 sm:$0xff] }
0x247d   : > { %v4398_v38 = vpop.xlane.xlu1 %4397 }
0x247e   : > { %6462 = vrcp.f32 %v4398_v38 }
0x247f   : > { %v4405_v49 = vpop.permute.xlu0 %4404 }
0x2480   : > { %5898 = vmatpush3.bf16.msra.mxu1 %v4405_v49 }
0x2481   : > { %4677 = vmatprep.subr.bf16.mxu1 %v6298_v28 }
0x2486   : > { %v6461_v63 = vpop.eup %6460 }
0x2487   : > { %v4400_v18 = vmul.f32 %v6461_v63, %v6457_v0  ;;  %v6316_v0 = vld [vmem:[%s7304_s5 + $0x64] ss:$16 sps:$4 sm:$0xff]  }
0x2488   : > { %v6463_v15 = vpop.eup %6462 }
0x2489   : > { %v4402_v58 = vmul.f32 %v6463_v15, %v6459_v50  ;;  %v6319_v50 = vld [vmem:[%s7304_s5 + $0x6c] ss:$16 sps:$4 sm:$0xff]   ;;  %v5535_v15 = vld [vmem:[#allocation28 + $0x1] ss:$0 sm:$0xff] }
0x248b   : > { %v4403_v4 = vpack.c.bf16 %v4402_v58, %v4400_v18 }
0x248d   : > { %5900 = vmatmul.mubr.msk.bf16.vlgmr.msra.gmra.mrb[60].mxu1 %vm1210_vm3, %v4403_v4 }
0x248e   : > { %4709 = vmatprep.mubr.bf16.mxu1 %v7154_v45  ;;  %4678 = vmatpush1.bf16.msra.mxu1 %v6296_v10 }
0x248f   : > { %4679 = vmatprep.subr.bf16.mxu1 %v6304_v6 }
0x2492   : > { %4680 = vmatpush1.bf16.msra.mxu1 %v6302_v44 }
0x2493   : > { %4681 = vmatprep.subr.bf16.mxu1 %v6310_v46 }
0x2496   : > { %4682 = vmatpush1.bf16.msra.mxu1 %v6308_v30 }
0x2497   : > { %4683 = vmatprep.subr.bf16.mxu1 %v6316_v0 }
0x249a   : > { %4684 = vmatpush1.bf16.msra.mxu1 %v6314_v51 }
0x2560   : > { %v4444_v40 = vpop.f32.mrb[60].mxu1 }
0x2561   : > { %v5901_v13 = vpop.f32.mrb[61].mxu1 }
0x2562   : > { %v4447_v34 = vpop.f32.mrb[62].mxu1  ;;  %v6320_v13 = vld [vmem:[%s8464_s0 + $0x40] sm:$0xff]  }
0x2563   : > { %v4451_v61 = vpack.c.bf16 %v4447_v34, %v4444_v40  ;;  %v5902_v16 = vpop.f32.mrb[63].mxu1  ;;  %v6321_v34 = vld [vmem:[%s8464_s0] sm:$0xff]   ;;  %5687 = vmatprep.subr.bf16.mxu1 %v6320_v13 }
0x2564   : > { %v6323_v16 = vld [vmem:[%s8464_s0 + $0x8] sm:$0xff]  }
0x2565   : > { %5906 = vmatmul.mubr.msk.bf16.vlgmr.msra.gmra.mrb[88].mxu0 %vm1210_vm3, %v4451_v61  ;;  %v6322_v61 = vld [vmem:[%s8464_s0 + $0x48] sm:$0xff]  }
0x2566   : > { %4752 = vmatprep.mubr.bf16.mxu0 %v7154_v45  ;;  %4721 = vmatpush1.bf16.msra.mxu0 %v6299_v22 }
0x2567   : > { %4722 = vmatprep.subr.bf16.mxu0 %v6307_v37 }
0x256a   : > { %4723 = vmatpush1.bf16.msra.mxu0 %v6305_v27 }
0x256b   : > { %4724 = vmatprep.subr.bf16.mxu0 %v6313_v25 }
0x256e   : > { %4725 = vmatpush1.bf16.msra.mxu0 %v6311_v47 }
0x256f   : > { %4726 = vmatprep.subr.bf16.mxu0 %v6319_v50 }
0x2572   : > { %4727 = vmatpush1.bf16.msra.mxu0 %v6317_v48 }
0x2638   : > { %v4497_v7 = vpop.f32.mrb[88].mxu0 }
0x2639   : > { %v4504_v17 = vadd.f32 %v4497_v7, %v4326_v53  ;;  %v5907_v8 = vpop.f32.mrb[89].mxu0  ;;  %v6324_v7 = vld [vmem:[%s8464_s0 + $0x50] sm:$0xff]  }
0x263a   : > { %v4500_v2 = vpop.f32.mrb[90].mxu0  ;;  %v6326_v8 = vld [vmem:[%s8464_s0 + $0x58] sm:$0xff]  }
0x263b   : > { %v4506_v60 = vadd.f32 %v4504_v17, %v8110_v41  ;;  %v4505_v19 = vadd.f32 %v4500_v2, %v4327_v62  ;;  %v5908_v20 = vpop.f32.mrb[91].mxu0  ;;  %v6325_v17 = vld [vmem:[%s8464_s0 + $0x10] sm:$0xff]   ;;  %v6328_v2 = vld [vmem:[%s8464_s0 + $0x60] sm:$0xff]  }
0x263c   : > { %v6331_v20 = vld [vmem:[%s8464_s0 + $0x28] sm:$0xff]  }
0x263d   : > { %v8232_v23 = vadd.f32 %v5533_v57, %v4506_v60  ;;  %v4507_v55 = vadd.f32 %v4505_v19, %v8113_v59  ;;  %v6329_v60 = vld [vmem:[%s8464_s0 + $0x20] sm:$0xff]   ;;  %v6330_v19 = vld [vmem:[%s8464_s0 + $0x68] sm:$0xff]  }
0x263f   : > { %v8235_v56 = vadd.f32 %v5533_v57, %v4507_v55  ;;  %v4515_v26 = vsel %vm1308_vm2, %v8232_v23, 0.0  ;;  %v6327_v57 = vld [vmem:[%s8464_s0 + $0x18] sm:$0xff]   ;;  %v6332_v55 = vld [vmem:[%s8464_s0 + $0x70] sm:$0xff]  }
0x2640   : > { %4516 = vadd.xlane.f32.xlu1 %v4515_v26  ;;  %v6333_v26 = vld [vmem:[%s8464_s0 + $0x30] sm:$0xff]  }
0x2641   : > { %v4518_v45 = vsel %vm1308_vm2, %v8235_v56, 0.0 }
0x2644   : > { %4519 = vadd.xlane.f32.xlu1 %v4518_v45  ;;  %v6334_v45 = vld [vmem:[%s8464_s0 + $0x78] sm:$0xff]  }
0x26cd   : > { %v4517_v41 = vpop.xlane.xlu1 %4516 }
0x26ce   : > { %v4521_v24 = vmul.f32 0.015625, %v4517_v41  ;;  %v6335_v41 = vld [vmem:[%s8464_s0 + $0x38] sm:$0xff]  }
0x26d0   : > { %v4523_v11 = vsub.f32 %v8232_v23, %v4521_v24  ;;  %v8279_v24 = vld [vmem:[#allocation29] sm:$0xf] }
0x26d1   : > { %v4520_v29 = vpop.xlane.xlu1 %4519 }
0x26d2   : > { %v4522_v59 = vmul.f32 0.015625, %v4520_v29  ;;  %v4525_v32 = vmul.f32 %v4523_v11, %v4523_v11  ;;  %v4589_v29 = vrot.slane %v8279_v24, %v7819_v9 }
0x26d4   : > { %v4524_v5 = vsub.f32 %v8235_v56, %v4522_v59  ;;  %v4527_v14 = vsel %vm1308_vm2, %v4525_v32, 0.0 }
0x26d5   : > { %4528 = vadd.xlane.f32.xlu1 %v4527_v14 }
0x26d6   : > { %v4526_v33 = vmul.f32 %v4524_v5, %v4524_v5 }
0x26d8   : > { %v4530_v35 = vsel %vm1308_vm2, %v4526_v33, 0.0 }
0x26d9   : > { %4531 = vadd.xlane.f32.xlu1 %v4530_v35 }
0x2762   : > { %v4529_v52 = vpop.xlane.xlu1 %4528 }
0x2763   : > { %v4533_v36 = vmul.f32 0.015625, %v4529_v52 }
0x2765   : > { %v4535_v39 = vadd.f32 1e-05, %v4533_v36 }
0x2766   : > { %v4532_v53 = vpop.xlane.xlu1 %4531 }
0x2767   : > { %6464 = vrsqrt.f32 %v4535_v39  ;;  %v4534_v54 = vmul.f32 0.015625, %v4532_v53 }
0x2769   : > { %v4536_v43 = vadd.f32 1e-05, %v4534_v54 }
0x276b   : > { %6466 = vrsqrt.f32 %v4536_v43 }
0x2771   : > { %v6465_v62 = vpop.eup %6464 }
0x2772   : > { %v4539_v42 = vmul.f32 %v6465_v62, %v4523_v11  ;;  %v4585_v11 = vrot.slane %v8279_v24, %v7814_v21 }
0x2774   : > { %v4546_v49 = vmul.f32 %v5534_v31, %v4539_v42 }
0x2775   : > { %v6467_v38 = vpop.eup %6466 }
0x2776   : > { %v4540_v63 = vmul.f32 %v6467_v38, %v4524_v5  ;;  %v4553_v58 = vadd.f32 %v5535_v15, %v4546_v49 }
0x2778   : > { %v4547_v18 = vmul.f32 %v5534_v31, %v4540_v63 }
0x277a   : > { %v4554_v4 = vadd.f32 %v5535_v15, %v4547_v18 }
0x277c   : > { %v4555_v40 = vpack.c.bf16 %v4554_v4, %v4553_v58 }
0x277e   : > { %5552 = vmatmul.mubr.msk.bf16.vlgmr.msra.gmra.mrb[64].mxu1 %vm1308_vm2, %v4555_v40  ;;  %5553 = vmatmul.mubr.msk.bf16.vlgmr.msra.gmra.mrb[92].mxu0 %vm1308_vm2, %v4555_v40 }
0x277f   : > { %5688 = vmatpush3.bf16.msra.mxu1 %v6321_v34 }
0x2780   : > { %5689 = vmatprep.subr.bf16.mxu1 %v6322_v61 }
0x2783   : > { %5690 = vmatpush3.bf16.msra.mxu1 %v6323_v16 }
0x2784   : > { %5691 = vmatprep.subr.bf16.mxu1 %v6324_v7 }
0x2787   : > { %5692 = vmatpush3.bf16.msra.mxu1 %v6325_v17 }
0x2788   : > { %5693 = vmatprep.subr.bf16.mxu1 %v6326_v8 }
0x278b   : > { %5694 = vmatpush3.bf16.msra.mxu1 %v6327_v57 }
0x278c   : > { %5695 = vmatprep.subr.bf16.mxu1 %v6328_v2 }
0x278f   : > { %5696 = vmatpush3.bf16.msra.mxu1 %v6329_v60 }
0x2790   : > { %5697 = vmatprep.subr.bf16.mxu1 %v6330_v19 }
0x2793   : > { %5698 = vmatpush3.bf16.msra.mxu1 %v6331_v20 }
0x2794   : > { %5699 = vmatprep.subr.bf16.mxu1 %v6332_v55 }
0x2797   : > { %5700 = vmatpush3.bf16.msra.mxu1 %v6333_v26 }
0x2798   : > { %5701 = vmatprep.subr.bf16.mxu1 %v6334_v45 }
0x279b   : > { %5702 = vmatpush3.bf16.msra.mxu1 %v6335_v41 }
0x2851   : > { %v8285_v59 = vpop.f32.mrb[64].mxu1  ;;  %v4754_v32 = vpop.f32.mrb[92].mxu0 }
0x2852   : > { %v8287_v5 = vadd.f32 %v4754_v32, %v4585_v11  ;;  %v8289_v14 = vpop.f32.mrb[65].mxu1  ;;  %v4756_v33 = vpop.f32.mrb[93].mxu0 }
0x2853   : > { %v8291_v35 = vadd.f32 %v4756_v33, %v4589_v29  ;;  %v8293_v28 = vpop.f32.mrb[66].mxu1  ;;  %v4758_v12 = vpop.f32.mrb[94].mxu0 }
0x2854   : > { %v8296_v10 = vmul.f32 0.70710677, %v8287_v5  ;;  %v8298_v21 = vadd.f32 %v4758_v12, %v4585_v11  ;;  %v8300_v22 = vpop.f32.mrb[67].mxu1  ;;  %v4760_v9 = vpop.f32.mrb[95].mxu0 }
0x2855   : > { %v8303_v6 = vmul.f32 0.70710677, %v8291_v35  ;;  %v8305_v37 = vadd.f32 %v4760_v9, %v4589_v29 }
0x2856   : > { %v4771_v44 = vand.u32 2147483647, %v8296_v10  ;;  %v8309_v27 = vmul.f32 0.70710677, %v8298_v21  ;;  %vm4851_vm14 = vcmp.ge.f32.partialorder %v8296_v10, 0.0 }
0x2857   : > { %v4772_v46 = vand.u32 2147483647, %v8303_v6  ;;  %v8313_v25 = vmul.f32 0.70710677, %v8305_v37  ;;  %vm4852_vm15 = vcmp.ge.f32.partialorder %v8303_v6, 0.0 }
0x2858   : > { %v4775_v30 = vmul.f32 0.3275911, %v4771_v44  ;;  %v4773_v47 = vand.u32 2147483647, %v8309_v27  ;;  %v4827_v54 = vsub.f32 0.0, %v4771_v44  ;;  %vm4853_vm0 = vcmp.ge.f32.partialorder %v8309_v27, 0.0 }
0x2859   : > { %v4776_v51 = vmul.f32 0.3275911, %v4772_v46  ;;  %v4774_v0 = vand.u32 2147483647, %v8313_v25  ;;  %v4828_v43 = vsub.f32 0.0, %v4772_v46  ;;  %vm4854_vm1 = vcmp.ge.f32.partialorder %v8313_v25, 0.0 }
0x285a   : > { %v4779_v48 = vadd.f32 1.0, %v4775_v30  ;;  %v4777_v50 = vmul.f32 0.3275911, %v4773_v47  ;;  %v4831_v42 = vmul.f32 %v4827_v54, %v4771_v44  ;;  %v4829_v31 = vsub.f32 0.0, %v4773_v47 }
0x285b   : > { %v4780_v52 = vadd.f32 1.0, %v4776_v51  ;;  %v4778_v36 = vmul.f32 0.3275911, %v4774_v0  ;;  %v4832_v63 = vmul.f32 %v4828_v43, %v4772_v46  ;;  %v4830_v18 = vsub.f32 0.0, %v4774_v0 }
0x285c   : > { %6468 = vrcp.f32 %v4779_v48  ;;  %v4781_v39 = vadd.f32 1.0, %v4777_v50  ;;  %v4835_v40 = vmul.f32 1.442695, %v4831_v42  ;;  %v4833_v34 = vmul.f32 %v4829_v31, %v4773_v47 }
0x285d   : > { %6470 = vrcp.f32 %v4780_v52  ;;  %v4782_v53 = vadd.f32 1.0, %v4778_v36  ;;  %v4837_v16 = vmul.f32 1.442695, %v4832_v63  ;;  %v4834_v57 = vmul.f32 %v4830_v18, %v4774_v0 }
0x285e   : > { %6472 = vrcp.f32 %v4781_v39  ;;  %v4839_v55 = vmul.f32 1.442695, %v4833_v34 }
0x285f   : > { %6474 = vrcp.f32 %v4782_v53  ;;  %v4841_v29 = vmul.f32 1.442695, %v4834_v57 }
0x2860   : > { %6476 = vpow2.f32 %v4835_v40 }
0x2861   : > { %6478 = vpow2.f32 %v4837_v16 }
0x2862   : > { %6480 = vpow2.f32 %v4839_v55 }
0x2863   : > { %6482 = vpow2.f32 %v4841_v29 }
0x2866   : > { %v6469_v62 = vpop.eup %6468 }
0x2867   : > { %v6471_v38 = vpop.eup %6470  ;;  %v4791_v49 = vmul.f32 1.0614054, %v6469_v62 }
0x2868   : > { %v4792_v15 = vmul.f32 1.0614054, %v6471_v38  ;;  %v6473_v4 = vpop.eup %6472 }
0x2869   : > { %v4795_v58 = vadd.f32 -1.4531521, %v4791_v49  ;;  %v4793_v7 = vmul.f32 1.0614054, %v6473_v4  ;;  %v6475_v17 = vpop.eup %6474 }
0x286a   : > { %v4796_v13 = vadd.f32 -1.4531521, %v4792_v15  ;;  %v4794_v19 = vmul.f32 1.0614054, %v6475_v17  ;;  %v6477_v53 = vpop.eup %6476 }
0x286b   : > { %v4799_v61 = vmul.f32 %v6469_v62, %v4795_v58  ;;  %v4797_v60 = vadd.f32 -1.4531521, %v4793_v7  ;;  %v6479_v43 = vpop.eup %6478 }
0x286c   : > { %v4800_v8 = vmul.f32 %v6471_v38, %v4796_v13  ;;  %v4798_v41 = vadd.f32 -1.4531521, %v4794_v19  ;;  %v6481_v40 = vpop.eup %6480 }
0x286d   : > { %v4803_v2 = vadd.f32 1.4214138, %v4799_v61  ;;  %v4801_v45 = vmul.f32 %v6473_v4, %v4797_v60  ;;  %v6483_v7 = vpop.eup %6482  ;;  %v4763_v60 = vmul.f32 0.5, %v8287_v5  ;;  %v4765_v5 = vmul.f32 0.5, %v8298_v21 }
0x286e   : > { %v4804_v20 = vadd.f32 1.4214138, %v4800_v8  ;;  %v4802_v12 = vmul.f32 %v6475_v17, %v4798_v41 }
0x286f   : > { %v4807_v26 = vmul.f32 %v6469_v62, %v4803_v2  ;;  %v4805_v33 = vadd.f32 1.4214138, %v4801_v45 }
0x2870   : > { %v4808_v11 = vmul.f32 %v6471_v38, %v4804_v20  ;;  %v4806_v30 = vadd.f32 1.4214138, %v4802_v12  ;;  %v4766_v12 = vmul.f32 0.5, %v8305_v37 }
0x2871   : > { %v4811_v32 = vadd.f32 -0.28449672, %v4807_v26  ;;  %v4809_v46 = vmul.f32 %v6473_v4, %v4805_v33 }
0x2872   : > { %v4812_v9 = vadd.f32 -0.28449672, %v4808_v11  ;;  %v4810_v48 = vmul.f32 %v6475_v17, %v4806_v30 }
0x2873   : > { %v4815_v44 = vmul.f32 %v6469_v62, %v4811_v32  ;;  %v4813_v0 = vadd.f32 -0.28449672, %v4809_v46 }
0x2874   : > { %v4816_v47 = vmul.f32 %v6471_v38, %v4812_v9  ;;  %v4814_v39 = vadd.f32 -0.28449672, %v4810_v48 }
0x2875   : > { %v4819_v51 = vadd.f32 0.2548296, %v4815_v44  ;;  %v4817_v36 = vmul.f32 %v6473_v4, %v4813_v0 }
0x2876   : > { %v4820_v50 = vadd.f32 0.2548296, %v4816_v47  ;;  %v4818_v49 = vmul.f32 %v6475_v17, %v4814_v39  ;;  %v5554_v47 = vld [vmem:[#allocation28 + $0x2] ss:$0 sm:$0xff] }
0x2877   : > { %v4823_v52 = vmul.f32 %v6469_v62, %v4819_v51  ;;  %v4821_v31 = vadd.f32 0.2548296, %v4817_v36  ;;  %v4577_v62 = vrot.slane %v8279_v24, %v7858_v1 }
0x2878   : > { %v4824_v54 = vmul.f32 %v6471_v38, %v4820_v50  ;;  %v4822_v58 = vadd.f32 0.2548296, %v4818_v49  ;;  %v4581_v38 = vrot.slane %v8279_v24, %v7861_v3 }
0x2879   : > { %v4843_v42 = vmul.f32 %v6477_v53, %v4823_v52  ;;  %v4825_v18 = vmul.f32 %v6473_v4, %v4821_v31  ;;  %v4712_v10 = vadd.f32 %v8285_v59, %v4577_v62  ;;  %v4716_v33 = vadd.f32 %v8293_v28, %v4577_v62 }
0x287a   : > { %v4844_v63 = vmul.f32 %v6479_v43, %v4824_v54  ;;  %v4826_v16 = vmul.f32 %v6475_v17, %v4822_v58  ;;  %v4764_v17 = vmul.f32 0.5, %v8291_v35  ;;  %v4714_v3 = vadd.f32 %v8289_v14, %v4581_v38 }
0x287b   : > { %v4847_v15 = vsub.f32 1.0, %v4843_v42  ;;  %v4845_v61 = vmul.f32 %v6481_v40, %v4825_v18  ;;  %v4718_v14 = vadd.f32 %v8300_v22, %v4581_v38 }
0x287c   : > { %v4848_v13 = vsub.f32 1.0, %v4844_v63  ;;  %v4846_v2 = vmul.f32 %v6483_v7, %v4826_v16 }
0x287d   : > { %v4855_v34 = vsub.f32 0.0, %v4847_v15  ;;  %v4849_v4 = vsub.f32 1.0, %v4845_v61 }
0x287e   : > { %v4856_v8 = vsub.f32 0.0, %v4848_v13  ;;  %v4850_v1 = vsub.f32 1.0, %v4846_v2 }
0x287f   : > { %v4859_v57 = vsel %vm4851_vm14, %v4847_v15, %v4855_v34  ;;  %v4857_v26 = vsub.f32 0.0, %v4849_v4 }
0x2880   : > { %v4863_v19 = vadd.f32 1.0, %v4859_v57  ;;  %v4860_v20 = vsel %vm4852_vm15, %v4848_v13, %v4856_v8  ;;  %v4858_v41 = vsub.f32 0.0, %v4850_v1 }
0x2881   : > { %v4864_v55 = vadd.f32 1.0, %v4860_v20  ;;  %v4861_v6 = vsel %vm4853_vm0, %v4849_v4, %v4857_v26 }
0x2882   : > { %v4867_v45 = vmul.f32 %v4863_v19, %v4763_v60  ;;  %v4865_v29 = vadd.f32 1.0, %v4861_v6  ;;  %v4862_v35 = vsel %vm4854_vm1, %v4850_v1, %v4858_v41 }
0x2883   : > { %v4868_v24 = vmul.f32 %v4864_v55, %v4764_v17  ;;  %v4866_v27 = vadd.f32 1.0, %v4862_v35 }
0x2884   : > { %v4871_v11 = vmul.f32 %v4867_v45, %v4712_v10  ;;  %v4869_v59 = vmul.f32 %v4865_v29, %v4765_v5 }
0x2885   : > { %v4872_v32 = vmul.f32 %v4868_v24, %v4714_v3  ;;  %v4870_v44 = vmul.f32 %v4866_v27, %v4766_v12 }
0x2886   : > { %v4873_v9 = vmul.f32 %v4869_v59, %v4716_v33 }
0x2887   : > { %v4874_v46 = vmul.f32 %v4870_v44, %v4718_v14 }
0x2888   : > { %v4875_v30 = vpack.c.bf16 %v4873_v9, %v4871_v11 }
0x2889   : > { %v4876_v21 = vpack.c.bf16 %v4874_v46, %v4872_v32 }
0x288b   : > { %5042 = vmatprep.mubr.bf16.mxu1 %v4876_v21 }
0x288c   : > { %5043 = vmatmul.mubr.bf16.vlgmr.msra.gmra.mrb[68].mxu1 %v4875_v30 }
0x295f   : > { %v5703_v25 = vpop.f32.mrb[68].mxu1 }
0x2960   : > { %v5704_v51 = vpop.f32.mrb[69].mxu1 }
0x2961   : > { %v5705_v0 = vadd.f32 %v5704_v51, %v5703_v25  ;;  %v5706_v28 = vpop.f32.mrb[70].mxu1 }
0x2962   : > { %v5707_v48 = vpop.f32.mrb[71].mxu1 }
0x2963   : > { %v5045_v50 = vadd.f32 %v5705_v0, %v5554_v47  ;;  %v5708_v37 = vadd.f32 %v5707_v48, %v5706_v28 }
0x2965   : > { %v5051_v52 = vadd.f32 %v5045_v50, %v8232_v23  ;;  %v5048_v22 = vadd.f32 %v5708_v37, %v5554_v47 }
0x2967   : > { %5053 = vst.msk [vmem:[%s1197_s28] sm:$0xff] %vm1308_vm2, %v5051_v52  ;;  %v5052_v36 = vadd.f32 %v5048_v22, %v8235_v56 }
0x2969   : > { %5054 = vst.msk [vmem:[%s1197_s28 + $0x8] sm:$0xff] %vm1308_vm2, %v5052_v36 }
0x296a PF: > { %p78_p0 = scmp.ge.s32.totalorder %s7579_s1, 4   ;;  %s8466_s15 = smov %s7088_s16 }
0x296b   : > { %s8467_s16 = smov %s7092_s18  ;;  %s8468_s18 = smov %s7591_s10 }
0x296c   : > { %s8469_s22 = smov %s7579_s1  ;;  %80 = sbr.rel (!%p78_p0) target bundleno = 69 (0x45), region = 284 }
0x2973   :  { %5076 = vsyncpa [#allocation3], 1 }
0x2974   :  { %5078 = vsyncpa [#allocation3 + $0x1], 1 }
0x2975   :  { %5079 = vsyncpa [#allocation5], 1 }
0x2976   :  { %5080 = vsyncpa [#allocation9], 1 }
0x2977   :  { %5081 = vsyncpa [#allocation12], 1 }
0x2978   :  { %5082 = vsyncpa [#allocation15], 1 }
0x2979   :  { %5083 = vsyncpa [#allocation18], 1 }
0x297a   :  { %5084 = vsyncpa [#allocation21], 1 }
0x297b   :  { %5085 = vsyncpa [#allocation24], 1 }
0x297c   :  { %5086 = vsyncpa [#allocation27], 1 }
0x297d   :  { %5087 = vsyncpa [#allocation30], 1 }

</bundles_post_ra>
